<compile_context>
chip_gen: v5e
topology: v5e:2x2
jax: 0.10.0
libtpu: 0.0.40
codegen_flags: <defaults>
</compile_context>

<pallas_src>
import functools

import jax
import jax.numpy as jnp
import numpy as np
from jax.experimental import pallas as pl
from jax.experimental.pallas import tpu as pltpu


def _rnfs_kernel(x_ref, w1a_ref, w1b_ref, b1_ref, w2_ref, b2_ref, pw_ref,
                 out_ref, ypack_ref, *, set_size: int):
    L = set_size
    BL, _ = x_ref.shape
    B = BL // L                      # sets handled by this grid step (B_TILE)
    dim = w1a_ref.shape[1]
    dout = w2_ref.shape[1]
    S, W = pw_ref.shape              # S = L*L set elements, W = B*dout lanes

    xb = x_ref[...]                                                       # (B*L, C)

    # --- MLP layer 1 with pair expansion fused in -------------------------------
    #   relu(pairs @ W1 + b1) == relu((x_i @ W1[:C] + b1) + (x_j @ W1[C:]))
    u = jnp.dot(xb, w1a_ref[...], preferred_element_type=jnp.float32) + b1_ref[...]
    v = jnp.dot(xb, w1b_ref[...], preferred_element_type=jnp.float32)    # (B*L, dim)
    u3 = u.reshape(B, L, dim)
    v3 = v.reshape(B, L, dim)
    # All L*L (i, j) pairs per set via L cyclic shifts of u within each set.
    # (Pair enumeration order within a set is free: the sort below kills order.)
    pieces = []
    for d in range(L):
        ur = u3 if d == 0 else pltpu.roll(u3, d, axis=1)
        pieces.append(jnp.maximum(ur + v3, 0.0))                          # (B, L, dim)
    h = jnp.concatenate(pieces, axis=1).reshape(B * S, dim)               # (B*S, dim)

    # --- MLP layer 2: one MXU matmul for all B sets -----------------------------
    y = jnp.dot(h, w2_ref[...], preferred_element_type=jnp.float32) + b2_ref[...]

    # --- Pack the B sets side-by-side on lanes: col b*dout + c = (set b, feat c) -
    for b in range(B):
        ypack_ref[:, b * dout:(b + 1) * dout] = y[b * S:(b + 1) * S, :]
    Y = ypack_ref[...]                                                    # (S, W)

    # --- Ascending bitonic sort along the set axis (== torch.sort(dim=1)) -------
    # Partner gather m -> m ^ j is exact: two sublane rolls + select (XLU + VPU),
    # no permutation matmuls and no (S, S) masks.
    row = jax.lax.broadcasted_iota(jnp.int32, (S, W), 0)
    k = 2
    while k <= S:
        j = k // 2
        while j >= 1:
            down = pltpu.roll(Y, S - j, axis=0)      # down[i] = Y[(i + j) % S]
            up = pltpu.roll(Y, j, axis=0)            # up[i]   = Y[(i - j) % S]
            low = jnp.bitwise_and(row, j) == 0
            partner = jnp.where(low, down, up)       # partner[i] = Y[i ^ j]
            asc = jnp.bitwise_and(row, k) == 0
            take_min = asc == low
            Y = jnp.where(take_min, jnp.minimum(Y, partner),
                          jnp.maximum(Y, partner))
            j //= 2
        k *= 2

    # --- FSPool: weighted sum over the sorted set axis (lane-dense store) -------
    out_ref[0] = jnp.sum(Y * pw_ref[...], axis=0, keepdims=True)          # (1, W)


def rnfs_encoder_forward(x, params, *, b_tile=None):
    """x: (N, set_size, input_channels) f32 -> (N, output_channels) f32."""
    w1, b1, w2, b2, pw = params
    N, L, C = x.shape
    S = L * L
    assert pw.shape[0] == S and S >= 2 and (S & (S - 1)) == 0, \
        "set_size**2 must be a power of two >= 2"
    dim = w1.shape[1]
    dout = w2.shape[1]
    if b_tile is None:
        # Fill 128 lanes for the sort (use b_tile = 256 // dout on v7x if desired).
        b_tile = max(1, 128 // dout)
    grid_n = pl.cdiv(N, b_tile)
    n_pad = grid_n * b_tile
    W = b_tile * dout

    x_p = jnp.pad(x, ((0, n_pad - N), (0, 0), (0, 0))) if n_pad != N else x
    x2 = x_p.reshape(n_pad * L, C)        # rows grouped by batch element
    w1a = w1[:C, :]                       # layer-1 weight split for fused pair expansion
    w1b = w1[C:, :]
    pw_t = jnp.tile(pw, (1, b_tile))      # (S, W): same FSPool weights for every set

    kernel = functools.partial(_rnfs_kernel, set_size=L)
    out = pl.pallas_call(
        kernel,
        out_shape=jax.ShapeDtypeStruct((grid_n, 1, W), jnp.float32),
        grid_spec=pltpu.PrefetchScalarGridSpec(
            num_scalar_prefetch=0,
            grid=(grid_n,),
            in_specs=[
                pl.BlockSpec((b_tile * L, C), lambda n: (n, 0)),   # x rows for b_tile sets
                pl.BlockSpec((C, dim), lambda n: (0, 0)),          # W1[:C]
                pl.BlockSpec((C, dim), lambda n: (0, 0)),          # W1[C:]
                pl.BlockSpec((1, dim), lambda n: (0, 0)),          # b1
                pl.BlockSpec((dim, dout), lambda n: (0, 0)),       # W2
                pl.BlockSpec((1, dout), lambda n: (0, 0)),         # b2
                pl.BlockSpec((S, W), lambda n: (0, 0)),            # FSPool weight (lane-tiled)
            ],
            out_specs=pl.BlockSpec((1, 1, W), lambda n: (n, 0, 0)),
            scratch_shapes=[pltpu.VMEM((S, W), jnp.float32)],      # lane-packed y
        ),
        compiler_params=pltpu.CompilerParams(
            dimension_semantics=("parallel",)),
    )(x2, w1a, w1b, b1, w2, b2, pw_t)
    return out.reshape(n_pad, dout)[:N]


def init_params(key, input_channels, dim, output_channels, set_size):
    # Deterministic synthetic init with the same parameter shapes as the module.
    in2 = 2 * input_channels
    S = set_size ** 2
    k1, k2, k3, k4, k5 = jax.random.split(key, 5)
    lim1 = 1.0 / np.sqrt(in2)
    w1 = jax.random.uniform(k1, (in2, dim), jnp.float32, -lim1, lim1)
    b1 = jax.random.uniform(k2, (1, dim), jnp.float32, -lim1, lim1)
    lim2 = 1.0 / np.sqrt(dim)
    w2 = jax.random.uniform(k3, (dim, output_channels), jnp.float32, -lim2, lim2)
    b2 = jax.random.uniform(k4, (1, output_channels), jnp.float32, -lim2, lim2)
    # FSPool weight: kaiming_normal_(mode='fan_out', nonlinearity='linear') -> std=1/sqrt(S)
    pw = jax.random.normal(k5, (S, output_channels), jnp.float32) / np.sqrt(S)
    return (w1, b1, w2, b2, pw)


def reference_forward(x, params):
    # Pure-JAX reference of the PyTorch forward.
    w1, b1, w2, b2, pw = params
    N, L, C = x.shape
    a = jnp.broadcast_to(x[:, :, None, :], (N, L, L, C))
    b = jnp.broadcast_to(x[:, None, :, :], (N, L, L, C))
    pairs = jnp.concatenate([a, b], axis=-1).reshape(N, L * L, 2 * C)
    h = jnp.maximum(pairs @ w1 + b1, 0.0)
    y = h @ w2 + b2
    ys = jnp.sort(y, axis=1)
    return jnp.einsum('nlc,lc->nc', ys, pw)


if __name__ == "__main__":
    # RNFSEncoder(input_channels=4, dim=32, output_channels=16, set_size=8)
    N, C, DIM, DOUT, L = 2, 4, 32, 16, 8
    key = jax.random.PRNGKey(0)
    kx, kp = jax.random.split(key)
    x = jax.random.normal(kx, (N, L, C), jnp.float32)
    params = init_params(kp, C, DIM, DOUT, L)

    out = jax.block_until_ready(rnfs_encoder_forward(x, params))
    ref = jax.block_until_ready(reference_forward(x, params))
    # Sort data movement is exact (roll + select); tolerance only absorbs MXU vs
    # XLA matmul rounding differences in the two MLP layers.
    np.testing.assert_allclose(np.asarray(out), np.asarray(ref), rtol=1e-2, atol=1e-2)
    assert out.shape == (N, DOUT)
    print("KERNEL_OK")
</pallas_src>

<mosaic_0001>
module attributes {stable_mosaic.version = 11 : i64} {
  func.func @_rnfs_kernel(%arg0: i32, %arg1: memref<64x4xf32, #tpu.memory_space<vmem>>, %arg2: memref<4x32xf32, #tpu.memory_space<vmem>>, %arg3: memref<4x32xf32, #tpu.memory_space<vmem>>, %arg4: memref<1x32xf32, #tpu.memory_space<vmem>>, %arg5: memref<32x16xf32, #tpu.memory_space<vmem>>, %arg6: memref<1x16xf32, #tpu.memory_space<vmem>>, %arg7: memref<64x128xf32, #tpu.memory_space<vmem>>, %arg8: memref<1x1x128xf32, #tpu.memory_space<vmem>>, %arg9: memref<64x128xf32, #tpu.memory_space<vmem>>) attributes {dimension_semantics = [#tpu.dimension_semantics<parallel>], iteration_bounds = array<i64: 1>, scalar_prefetch = 0 : i64, scratch_operands = 1 : i64, tpu.core_type = #tpu.core_type<tc>, window_params = [{transform_indices = @transform_0, window_bounds = array<i64: 64, 4>}, {pipeline_mode = #tpu.pipeline_mode<synchronous>, transform_indices = @transform_1, window_bounds = array<i64: 4, 32>}, {pipeline_mode = #tpu.pipeline_mode<synchronous>, transform_indices = @transform_2, window_bounds = array<i64: 4, 32>}, {pipeline_mode = #tpu.pipeline_mode<synchronous>, transform_indices = @transform_3, window_bounds = array<i64: 1, 32>}, {pipeline_mode = #tpu.pipeline_mode<synchronous>, transform_indices = @transform_4, window_bounds = array<i64: 32, 16>}, {pipeline_mode = #tpu.pipeline_mode<synchronous>, transform_indices = @transform_5, window_bounds = array<i64: 1, 16>}, {pipeline_mode = #tpu.pipeline_mode<synchronous>, transform_indices = @transform_6, window_bounds = array<i64: 64, 128>}, {transform_indices = @transform_7, window_bounds = array<i64: 1, 1, 128>}]} {
    %c0 = arith.constant 0 : index
    %c0_0 = arith.constant 0 : index
    %0 = vector.load %arg1[%c0, %c0_0] : memref<64x4xf32, #tpu.memory_space<vmem>>, vector<64x4xf32>
    %c0_1 = arith.constant 0 : index
    %c0_2 = arith.constant 0 : index
    %1 = vector.load %arg2[%c0_1, %c0_2] : memref<4x32xf32, #tpu.memory_space<vmem>>, vector<4x32xf32>
    %cst = arith.constant dense<0.000000e+00> : vector<64x32xf32>
    %2 = tpu.matmul %0, %1, %cst {dimension_numbers = #tpu.dot_dimension_numbers<[1], [0], [0], [1], [0, 0, 1, 1], [], []>} : vector<64x4xf32>, vector<4x32xf32>, vector<64x32xf32> -> vector<64x32xf32>
    %c0_3 = arith.constant 0 : index
    %c0_4 = arith.constant 0 : index
    %3 = vector.load %arg4[%c0_3, %c0_4] : memref<1x32xf32, #tpu.memory_space<vmem>>, vector<1x32xf32>
    %4 = vector.broadcast %3 : vector<1x32xf32> to vector<64x32xf32>
    %5 = arith.addf %2, %4 : vector<64x32xf32>
    %c0_5 = arith.constant 0 : index
    %c0_6 = arith.constant 0 : index
    %6 = vector.load %arg3[%c0_5, %c0_6] : memref<4x32xf32, #tpu.memory_space<vmem>>, vector<4x32xf32>
    %cst_7 = arith.constant dense<0.000000e+00> : vector<64x32xf32>
    %7 = tpu.matmul %0, %6, %cst_7 {dimension_numbers = #tpu.dot_dimension_numbers<[1], [0], [0], [1], [0, 0, 1, 1], [], []>} : vector<64x4xf32>, vector<4x32xf32>, vector<64x32xf32> -> vector<64x32xf32>
    %8 = vector.shape_cast %5 : vector<64x32xf32> to vector<8x8x32xf32>
    %9 = vector.shape_cast %7 : vector<64x32xf32> to vector<8x8x32xf32>
    %10 = arith.addf %8, %9 : vector<8x8x32xf32>
    %cst_8 = arith.constant 0.000000e+00 : f32
    %11 = vector.broadcast %cst_8 : f32 to vector<8x8x32xf32>
    %12 = arith.maximumf %10, %11 : vector<8x8x32xf32>
    %c1_i32 = arith.constant 1 : i32
    %13 = tpu.dynamic_rotate %8 by %c1_i32 dim 1 : vector<8x8x32xf32>, i32 -> vector<8x8x32xf32>
    %14 = arith.addf %13, %9 : vector<8x8x32xf32>
    %cst_9 = arith.constant 0.000000e+00 : f32
    %15 = vector.broadcast %cst_9 : f32 to vector<8x8x32xf32>
    %16 = arith.maximumf %14, %15 : vector<8x8x32xf32>
    %c2_i32 = arith.constant 2 : i32
    %17 = tpu.dynamic_rotate %8 by %c2_i32 dim 1 : vector<8x8x32xf32>, i32 -> vector<8x8x32xf32>
    %18 = arith.addf %17, %9 : vector<8x8x32xf32>
    %cst_10 = arith.constant 0.000000e+00 : f32
    %19 = vector.broadcast %cst_10 : f32 to vector<8x8x32xf32>
    %20 = arith.maximumf %18, %19 : vector<8x8x32xf32>
    %c3_i32 = arith.constant 3 : i32
    %21 = tpu.dynamic_rotate %8 by %c3_i32 dim 1 : vector<8x8x32xf32>, i32 -> vector<8x8x32xf32>
    %22 = arith.addf %21, %9 : vector<8x8x32xf32>
    %cst_11 = arith.constant 0.000000e+00 : f32
    %23 = vector.broadcast %cst_11 : f32 to vector<8x8x32xf32>
    %24 = arith.maximumf %22, %23 : vector<8x8x32xf32>
    %c4_i32 = arith.constant 4 : i32
    %25 = tpu.dynamic_rotate %8 by %c4_i32 dim 1 : vector<8x8x32xf32>, i32 -> vector<8x8x32xf32>
    %26 = arith.addf %25, %9 : vector<8x8x32xf32>
    %cst_12 = arith.constant 0.000000e+00 : f32
    %27 = vector.broadcast %cst_12 : f32 to vector<8x8x32xf32>
    %28 = arith.maximumf %26, %27 : vector<8x8x32xf32>
    %c5_i32 = arith.constant 5 : i32
    %29 = tpu.dynamic_rotate %8 by %c5_i32 dim 1 : vector<8x8x32xf32>, i32 -> vector<8x8x32xf32>
    %30 = arith.addf %29, %9 : vector<8x8x32xf32>
    %cst_13 = arith.constant 0.000000e+00 : f32
    %31 = vector.broadcast %cst_13 : f32 to vector<8x8x32xf32>
    %32 = arith.maximumf %30, %31 : vector<8x8x32xf32>
    %c6_i32 = arith.constant 6 : i32
    %33 = tpu.dynamic_rotate %8 by %c6_i32 dim 1 : vector<8x8x32xf32>, i32 -> vector<8x8x32xf32>
    %34 = arith.addf %33, %9 : vector<8x8x32xf32>
    %cst_14 = arith.constant 0.000000e+00 : f32
    %35 = vector.broadcast %cst_14 : f32 to vector<8x8x32xf32>
    %36 = arith.maximumf %34, %35 : vector<8x8x32xf32>
    %c7_i32 = arith.constant 7 : i32
    %37 = tpu.dynamic_rotate %8 by %c7_i32 dim 1 : vector<8x8x32xf32>, i32 -> vector<8x8x32xf32>
    %38 = arith.addf %37, %9 : vector<8x8x32xf32>
    %cst_15 = arith.constant 0.000000e+00 : f32
    %39 = vector.broadcast %cst_15 : f32 to vector<8x8x32xf32>
    %40 = arith.maximumf %38, %39 : vector<8x8x32xf32>
    %41 = tpu.concatenate %12, %16, %20, %24, %28, %32, %36, %40 in 1 : vector<8x8x32xf32>, vector<8x8x32xf32>, vector<8x8x32xf32>, vector<8x8x32xf32>, vector<8x8x32xf32>, vector<8x8x32xf32>, vector<8x8x32xf32>, vector<8x8x32xf32> -> vector<8x64x32xf32>
    %42 = vector.shape_cast %41 : vector<8x64x32xf32> to vector<512x32xf32>
    %c0_16 = arith.constant 0 : index
    %c0_17 = arith.constant 0 : index
    %43 = vector.load %arg5[%c0_16, %c0_17] : memref<32x16xf32, #tpu.memory_space<vmem>>, vector<32x16xf32>
    %cst_18 = arith.constant dense<0.000000e+00> : vector<512x16xf32>
    %44 = tpu.matmul %42, %43, %cst_18 {dimension_numbers = #tpu.dot_dimension_numbers<[1], [0], [0], [1], [0, 0, 1, 1], [], []>} : vector<512x32xf32>, vector<32x16xf32>, vector<512x16xf32> -> vector<512x16xf32>
    %c0_19 = arith.constant 0 : index
    %c0_20 = arith.constant 0 : index
    %45 = vector.load %arg6[%c0_19, %c0_20] : memref<1x16xf32, #tpu.memory_space<vmem>>, vector<1x16xf32>
    %46 = vector.broadcast %45 : vector<1x16xf32> to vector<512x16xf32>
    %47 = arith.addf %44, %46 : vector<512x16xf32>
    %48 = vector.extract_strided_slice %47 {offsets = [0, 0], sizes = [64, 16], strides = [1, 1]} : vector<512x16xf32> to vector<64x16xf32>
    %c0_21 = arith.constant 0 : index
    %c0_22 = arith.constant 0 : index
    %49 = vector.load %arg9[%c0_21, %c0_22] : memref<64x128xf32, #tpu.memory_space<vmem>>, vector<64x16xf32>
    tpu.vector_store %arg9[%c0_21, %c0_22], %48 {strides = array<i32>} : memref<64x128xf32, #tpu.memory_space<vmem>>, vector<64x16xf32>,
    %50 = vector.extract_strided_slice %47 {offsets = [64, 0], sizes = [64, 16], strides = [1, 1]} : vector<512x16xf32> to vector<64x16xf32>
    %c0_23 = arith.constant 0 : index
    %c16 = arith.constant 16 : index
    %51 = vector.load %arg9[%c0_23, %c16] : memref<64x128xf32, #tpu.memory_space<vmem>>, vector<64x16xf32>
    tpu.vector_store %arg9[%c0_23, %c16], %50 {strides = array<i32>} : memref<64x128xf32, #tpu.memory_space<vmem>>, vector<64x16xf32>,
    %52 = vector.extract_strided_slice %47 {offsets = [128, 0], sizes = [64, 16], strides = [1, 1]} : vector<512x16xf32> to vector<64x16xf32>
    %c0_24 = arith.constant 0 : index
    %c32 = arith.constant 32 : index
    %53 = vector.load %arg9[%c0_24, %c32] : memref<64x128xf32, #tpu.memory_space<vmem>>, vector<64x16xf32>
    tpu.vector_store %arg9[%c0_24, %c32], %52 {strides = array<i32>} : memref<64x128xf32, #tpu.memory_space<vmem>>, vector<64x16xf32>,
    %54 = vector.extract_strided_slice %47 {offsets = [192, 0], sizes = [64, 16], strides = [1, 1]} : vector<512x16xf32> to vector<64x16xf32>
    %c0_25 = arith.constant 0 : index
    %c48 = arith.constant 48 : index
    %55 = vector.load %arg9[%c0_25, %c48] : memref<64x128xf32, #tpu.memory_space<vmem>>, vector<64x16xf32>
    tpu.vector_store %arg9[%c0_25, %c48], %54 {strides = array<i32>} : memref<64x128xf32, #tpu.memory_space<vmem>>, vector<64x16xf32>,
    %56 = vector.extract_strided_slice %47 {offsets = [256, 0], sizes = [64, 16], strides = [1, 1]} : vector<512x16xf32> to vector<64x16xf32>
    %c0_26 = arith.constant 0 : index
    %c64 = arith.constant 64 : index
    %57 = vector.load %arg9[%c0_26, %c64] : memref<64x128xf32, #tpu.memory_space<vmem>>, vector<64x16xf32>
    tpu.vector_store %arg9[%c0_26, %c64], %56 {strides = array<i32>} : memref<64x128xf32, #tpu.memory_space<vmem>>, vector<64x16xf32>,
    %58 = vector.extract_strided_slice %47 {offsets = [320, 0], sizes = [64, 16], strides = [1, 1]} : vector<512x16xf32> to vector<64x16xf32>
    %c0_27 = arith.constant 0 : index
    %c80 = arith.constant 80 : index
    %59 = vector.load %arg9[%c0_27, %c80] : memref<64x128xf32, #tpu.memory_space<vmem>>, vector<64x16xf32>
    tpu.vector_store %arg9[%c0_27, %c80], %58 {strides = array<i32>} : memref<64x128xf32, #tpu.memory_space<vmem>>, vector<64x16xf32>,
    %60 = vector.extract_strided_slice %47 {offsets = [384, 0], sizes = [64, 16], strides = [1, 1]} : vector<512x16xf32> to vector<64x16xf32>
    %c0_28 = arith.constant 0 : index
    %c96 = arith.constant 96 : index
    %61 = vector.load %arg9[%c0_28, %c96] : memref<64x128xf32, #tpu.memory_space<vmem>>, vector<64x16xf32>
    tpu.vector_store %arg9[%c0_28, %c96], %60 {strides = array<i32>} : memref<64x128xf32, #tpu.memory_space<vmem>>, vector<64x16xf32>,
    %62 = vector.extract_strided_slice %47 {offsets = [448, 0], sizes = [64, 16], strides = [1, 1]} : vector<512x16xf32> to vector<64x16xf32>
    %c0_29 = arith.constant 0 : index
    %c112 = arith.constant 112 : index
    %63 = vector.load %arg9[%c0_29, %c112] : memref<64x128xf32, #tpu.memory_space<vmem>>, vector<64x16xf32>
    tpu.vector_store %arg9[%c0_29, %c112], %62 {strides = array<i32>} : memref<64x128xf32, #tpu.memory_space<vmem>>, vector<64x16xf32>,
    %c0_30 = arith.constant 0 : index
    %c0_31 = arith.constant 0 : index
    %64 = vector.load %arg9[%c0_30, %c0_31] : memref<64x128xf32, #tpu.memory_space<vmem>>, vector<64x128xf32>
    %65 = tpu.iota {dimensions = array<i32: 0>} : vector<64x128xi32>
    %c63_i32 = arith.constant 63 : i32
    %66 = tpu.dynamic_rotate %64 by %c63_i32 dim 0 : vector<64x128xf32>, i32 -> vector<64x128xf32>
    %c1_i32_32 = arith.constant 1 : i32
    %67 = tpu.dynamic_rotate %64 by %c1_i32_32 dim 0 : vector<64x128xf32>, i32 -> vector<64x128xf32>
    %c1_i32_33 = arith.constant 1 : i32
    %68 = vector.broadcast %c1_i32_33 : i32 to vector<64x128xi32>
    %69 = arith.andi %65, %68 : vector<64x128xi32>
    %c0_i32 = arith.constant 0 : i32
    %70 = vector.broadcast %c0_i32 : i32 to vector<64x128xi32>
    %71 = arith.cmpi eq, %69, %70 : vector<64x128xi32>
    %72 = arith.select %71, %66, %67 : vector<64x128xi1>, vector<64x128xf32>
    %c2_i32_34 = arith.constant 2 : i32
    %73 = vector.broadcast %c2_i32_34 : i32 to vector<64x128xi32>
    %74 = arith.andi %65, %73 : vector<64x128xi32>
    %c0_i32_35 = arith.constant 0 : i32
    %75 = vector.broadcast %c0_i32_35 : i32 to vector<64x128xi32>
    %76 = arith.cmpi eq, %74, %75 : vector<64x128xi32>
    %77 = arith.xori %76, %71 : vector<64x128xi1>
    %cst_36 = arith.constant dense<true> : vector<64x128xi1>
    %78 = arith.xori %77, %cst_36 : vector<64x128xi1>
    %79 = arith.minimumf %64, %72 : vector<64x128xf32>
    %80 = arith.maximumf %64, %72 : vector<64x128xf32>
    %81 = arith.select %78, %79, %80 : vector<64x128xi1>, vector<64x128xf32>
    %c62_i32 = arith.constant 62 : i32
    %82 = tpu.dynamic_rotate %81 by %c62_i32 dim 0 : vector<64x128xf32>, i32 -> vector<64x128xf32>
    %c2_i32_37 = arith.constant 2 : i32
    %83 = tpu.dynamic_rotate %81 by %c2_i32_37 dim 0 : vector<64x128xf32>, i32 -> vector<64x128xf32>
    %c2_i32_38 = arith.constant 2 : i32
    %84 = vector.broadcast %c2_i32_38 : i32 to vector<64x128xi32>
    %85 = arith.andi %65, %84 : vector<64x128xi32>
    %c0_i32_39 = arith.constant 0 : i32
    %86 = vector.broadcast %c0_i32_39 : i32 to vector<64x128xi32>
    %87 = arith.cmpi eq, %85, %86 : vector<64x128xi32>
    %88 = arith.select %87, %82, %83 : vector<64x128xi1>, vector<64x128xf32>
    %c4_i32_40 = arith.constant 4 : i32
    %89 = vector.broadcast %c4_i32_40 : i32 to vector<64x128xi32>
    %90 = arith.andi %65, %89 : vector<64x128xi32>
    %c0_i32_41 = arith.constant 0 : i32
    %91 = vector.broadcast %c0_i32_41 : i32 to vector<64x128xi32>
    %92 = arith.cmpi eq, %90, %91 : vector<64x128xi32>
    %93 = arith.xori %92, %87 : vector<64x128xi1>
    %cst_42 = arith.constant dense<true> : vector<64x128xi1>
    %94 = arith.xori %93, %cst_42 : vector<64x128xi1>
    %95 = arith.minimumf %81, %88 : vector<64x128xf32>
    %96 = arith.maximumf %81, %88 : vector<64x128xf32>
    %97 = arith.select %94, %95, %96 : vector<64x128xi1>, vector<64x128xf32>
    %c63_i32_43 = arith.constant 63 : i32
    %98 = tpu.dynamic_rotate %97 by %c63_i32_43 dim 0 : vector<64x128xf32>, i32 -> vector<64x128xf32>
    %c1_i32_44 = arith.constant 1 : i32
    %99 = tpu.dynamic_rotate %97 by %c1_i32_44 dim 0 : vector<64x128xf32>, i32 -> vector<64x128xf32>
    %c1_i32_45 = arith.constant 1 : i32
    %100 = vector.broadcast %c1_i32_45 : i32 to vector<64x128xi32>
    %101 = arith.andi %65, %100 : vector<64x128xi32>
    %c0_i32_46 = arith.constant 0 : i32
    %102 = vector.broadcast %c0_i32_46 : i32 to vector<64x128xi32>
    %103 = arith.cmpi eq, %101, %102 : vector<64x128xi32>
    %104 = arith.select %103, %98, %99 : vector<64x128xi1>, vector<64x128xf32>
    %c4_i32_47 = arith.constant 4 : i32
    %105 = vector.broadcast %c4_i32_47 : i32 to vector<64x128xi32>
    %106 = arith.andi %65, %105 : vector<64x128xi32>
    %c0_i32_48 = arith.constant 0 : i32
    %107 = vector.broadcast %c0_i32_48 : i32 to vector<64x128xi32>
    %108 = arith.cmpi eq, %106, %107 : vector<64x128xi32>
    %109 = arith.xori %108, %103 : vector<64x128xi1>
    %cst_49 = arith.constant dense<true> : vector<64x128xi1>
    %110 = arith.xori %109, %cst_49 : vector<64x128xi1>
    %111 = arith.minimumf %97, %104 : vector<64x128xf32>
    %112 = arith.maximumf %97, %104 : vector<64x128xf32>
    %113 = arith.select %110, %111, %112 : vector<64x128xi1>, vector<64x128xf32>
    %c60_i32 = arith.constant 60 : i32
    %114 = tpu.dynamic_rotate %113 by %c60_i32 dim 0 : vector<64x128xf32>, i32 -> vector<64x128xf32>
    %c4_i32_50 = arith.constant 4 : i32
    %115 = tpu.dynamic_rotate %113 by %c4_i32_50 dim 0 : vector<64x128xf32>, i32 -> vector<64x128xf32>
    %c4_i32_51 = arith.constant 4 : i32
    %116 = vector.broadcast %c4_i32_51 : i32 to vector<64x128xi32>
    %117 = arith.andi %65, %116 : vector<64x128xi32>
    %c0_i32_52 = arith.constant 0 : i32
    %118 = vector.broadcast %c0_i32_52 : i32 to vector<64x128xi32>
    %119 = arith.cmpi eq, %117, %118 : vector<64x128xi32>
    %120 = arith.select %119, %114, %115 : vector<64x128xi1>, vector<64x128xf32>
    %c8_i32 = arith.constant 8 : i32
    %121 = vector.broadcast %c8_i32 : i32 to vector<64x128xi32>
    %122 = arith.andi %65, %121 : vector<64x128xi32>
    %c0_i32_53 = arith.constant 0 : i32
    %123 = vector.broadcast %c0_i32_53 : i32 to vector<64x128xi32>
    %124 = arith.cmpi eq, %122, %123 : vector<64x128xi32>
    %125 = arith.xori %124, %119 : vector<64x128xi1>
    %cst_54 = arith.constant dense<true> : vector<64x128xi1>
    %126 = arith.xori %125, %cst_54 : vector<64x128xi1>
    %127 = arith.minimumf %113, %120 : vector<64x128xf32>
    %128 = arith.maximumf %113, %120 : vector<64x128xf32>
    %129 = arith.select %126, %127, %128 : vector<64x128xi1>, vector<64x128xf32>
    %c62_i32_55 = arith.constant 62 : i32
    %130 = tpu.dynamic_rotate %129 by %c62_i32_55 dim 0 : vector<64x128xf32>, i32 -> vector<64x128xf32>
    %c2_i32_56 = arith.constant 2 : i32
    %131 = tpu.dynamic_rotate %129 by %c2_i32_56 dim 0 : vector<64x128xf32>, i32 -> vector<64x128xf32>
    %c2_i32_57 = arith.constant 2 : i32
    %132 = vector.broadcast %c2_i32_57 : i32 to vector<64x128xi32>
    %133 = arith.andi %65, %132 : vector<64x128xi32>
    %c0_i32_58 = arith.constant 0 : i32
    %134 = vector.broadcast %c0_i32_58 : i32 to vector<64x128xi32>
    %135 = arith.cmpi eq, %133, %134 : vector<64x128xi32>
    %136 = arith.select %135, %130, %131 : vector<64x128xi1>, vector<64x128xf32>
    %c8_i32_59 = arith.constant 8 : i32
    %137 = vector.broadcast %c8_i32_59 : i32 to vector<64x128xi32>
    %138 = arith.andi %65, %137 : vector<64x128xi32>
    %c0_i32_60 = arith.constant 0 : i32
    %139 = vector.broadcast %c0_i32_60 : i32 to vector<64x128xi32>
    %140 = arith.cmpi eq, %138, %139 : vector<64x128xi32>
    %141 = arith.xori %140, %135 : vector<64x128xi1>
    %cst_61 = arith.constant dense<true> : vector<64x128xi1>
    %142 = arith.xori %141, %cst_61 : vector<64x128xi1>
    %143 = arith.minimumf %129, %136 : vector<64x128xf32>
    %144 = arith.maximumf %129, %136 : vector<64x128xf32>
    %145 = arith.select %142, %143, %144 : vector<64x128xi1>, vector<64x128xf32>
    %c63_i32_62 = arith.constant 63 : i32
    %146 = tpu.dynamic_rotate %145 by %c63_i32_62 dim 0 : vector<64x128xf32>, i32 -> vector<64x128xf32>
    %c1_i32_63 = arith.constant 1 : i32
    %147 = tpu.dynamic_rotate %145 by %c1_i32_63 dim 0 : vector<64x128xf32>, i32 -> vector<64x128xf32>
    %c1_i32_64 = arith.constant 1 : i32
    %148 = vector.broadcast %c1_i32_64 : i32 to vector<64x128xi32>
    %149 = arith.andi %65, %148 : vector<64x128xi32>
    %c0_i32_65 = arith.constant 0 : i32
    %150 = vector.broadcast %c0_i32_65 : i32 to vector<64x128xi32>
    %151 = arith.cmpi eq, %149, %150 : vector<64x128xi32>
    %152 = arith.select %151, %146, %147 : vector<64x128xi1>, vector<64x128xf32>
    %c8_i32_66 = arith.constant 8 : i32
    %153 = vector.broadcast %c8_i32_66 : i32 to vector<64x128xi32>
    %154 = arith.andi %65, %153 : vector<64x128xi32>
    %c0_i32_67 = arith.constant 0 : i32
    %155 = vector.broadcast %c0_i32_67 : i32 to vector<64x128xi32>
    %156 = arith.cmpi eq, %154, %155 : vector<64x128xi32>
    %157 = arith.xori %156, %151 : vector<64x128xi1>
    %cst_68 = arith.constant dense<true> : vector<64x128xi1>
    %158 = arith.xori %157, %cst_68 : vector<64x128xi1>
    %159 = arith.minimumf %145, %152 : vector<64x128xf32>
    %160 = arith.maximumf %145, %152 : vector<64x128xf32>
    %161 = arith.select %158, %159, %160 : vector<64x128xi1>, vector<64x128xf32>
    %c56_i32 = arith.constant 56 : i32
    %162 = tpu.dynamic_rotate %161 by %c56_i32 dim 0 : vector<64x128xf32>, i32 -> vector<64x128xf32>
    %c8_i32_69 = arith.constant 8 : i32
    %163 = tpu.dynamic_rotate %161 by %c8_i32_69 dim 0 : vector<64x128xf32>, i32 -> vector<64x128xf32>
    %c8_i32_70 = arith.constant 8 : i32
    %164 = vector.broadcast %c8_i32_70 : i32 to vector<64x128xi32>
    %165 = arith.andi %65, %164 : vector<64x128xi32>
    %c0_i32_71 = arith.constant 0 : i32
    %166 = vector.broadcast %c0_i32_71 : i32 to vector<64x128xi32>
    %167 = arith.cmpi eq, %165, %166 : vector<64x128xi32>
    %168 = arith.select %167, %162, %163 : vector<64x128xi1>, vector<64x128xf32>
    %c16_i32 = arith.constant 16 : i32
    %169 = vector.broadcast %c16_i32 : i32 to vector<64x128xi32>
    %170 = arith.andi %65, %169 : vector<64x128xi32>
    %c0_i32_72 = arith.constant 0 : i32
    %171 = vector.broadcast %c0_i32_72 : i32 to vector<64x128xi32>
    %172 = arith.cmpi eq, %170, %171 : vector<64x128xi32>
    %173 = arith.xori %172, %167 : vector<64x128xi1>
    %cst_73 = arith.constant dense<true> : vector<64x128xi1>
    %174 = arith.xori %173, %cst_73 : vector<64x128xi1>
    %175 = arith.minimumf %161, %168 : vector<64x128xf32>
    %176 = arith.maximumf %161, %168 : vector<64x128xf32>
    %177 = arith.select %174, %175, %176 : vector<64x128xi1>, vector<64x128xf32>
    %c60_i32_74 = arith.constant 60 : i32
    %178 = tpu.dynamic_rotate %177 by %c60_i32_74 dim 0 : vector<64x128xf32>, i32 -> vector<64x128xf32>
    %c4_i32_75 = arith.constant 4 : i32
    %179 = tpu.dynamic_rotate %177 by %c4_i32_75 dim 0 : vector<64x128xf32>, i32 -> vector<64x128xf32>
    %c4_i32_76 = arith.constant 4 : i32
    %180 = vector.broadcast %c4_i32_76 : i32 to vector<64x128xi32>
    %181 = arith.andi %65, %180 : vector<64x128xi32>
    %c0_i32_77 = arith.constant 0 : i32
    %182 = vector.broadcast %c0_i32_77 : i32 to vector<64x128xi32>
    %183 = arith.cmpi eq, %181, %182 : vector<64x128xi32>
    %184 = arith.select %183, %178, %179 : vector<64x128xi1>, vector<64x128xf32>
    %c16_i32_78 = arith.constant 16 : i32
    %185 = vector.broadcast %c16_i32_78 : i32 to vector<64x128xi32>
    %186 = arith.andi %65, %185 : vector<64x128xi32>
    %c0_i32_79 = arith.constant 0 : i32
    %187 = vector.broadcast %c0_i32_79 : i32 to vector<64x128xi32>
    %188 = arith.cmpi eq, %186, %187 : vector<64x128xi32>
    %189 = arith.xori %188, %183 : vector<64x128xi1>
    %cst_80 = arith.constant dense<true> : vector<64x128xi1>
    %190 = arith.xori %189, %cst_80 : vector<64x128xi1>
    %191 = arith.minimumf %177, %184 : vector<64x128xf32>
    %192 = arith.maximumf %177, %184 : vector<64x128xf32>
    %193 = arith.select %190, %191, %192 : vector<64x128xi1>, vector<64x128xf32>
    %c62_i32_81 = arith.constant 62 : i32
    %194 = tpu.dynamic_rotate %193 by %c62_i32_81 dim 0 : vector<64x128xf32>, i32 -> vector<64x128xf32>
    %c2_i32_82 = arith.constant 2 : i32
    %195 = tpu.dynamic_rotate %193 by %c2_i32_82 dim 0 : vector<64x128xf32>, i32 -> vector<64x128xf32>
    %c2_i32_83 = arith.constant 2 : i32
    %196 = vector.broadcast %c2_i32_83 : i32 to vector<64x128xi32>
    %197 = arith.andi %65, %196 : vector<64x128xi32>
    %c0_i32_84 = arith.constant 0 : i32
    %198 = vector.broadcast %c0_i32_84 : i32 to vector<64x128xi32>
    %199 = arith.cmpi eq, %197, %198 : vector<64x128xi32>
    %200 = arith.select %199, %194, %195 : vector<64x128xi1>, vector<64x128xf32>
    %c16_i32_85 = arith.constant 16 : i32
    %201 = vector.broadcast %c16_i32_85 : i32 to vector<64x128xi32>
    %202 = arith.andi %65, %201 : vector<64x128xi32>
    %c0_i32_86 = arith.constant 0 : i32
    %203 = vector.broadcast %c0_i32_86 : i32 to vector<64x128xi32>
    %204 = arith.cmpi eq, %202, %203 : vector<64x128xi32>
    %205 = arith.xori %204, %199 : vector<64x128xi1>
    %cst_87 = arith.constant dense<true> : vector<64x128xi1>
    %206 = arith.xori %205, %cst_87 : vector<64x128xi1>
    %207 = arith.minimumf %193, %200 : vector<64x128xf32>
    %208 = arith.maximumf %193, %200 : vector<64x128xf32>
    %209 = arith.select %206, %207, %208 : vector<64x128xi1>, vector<64x128xf32>
    %c63_i32_88 = arith.constant 63 : i32
    %210 = tpu.dynamic_rotate %209 by %c63_i32_88 dim 0 : vector<64x128xf32>, i32 -> vector<64x128xf32>
    %c1_i32_89 = arith.constant 1 : i32
    %211 = tpu.dynamic_rotate %209 by %c1_i32_89 dim 0 : vector<64x128xf32>, i32 -> vector<64x128xf32>
    %c1_i32_90 = arith.constant 1 : i32
    %212 = vector.broadcast %c1_i32_90 : i32 to vector<64x128xi32>
    %213 = arith.andi %65, %212 : vector<64x128xi32>
    %c0_i32_91 = arith.constant 0 : i32
    %214 = vector.broadcast %c0_i32_91 : i32 to vector<64x128xi32>
    %215 = arith.cmpi eq, %213, %214 : vector<64x128xi32>
    %216 = arith.select %215, %210, %211 : vector<64x128xi1>, vector<64x128xf32>
    %c16_i32_92 = arith.constant 16 : i32
    %217 = vector.broadcast %c16_i32_92 : i32 to vector<64x128xi32>
    %218 = arith.andi %65, %217 : vector<64x128xi32>
    %c0_i32_93 = arith.constant 0 : i32
    %219 = vector.broadcast %c0_i32_93 : i32 to vector<64x128xi32>
    %220 = arith.cmpi eq, %218, %219 : vector<64x128xi32>
    %221 = arith.xori %220, %215 : vector<64x128xi1>
    %cst_94 = arith.constant dense<true> : vector<64x128xi1>
    %222 = arith.xori %221, %cst_94 : vector<64x128xi1>
    %223 = arith.minimumf %209, %216 : vector<64x128xf32>
    %224 = arith.maximumf %209, %216 : vector<64x128xf32>
    %225 = arith.select %222, %223, %224 : vector<64x128xi1>, vector<64x128xf32>
    %c48_i32 = arith.constant 48 : i32
    %226 = tpu.dynamic_rotate %225 by %c48_i32 dim 0 : vector<64x128xf32>, i32 -> vector<64x128xf32>
    %c16_i32_95 = arith.constant 16 : i32
    %227 = tpu.dynamic_rotate %225 by %c16_i32_95 dim 0 : vector<64x128xf32>, i32 -> vector<64x128xf32>
    %c16_i32_96 = arith.constant 16 : i32
    %228 = vector.broadcast %c16_i32_96 : i32 to vector<64x128xi32>
    %229 = arith.andi %65, %228 : vector<64x128xi32>
    %c0_i32_97 = arith.constant 0 : i32
    %230 = vector.broadcast %c0_i32_97 : i32 to vector<64x128xi32>
    %231 = arith.cmpi eq, %229, %230 : vector<64x128xi32>
    %232 = arith.select %231, %226, %227 : vector<64x128xi1>, vector<64x128xf32>
    %c32_i32 = arith.constant 32 : i32
    %233 = vector.broadcast %c32_i32 : i32 to vector<64x128xi32>
    %234 = arith.andi %65, %233 : vector<64x128xi32>
    %c0_i32_98 = arith.constant 0 : i32
    %235 = vector.broadcast %c0_i32_98 : i32 to vector<64x128xi32>
    %236 = arith.cmpi eq, %234, %235 : vector<64x128xi32>
    %237 = arith.xori %236, %231 : vector<64x128xi1>
    %cst_99 = arith.constant dense<true> : vector<64x128xi1>
    %238 = arith.xori %237, %cst_99 : vector<64x128xi1>
    %239 = arith.minimumf %225, %232 : vector<64x128xf32>
    %240 = arith.maximumf %225, %232 : vector<64x128xf32>
    %241 = arith.select %238, %239, %240 : vector<64x128xi1>, vector<64x128xf32>
    %c56_i32_100 = arith.constant 56 : i32
    %242 = tpu.dynamic_rotate %241 by %c56_i32_100 dim 0 : vector<64x128xf32>, i32 -> vector<64x128xf32>
    %c8_i32_101 = arith.constant 8 : i32
    %243 = tpu.dynamic_rotate %241 by %c8_i32_101 dim 0 : vector<64x128xf32>, i32 -> vector<64x128xf32>
    %c8_i32_102 = arith.constant 8 : i32
    %244 = vector.broadcast %c8_i32_102 : i32 to vector<64x128xi32>
    %245 = arith.andi %65, %244 : vector<64x128xi32>
    %c0_i32_103 = arith.constant 0 : i32
    %246 = vector.broadcast %c0_i32_103 : i32 to vector<64x128xi32>
    %247 = arith.cmpi eq, %245, %246 : vector<64x128xi32>
    %248 = arith.select %247, %242, %243 : vector<64x128xi1>, vector<64x128xf32>
    %c32_i32_104 = arith.constant 32 : i32
    %249 = vector.broadcast %c32_i32_104 : i32 to vector<64x128xi32>
    %250 = arith.andi %65, %249 : vector<64x128xi32>
    %c0_i32_105 = arith.constant 0 : i32
    %251 = vector.broadcast %c0_i32_105 : i32 to vector<64x128xi32>
    %252 = arith.cmpi eq, %250, %251 : vector<64x128xi32>
    %253 = arith.xori %252, %247 : vector<64x128xi1>
    %cst_106 = arith.constant dense<true> : vector<64x128xi1>
    %254 = arith.xori %253, %cst_106 : vector<64x128xi1>
    %255 = arith.minimumf %241, %248 : vector<64x128xf32>
    %256 = arith.maximumf %241, %248 : vector<64x128xf32>
    %257 = arith.select %254, %255, %256 : vector<64x128xi1>, vector<64x128xf32>
    %c60_i32_107 = arith.constant 60 : i32
    %258 = tpu.dynamic_rotate %257 by %c60_i32_107 dim 0 : vector<64x128xf32>, i32 -> vector<64x128xf32>
    %c4_i32_108 = arith.constant 4 : i32
    %259 = tpu.dynamic_rotate %257 by %c4_i32_108 dim 0 : vector<64x128xf32>, i32 -> vector<64x128xf32>
    %c4_i32_109 = arith.constant 4 : i32
    %260 = vector.broadcast %c4_i32_109 : i32 to vector<64x128xi32>
    %261 = arith.andi %65, %260 : vector<64x128xi32>
    %c0_i32_110 = arith.constant 0 : i32
    %262 = vector.broadcast %c0_i32_110 : i32 to vector<64x128xi32>
    %263 = arith.cmpi eq, %261, %262 : vector<64x128xi32>
    %264 = arith.select %263, %258, %259 : vector<64x128xi1>, vector<64x128xf32>
    %c32_i32_111 = arith.constant 32 : i32
    %265 = vector.broadcast %c32_i32_111 : i32 to vector<64x128xi32>
    %266 = arith.andi %65, %265 : vector<64x128xi32>
    %c0_i32_112 = arith.constant 0 : i32
    %267 = vector.broadcast %c0_i32_112 : i32 to vector<64x128xi32>
    %268 = arith.cmpi eq, %266, %267 : vector<64x128xi32>
    %269 = arith.xori %268, %263 : vector<64x128xi1>
    %cst_113 = arith.constant dense<true> : vector<64x128xi1>
    %270 = arith.xori %269, %cst_113 : vector<64x128xi1>
    %271 = arith.minimumf %257, %264 : vector<64x128xf32>
    %272 = arith.maximumf %257, %264 : vector<64x128xf32>
    %273 = arith.select %270, %271, %272 : vector<64x128xi1>, vector<64x128xf32>
    %c62_i32_114 = arith.constant 62 : i32
    %274 = tpu.dynamic_rotate %273 by %c62_i32_114 dim 0 : vector<64x128xf32>, i32 -> vector<64x128xf32>
    %c2_i32_115 = arith.constant 2 : i32
    %275 = tpu.dynamic_rotate %273 by %c2_i32_115 dim 0 : vector<64x128xf32>, i32 -> vector<64x128xf32>
    %c2_i32_116 = arith.constant 2 : i32
    %276 = vector.broadcast %c2_i32_116 : i32 to vector<64x128xi32>
    %277 = arith.andi %65, %276 : vector<64x128xi32>
    %c0_i32_117 = arith.constant 0 : i32
    %278 = vector.broadcast %c0_i32_117 : i32 to vector<64x128xi32>
    %279 = arith.cmpi eq, %277, %278 : vector<64x128xi32>
    %280 = arith.select %279, %274, %275 : vector<64x128xi1>, vector<64x128xf32>
    %c32_i32_118 = arith.constant 32 : i32
    %281 = vector.broadcast %c32_i32_118 : i32 to vector<64x128xi32>
    %282 = arith.andi %65, %281 : vector<64x128xi32>
    %c0_i32_119 = arith.constant 0 : i32
    %283 = vector.broadcast %c0_i32_119 : i32 to vector<64x128xi32>
    %284 = arith.cmpi eq, %282, %283 : vector<64x128xi32>
    %285 = arith.xori %284, %279 : vector<64x128xi1>
    %cst_120 = arith.constant dense<true> : vector<64x128xi1>
    %286 = arith.xori %285, %cst_120 : vector<64x128xi1>
    %287 = arith.minimumf %273, %280 : vector<64x128xf32>
    %288 = arith.maximumf %273, %280 : vector<64x128xf32>
    %289 = arith.select %286, %287, %288 : vector<64x128xi1>, vector<64x128xf32>
    %c63_i32_121 = arith.constant 63 : i32
    %290 = tpu.dynamic_rotate %289 by %c63_i32_121 dim 0 : vector<64x128xf32>, i32 -> vector<64x128xf32>
    %c1_i32_122 = arith.constant 1 : i32
    %291 = tpu.dynamic_rotate %289 by %c1_i32_122 dim 0 : vector<64x128xf32>, i32 -> vector<64x128xf32>
    %c1_i32_123 = arith.constant 1 : i32
    %292 = vector.broadcast %c1_i32_123 : i32 to vector<64x128xi32>
    %293 = arith.andi %65, %292 : vector<64x128xi32>
    %c0_i32_124 = arith.constant 0 : i32
    %294 = vector.broadcast %c0_i32_124 : i32 to vector<64x128xi32>
    %295 = arith.cmpi eq, %293, %294 : vector<64x128xi32>
    %296 = arith.select %295, %290, %291 : vector<64x128xi1>, vector<64x128xf32>
    %c32_i32_125 = arith.constant 32 : i32
    %297 = vector.broadcast %c32_i32_125 : i32 to vector<64x128xi32>
    %298 = arith.andi %65, %297 : vector<64x128xi32>
    %c0_i32_126 = arith.constant 0 : i32
    %299 = vector.broadcast %c0_i32_126 : i32 to vector<64x128xi32>
    %300 = arith.cmpi eq, %298, %299 : vector<64x128xi32>
    %301 = arith.xori %300, %295 : vector<64x128xi1>
    %cst_127 = arith.constant dense<true> : vector<64x128xi1>
    %302 = arith.xori %301, %cst_127 : vector<64x128xi1>
    %303 = arith.minimumf %289, %296 : vector<64x128xf32>
    %304 = arith.maximumf %289, %296 : vector<64x128xf32>
    %305 = arith.select %302, %303, %304 : vector<64x128xi1>, vector<64x128xf32>
    %c32_i32_128 = arith.constant 32 : i32
    %306 = tpu.dynamic_rotate %305 by %c32_i32_128 dim 0 : vector<64x128xf32>, i32 -> vector<64x128xf32>
    %c32_i32_129 = arith.constant 32 : i32
    %307 = tpu.dynamic_rotate %305 by %c32_i32_129 dim 0 : vector<64x128xf32>, i32 -> vector<64x128xf32>
    %c32_i32_130 = arith.constant 32 : i32
    %308 = vector.broadcast %c32_i32_130 : i32 to vector<64x128xi32>
    %309 = arith.andi %65, %308 : vector<64x128xi32>
    %c0_i32_131 = arith.constant 0 : i32
    %310 = vector.broadcast %c0_i32_131 : i32 to vector<64x128xi32>
    %311 = arith.cmpi eq, %309, %310 : vector<64x128xi32>
    %312 = arith.select %311, %306, %307 : vector<64x128xi1>, vector<64x128xf32>
    %c64_i32 = arith.constant 64 : i32
    %313 = vector.broadcast %c64_i32 : i32 to vector<64x128xi32>
    %314 = arith.andi %65, %313 : vector<64x128xi32>
    %c0_i32_132 = arith.constant 0 : i32
    %315 = vector.broadcast %c0_i32_132 : i32 to vector<64x128xi32>
    %316 = arith.cmpi eq, %314, %315 : vector<64x128xi32>
    %317 = arith.xori %316, %311 : vector<64x128xi1>
    %cst_133 = arith.constant dense<true> : vector<64x128xi1>
    %318 = arith.xori %317, %cst_133 : vector<64x128xi1>
    %319 = arith.minimumf %305, %312 : vector<64x128xf32>
    %320 = arith.maximumf %305, %312 : vector<64x128xf32>
    %321 = arith.select %318, %319, %320 : vector<64x128xi1>, vector<64x128xf32>
    %c48_i32_134 = arith.constant 48 : i32
    %322 = tpu.dynamic_rotate %321 by %c48_i32_134 dim 0 : vector<64x128xf32>, i32 -> vector<64x128xf32>
    %c16_i32_135 = arith.constant 16 : i32
    %323 = tpu.dynamic_rotate %321 by %c16_i32_135 dim 0 : vector<64x128xf32>, i32 -> vector<64x128xf32>
    %c16_i32_136 = arith.constant 16 : i32
    %324 = vector.broadcast %c16_i32_136 : i32 to vector<64x128xi32>
    %325 = arith.andi %65, %324 : vector<64x128xi32>
    %c0_i32_137 = arith.constant 0 : i32
    %326 = vector.broadcast %c0_i32_137 : i32 to vector<64x128xi32>
    %327 = arith.cmpi eq, %325, %326 : vector<64x128xi32>
    %328 = arith.select %327, %322, %323 : vector<64x128xi1>, vector<64x128xf32>
    %c64_i32_138 = arith.constant 64 : i32
    %329 = vector.broadcast %c64_i32_138 : i32 to vector<64x128xi32>
    %330 = arith.andi %65, %329 : vector<64x128xi32>
    %c0_i32_139 = arith.constant 0 : i32
    %331 = vector.broadcast %c0_i32_139 : i32 to vector<64x128xi32>
    %332 = arith.cmpi eq, %330, %331 : vector<64x128xi32>
    %333 = arith.xori %332, %327 : vector<64x128xi1>
    %cst_140 = arith.constant dense<true> : vector<64x128xi1>
    %334 = arith.xori %333, %cst_140 : vector<64x128xi1>
    %335 = arith.minimumf %321, %328 : vector<64x128xf32>
    %336 = arith.maximumf %321, %328 : vector<64x128xf32>
    %337 = arith.select %334, %335, %336 : vector<64x128xi1>, vector<64x128xf32>
    %c56_i32_141 = arith.constant 56 : i32
    %338 = tpu.dynamic_rotate %337 by %c56_i32_141 dim 0 : vector<64x128xf32>, i32 -> vector<64x128xf32>
    %c8_i32_142 = arith.constant 8 : i32
    %339 = tpu.dynamic_rotate %337 by %c8_i32_142 dim 0 : vector<64x128xf32>, i32 -> vector<64x128xf32>
    %c8_i32_143 = arith.constant 8 : i32
    %340 = vector.broadcast %c8_i32_143 : i32 to vector<64x128xi32>
    %341 = arith.andi %65, %340 : vector<64x128xi32>
    %c0_i32_144 = arith.constant 0 : i32
    %342 = vector.broadcast %c0_i32_144 : i32 to vector<64x128xi32>
    %343 = arith.cmpi eq, %341, %342 : vector<64x128xi32>
    %344 = arith.select %343, %338, %339 : vector<64x128xi1>, vector<64x128xf32>
    %c64_i32_145 = arith.constant 64 : i32
    %345 = vector.broadcast %c64_i32_145 : i32 to vector<64x128xi32>
    %346 = arith.andi %65, %345 : vector<64x128xi32>
    %c0_i32_146 = arith.constant 0 : i32
    %347 = vector.broadcast %c0_i32_146 : i32 to vector<64x128xi32>
    %348 = arith.cmpi eq, %346, %347 : vector<64x128xi32>
    %349 = arith.xori %348, %343 : vector<64x128xi1>
    %cst_147 = arith.constant dense<true> : vector<64x128xi1>
    %350 = arith.xori %349, %cst_147 : vector<64x128xi1>
    %351 = arith.minimumf %337, %344 : vector<64x128xf32>
    %352 = arith.maximumf %337, %344 : vector<64x128xf32>
    %353 = arith.select %350, %351, %352 : vector<64x128xi1>, vector<64x128xf32>
    %c60_i32_148 = arith.constant 60 : i32
    %354 = tpu.dynamic_rotate %353 by %c60_i32_148 dim 0 : vector<64x128xf32>, i32 -> vector<64x128xf32>
    %c4_i32_149 = arith.constant 4 : i32
    %355 = tpu.dynamic_rotate %353 by %c4_i32_149 dim 0 : vector<64x128xf32>, i32 -> vector<64x128xf32>
    %c4_i32_150 = arith.constant 4 : i32
    %356 = vector.broadcast %c4_i32_150 : i32 to vector<64x128xi32>
    %357 = arith.andi %65, %356 : vector<64x128xi32>
    %c0_i32_151 = arith.constant 0 : i32
    %358 = vector.broadcast %c0_i32_151 : i32 to vector<64x128xi32>
    %359 = arith.cmpi eq, %357, %358 : vector<64x128xi32>
    %360 = arith.select %359, %354, %355 : vector<64x128xi1>, vector<64x128xf32>
    %c64_i32_152 = arith.constant 64 : i32
    %361 = vector.broadcast %c64_i32_152 : i32 to vector<64x128xi32>
    %362 = arith.andi %65, %361 : vector<64x128xi32>
    %c0_i32_153 = arith.constant 0 : i32
    %363 = vector.broadcast %c0_i32_153 : i32 to vector<64x128xi32>
    %364 = arith.cmpi eq, %362, %363 : vector<64x128xi32>
    %365 = arith.xori %364, %359 : vector<64x128xi1>
    %cst_154 = arith.constant dense<true> : vector<64x128xi1>
    %366 = arith.xori %365, %cst_154 : vector<64x128xi1>
    %367 = arith.minimumf %353, %360 : vector<64x128xf32>
    %368 = arith.maximumf %353, %360 : vector<64x128xf32>
    %369 = arith.select %366, %367, %368 : vector<64x128xi1>, vector<64x128xf32>
    %c62_i32_155 = arith.constant 62 : i32
    %370 = tpu.dynamic_rotate %369 by %c62_i32_155 dim 0 : vector<64x128xf32>, i32 -> vector<64x128xf32>
    %c2_i32_156 = arith.constant 2 : i32
    %371 = tpu.dynamic_rotate %369 by %c2_i32_156 dim 0 : vector<64x128xf32>, i32 -> vector<64x128xf32>
    %c2_i32_157 = arith.constant 2 : i32
    %372 = vector.broadcast %c2_i32_157 : i32 to vector<64x128xi32>
    %373 = arith.andi %65, %372 : vector<64x128xi32>
    %c0_i32_158 = arith.constant 0 : i32
    %374 = vector.broadcast %c0_i32_158 : i32 to vector<64x128xi32>
    %375 = arith.cmpi eq, %373, %374 : vector<64x128xi32>
    %376 = arith.select %375, %370, %371 : vector<64x128xi1>, vector<64x128xf32>
    %c64_i32_159 = arith.constant 64 : i32
    %377 = vector.broadcast %c64_i32_159 : i32 to vector<64x128xi32>
    %378 = arith.andi %65, %377 : vector<64x128xi32>
    %c0_i32_160 = arith.constant 0 : i32
    %379 = vector.broadcast %c0_i32_160 : i32 to vector<64x128xi32>
    %380 = arith.cmpi eq, %378, %379 : vector<64x128xi32>
    %381 = arith.xori %380, %375 : vector<64x128xi1>
    %cst_161 = arith.constant dense<true> : vector<64x128xi1>
    %382 = arith.xori %381, %cst_161 : vector<64x128xi1>
    %383 = arith.minimumf %369, %376 : vector<64x128xf32>
    %384 = arith.maximumf %369, %376 : vector<64x128xf32>
    %385 = arith.select %382, %383, %384 : vector<64x128xi1>, vector<64x128xf32>
    %c63_i32_162 = arith.constant 63 : i32
    %386 = tpu.dynamic_rotate %385 by %c63_i32_162 dim 0 : vector<64x128xf32>, i32 -> vector<64x128xf32>
    %c1_i32_163 = arith.constant 1 : i32
    %387 = tpu.dynamic_rotate %385 by %c1_i32_163 dim 0 : vector<64x128xf32>, i32 -> vector<64x128xf32>
    %c1_i32_164 = arith.constant 1 : i32
    %388 = vector.broadcast %c1_i32_164 : i32 to vector<64x128xi32>
    %389 = arith.andi %65, %388 : vector<64x128xi32>
    %c0_i32_165 = arith.constant 0 : i32
    %390 = vector.broadcast %c0_i32_165 : i32 to vector<64x128xi32>
    %391 = arith.cmpi eq, %389, %390 : vector<64x128xi32>
    %392 = arith.select %391, %386, %387 : vector<64x128xi1>, vector<64x128xf32>
    %c64_i32_166 = arith.constant 64 : i32
    %393 = vector.broadcast %c64_i32_166 : i32 to vector<64x128xi32>
    %394 = arith.andi %65, %393 : vector<64x128xi32>
    %c0_i32_167 = arith.constant 0 : i32
    %395 = vector.broadcast %c0_i32_167 : i32 to vector<64x128xi32>
    %396 = arith.cmpi eq, %394, %395 : vector<64x128xi32>
    %397 = arith.xori %396, %391 : vector<64x128xi1>
    %cst_168 = arith.constant dense<true> : vector<64x128xi1>
    %398 = arith.xori %397, %cst_168 : vector<64x128xi1>
    %399 = arith.minimumf %385, %392 : vector<64x128xf32>
    %400 = arith.maximumf %385, %392 : vector<64x128xf32>
    %401 = arith.select %398, %399, %400 : vector<64x128xi1>, vector<64x128xf32>
    %c0_169 = arith.constant 0 : index
    %c0_170 = arith.constant 0 : index
    %402 = vector.load %arg7[%c0_169, %c0_170] : memref<64x128xf32, #tpu.memory_space<vmem>>, vector<64x128xf32>
    %403 = arith.mulf %401, %402 : vector<64x128xf32>
    %cst_171 = arith.constant dense<0.000000e+00> : vector<128xf32>
    %404 = vector.multi_reduction <add>, %403, %cst_171 [0] : vector<64x128xf32> to vector<128xf32>
    %405 = vector.shape_cast %404 : vector<128xf32> to vector<1x128xf32>
    %c0_172 = arith.constant 0 : index
    %c0_173 = arith.constant 0 : index
    %c0_174 = arith.constant 0 : index
    %406 = vector.load %arg8[%c0_172, %c0_173, %c0_174] : memref<1x1x128xf32, #tpu.memory_space<vmem>>, vector<1x1x128xf32>
    %407 = vector.shape_cast %406 : vector<1x1x128xf32> to vector<1x128xf32>
    %408 = vector.shape_cast %405 : vector<1x128xf32> to vector<1x1x128xf32>
    tpu.vector_store %arg8[%c0_172, %c0_173, %c0_174], %408 {strides = array<i32>} : memref<1x1x128xf32, #tpu.memory_space<vmem>>, vector<1x1x128xf32>,
    return
  }
  func.func @transform_0(%arg0: i32) -> (i32, i32) {
    %c0_i32 = arith.constant 0 : i32
    %c0_i32_0 = arith.constant 0 : i32
    return %arg0, %c0_i32 : i32, i32
  }
  func.func @transform_1(%arg0: i32) -> (i32, i32) {
    %c0_i32 = arith.constant 0 : i32
    %c0_i32_0 = arith.constant 0 : i32
    %c0_i32_1 = arith.constant 0 : i32
    return %c0_i32, %c0_i32_0 : i32, i32
  }
  func.func @transform_2(%arg0: i32) -> (i32, i32) {
    %c0_i32 = arith.constant 0 : i32
    %c0_i32_0 = arith.constant 0 : i32
    %c0_i32_1 = arith.constant 0 : i32
    return %c0_i32, %c0_i32_0 : i32, i32
  }
  func.func @transform_3(%arg0: i32) -> (i32, i32) {
    %c0_i32 = arith.constant 0 : i32
    %c0_i32_0 = arith.constant 0 : i32
    %c0_i32_1 = arith.constant 0 : i32
    return %c0_i32, %c0_i32_0 : i32, i32
  }
  func.func @transform_4(%arg0: i32) -> (i32, i32) {
    %c0_i32 = arith.constant 0 : i32
    %c0_i32_0 = arith.constant 0 : i32
    %c0_i32_1 = arith.constant 0 : i32
    return %c0_i32, %c0_i32_0 : i32, i32
  }
  func.func @transform_5(%arg0: i32) -> (i32, i32) {
    %c0_i32 = arith.constant 0 : i32
    %c0_i32_0 = arith.constant 0 : i32
    %c0_i32_1 = arith.constant 0 : i32
    return %c0_i32, %c0_i32_0 : i32, i32
  }
  func.func @transform_6(%arg0: i32) -> (i32, i32) {
    %c0_i32 = arith.constant 0 : i32
    %c0_i32_0 = arith.constant 0 : i32
    %c0_i32_1 = arith.constant 0 : i32
    return %c0_i32, %c0_i32_0 : i32, i32
  }
  func.func @transform_7(%arg0: i32) -> (i32, i32, i32) {
    %c0_i32 = arith.constant 0 : i32
    %c0_i32_0 = arith.constant 0 : i32
    %c0_i32_1 = arith.constant 0 : i32
    return %arg0, %c0_i32, %c0_i32_0 : i32, i32, i32
  }
}

</mosaic_0001>

<bundles_post_ra>
// kernel: tpu_custom_call.1
= control target key start
LH: loop header
LB: loop body
LE: loop exit
PB: predicated region body
PF: predicated region fallthrough
CT: control target
= control target key end

     0   :  { %vm65_vm0 = vcmask 1043456   ;;  %vm40_vm1 = vcmask 31744   ;;  %s5629_s0 = inlined_call_operand.vmem [shape: f32[64,4], index: 0, kind: input, shape index: {}]   ;;  %s5630_s1 = inlined_call_operand.vmem [shape: f32[4,32], index: 1, kind: input, shape index: {}]   ;;  %s5631_s2 = inlined_call_operand.vmem [shape: f32[4,32], index: 2, kind: input, shape index: {}]   ;;  %s5632_s3 = inlined_call_operand.vmem [shape: f32[1,32], index: 3, kind: input, shape index: {}]   ;;  %s5633_s4 = inlined_call_operand.vmem [shape: f32[32,16], index: 4, kind: input, shape index: {}]   ;;  %s5634_s5 = inlined_call_operand.vmem [shape: f32[1,16], index: 5, kind: input, shape index: {}]   ;;  %s5635_s6 = inlined_call_operand.vmem [shape: f32[64,128], index: 6, kind: input, shape index: {}]   ;;  %s5636_s7 = inlined_call_operand.hbm [shape: f32[1,1,128], index: 7, kind: output, shape index: {}]  }
   0x1   :  { %v35_v0 = vld [vmem:[%s5630_s1] sm:$0xf] }
   0x2   :  { %v27_v1 = vld [vmem:[%s5629_s0] sm:$0xff]  ;;  %2633 = vmatpush.msk.msra.mxu0 %vm65_vm0, %v35_v0 }
   0x3   :  { %v110_v2 = vld [vmem:[%s5631_s2] sm:$0xf]  ;;  %2634 = vmatmul.msk.f32.vlgmr.msra.gmra.mxu0 %vm40_vm1, %v27_v1 }
   0x4   :  { %2642 = vmatpush.msk.msra.mxu1 %vm65_vm0, %v110_v2 }
   0x5   :  { %2643 = vmatmul.msk.f32.vlgmr.msra.gmra.mxu1 %vm40_vm1, %v27_v1 }
   0x6   :  { %12 = vsyncpa [#allocation4], 0  ;;  %v28_v3 = vld [vmem:[%s5629_s0 + $0x8] sm:$0xff]  ;;  %v29_v4 = vld [vmem:[%s5629_s0 + $0x10] sm:$0xff]  ;;  %vm347_vm2 = vcmask 261120   ;;  %vm749_vm3 = vcmask 130048  }
   0x7   :  { %v342_v5 = vld [vmem:[%s5633_s4 + $0x18] sm:$0xff]  ;;  %v341_v6 = vld [vmem:[%s5633_s4 + $0x10] sm:$0xff]  ;;  %v340_v8 = vld [vmem:[%s5633_s4 + $0x8] sm:$0xff]  ;;  %s2766_s29 = smov 32   ;;  %s2767_s30 = smov 80   ;;  %vm790_vm4 = vcmask 261248  }
   0x8   :  { %552 = vmatpush.msrb.mxu0 %v342_v5  ;;  %2715 = vmatpush.msrb.mxu1 %v342_v5  ;;  %v30_v7 = vld [vmem:[%s5629_s0 + $0x18] sm:$0xff]  ;;  %v31_v9 = vld [vmem:[%s5629_s0 + $0x20] sm:$0xff]  ;;  %v32_v10 = vld [vmem:[%s5629_s0 + $0x28] sm:$0xff]  ;;  %s2768_s8 = smov 96   ;;  %s2769_s1 = smov 64   ;;  %vm831_vm5 = vcmask 392448  }
   0x9   :  { %2716 = vmatpush.msra.mxu2 %v342_v5  ;;  %2717 = vmatpush.msra.mxu3 %v342_v5  ;;  %v33_v11 = vld [vmem:[%s5629_s0 + $0x30] sm:$0xff]  ;;  %v34_v12 = vld [vmem:[%s5629_s0 + $0x38] sm:$0xff]  ;;  %v339_v13 = vld [vmem:[%s5633_s4] sm:$0xff]  ;;  %s2764_s4 = smov 16   ;;  %s2770_s9 = smov 112   ;;  %vm872_vm6 = vcmask 523648  }
   0xa   :  { %553 = vmatpush.msrb.mxu0 %v341_v6  ;;  %2718 = vmatpush.msrb.mxu1 %v341_v6  ;;  %v2874_v14 = vld [vmem:[%s5632_s3] ss:$0 sm:$0xff]  ;;  %vm913_vm7 = vcmask 654848   ;;  %vm954_vm8 = vcmask 786048   ;;  %vm995_vm9 = vcmask 917248   ;;  %vm5637_vm10 = vcmask 1048448  }
   0xb   :  { %2635 = vmatmul.msk.f32.gmra.mxu0 %vm40_vm1, %v28_v3  ;;  %2719 = vmatpush.msra.mxu2 %v341_v6  ;;  %s2772_s25 = smov [#allocation3]   ;;  %s2624_s0 = sshll.u32 %s5636_s7, 4  ;;  %s2625_s0 = int_to_ptr.hbm [resolvable:$true] %s2624_s0 }
   0xc   :  { %2720 = vmatpush.msra.mxu3 %v341_v6  ;;  %554 = vmatpush.msrb.mxu0 %v340_v8  ;;  %s2622_s26 = sshll.u32 %s2772_s25, 4  ;;  %s2623_s26 = int_to_ptr.vmem [resolvable:$true] %s2622_s26 }
   0xd   :  { %2644 = vmatmul.msk.f32.gmra.mxu1 %vm40_vm1, %v28_v3  ;;  %2722 = vmatpush.msra.mxu2 %v340_v8 }
   0xe   :  { %2721 = vmatpush.msrb.mxu1 %v340_v8  ;;  %2723 = vmatpush.msra.mxu3 %v340_v8 }
   0xf   :  { %555 = vmatpush.msrb.mxu0 %v339_v13  ;;  %2725 = vmatpush.msra.mxu2 %v339_v13 }
  0x10   :  { %2724 = vmatpush.msrb.mxu1 %v339_v13  ;;  %2726 = vmatpush.msra.mxu3 %v339_v13 }
  0x13   :  { %2636 = vmatmul.msk.f32.gmra.mxu0 %vm40_vm1, %v29_v4 }
  0x15   :  { %2645 = vmatmul.msk.f32.gmra.mxu1 %vm40_vm1, %v29_v4 }
  0x1b   :  { %2637 = vmatmul.msk.f32.gmra.mxu0 %vm40_vm1, %v30_v7 }
  0x1d   :  { %2646 = vmatmul.msk.f32.gmra.mxu1 %vm40_vm1, %v30_v7 }
  0x23   :  { %2638 = vmatmul.msk.f32.gmra.mxu0 %vm40_vm1, %v31_v9 }
  0x25   :  { %2647 = vmatmul.msk.f32.gmra.mxu1 %vm40_vm1, %v31_v9 }
  0x2b   :  { %2639 = vmatmul.msk.f32.gmra.mxu0 %vm40_vm1, %v32_v10 }
  0x2d   :  { %2648 = vmatmul.msk.f32.gmra.mxu1 %vm40_vm1, %v32_v10 }
  0x33   :  { %2640 = vmatmul.msk.f32.gmra.mxu0 %vm40_vm1, %v33_v11 }
  0x35   :  { %2649 = vmatmul.msk.f32.gmra.mxu1 %vm40_vm1, %v33_v11 }
  0x3b   :  { %2641 = vmatmul.msk.f32.gmra.mxu0 %vm40_vm1, %v34_v12 }
  0x3d   :  { %2650 = vmatmul.msk.f32.gmra.mxu1 %vm40_vm1, %v34_v12 }
  0x80   :  { %v86_v15 = vpop.f32.mrf.mxu0 }
  0x81   :  { %v2877_v16 = vadd.f32 %v2874_v14, %v86_v15 }
  0x82   :  { %v2879_v17 = vpop.f32.mrf.mxu1 }
  0x83   :  { %v155_v18 = vadd.f32 %v2879_v17, %v2877_v16  ;;  %v171_v20 = vrot.slane %v2877_v16, 7  ;;  %v195_v31 = vrot.slane %v2877_v16, 6  ;;  %v219_v42 = vrot.slane %v2877_v16, 5 }
  0x84   :  { %v243_v53 = vrot.slane %v2877_v16, 4  ;;  %v267_v0 = vrot.slane %v2877_v16, 3  ;;  %v291_v11 = vrot.slane %v2877_v16, 2 }
  0x85   :  { %v163_v19 = vmax.f32 %v155_v18, 0.0  ;;  %v179_v24 = vadd.f32 %v171_v20, %v2879_v17  ;;  %v203_v39 = vadd.f32 %v195_v31, %v2879_v17  ;;  %v227_v48 = vadd.f32 %v219_v42, %v2879_v17 }
  0x86   :  { %v251_v59 = vadd.f32 %v243_v53, %v2879_v17  ;;  %v275_v7 = vadd.f32 %v267_v0, %v2879_v17  ;;  %v315_v42 = vrot.slane %v2877_v16, 1 }
  0x87   :  { %2651 = vmatmul.msk.f32.vlgmr.msrb.gmra.mxu0 %vm347_vm2, %v163_v19  ;;  %v187_v29 = vmax.f32 %v179_v24, 0.0  ;;  %v211_v41 = vmax.f32 %v203_v39, 0.0  ;;  %v235_v51 = vmax.f32 %v227_v48, 0.0 }
  0x88   :  { %v89_v21 = vpop.f32.mrf.mxu0  ;;  %v259_v62 = vmax.f32 %v251_v59, 0.0  ;;  %v283_v19 = vmax.f32 %v275_v7, 0.0 }
  0x89   :  { %v2886_v22 = vadd.f32 %v2874_v14, %v89_v21 }
  0x8a   :  { %v2888_v23 = vpop.f32.mrf.mxu1 }
  0x8b   :  { %v268_v25 = vrot.slane %v2886_v22, 3  ;;  %v196_v26 = vrot.slane %v2886_v22, 6  ;;  %v220_v27 = vrot.slane %v2886_v22, 5  ;;  %v244_v28 = vrot.slane %v2886_v22, 4 }
  0x8c   :  { %v292_v36 = vrot.slane %v2886_v22, 2  ;;  %v316_v44 = vrot.slane %v2886_v22, 1  ;;  %v172_v7 = vrot.slane %v2886_v22, 7 }
  0x8d   :  { %v276_v30 = vadd.f32 %v268_v25, %v2888_v23  ;;  %v2898_v32 = vadd.f32 %v196_v26, %v2888_v23  ;;  %v2901_v33 = vadd.f32 %v220_v27, %v2888_v23  ;;  %v2904_v34 = vadd.f32 %v244_v28, %v2888_v23 }
  0x8e   :  { %v300_v40 = vadd.f32 %v292_v36, %v2888_v23  ;;  %v324_v50 = vadd.f32 %v316_v44, %v2888_v23 }
  0x8f   :  { %2652 = vmatmul.msk.f32.gmra.mxu0 %vm347_vm2, %v187_v29  ;;  %v284_v35 = vmax.f32 %v276_v30, 0.0 }
  0x90   :  { %v92_v37 = vpop.f32.mrf.mxu0  ;;  %v308_v43 = vmax.f32 %v300_v40, 0.0  ;;  %v332_v56 = vmax.f32 %v324_v50, 0.0  ;;  %v323_v50 = vadd.f32 %v315_v42, %v2879_v17 }
  0x91   :  { %2664 = vmatmul.msk.f32.vlgmr.msrb.gmra.mxu1 %vm347_vm2, %v284_v35  ;;  %v2929_v55 = vadd.f32 %v2874_v14, %v92_v37  ;;  %v299_v35 = vadd.f32 %v291_v11, %v2879_v17  ;;  %v156_v17 = vadd.f32 %v2888_v23, %v2886_v22  ;;  %v180_v22 = vadd.f32 %v172_v7, %v2888_v23 }
  0x92   :  { %v2909_v38 = vpop.f32.mrf.mxu1  ;;  %v331_v53 = vmax.f32 %v323_v50, 0.0 }
  0x93   :  { %v157_v61 = vadd.f32 %v2909_v38, %v2929_v55  ;;  %v173_v3 = vrot.slane %v2929_v55, 7  ;;  %v197_v30 = vrot.slane %v2929_v55, 6  ;;  %v307_v40 = vmax.f32 %v299_v35, 0.0 }
  0x94   :  { %v221_v48 = vrot.slane %v2929_v55, 5 }
  0x95   :  { %v165_v2 = vmax.f32 %v157_v61, 0.0  ;;  %v181_v9 = vadd.f32 %v173_v3, %v2909_v38  ;;  %v205_v37 = vadd.f32 %v197_v30, %v2909_v38  ;;  %v245_v61 = vrot.slane %v2929_v55, 4 }
  0x96   :  { %v229_v16 = vadd.f32 %v221_v48, %v2909_v38  ;;  %v164_v3 = vmax.f32 %v156_v17, 0.0 }
  0x97   :  { %2653 = vmatmul.msk.f32.gmra.mxu0 %vm347_vm2, %v211_v41  ;;  %v189_v28 = vmax.f32 %v181_v9, 0.0  ;;  %v213_v44 = vmax.f32 %v205_v37, 0.0  ;;  %v253_v0 = vadd.f32 %v245_v61, %v2909_v38 }
  0x98   :  { %v95_v45 = vpop.f32.mrf.mxu0  ;;  %v237_v59 = vmax.f32 %v229_v16, 0.0 }
  0x99   :  { %v2917_v46 = vadd.f32 %v2874_v14, %v95_v45  ;;  %2665 = vmatmul.msk.f32.gmra.mxu1 %vm347_vm2, %v308_v43 }
  0x9a   :  { %v2920_v47 = vpop.f32.mrf.mxu1 }
  0x9b   :  { %v158_v49 = vadd.f32 %v2920_v47, %v2917_v46  ;;  %v174_v54 = vrot.slane %v2917_v46, 7  ;;  %v198_v1 = vrot.slane %v2917_v46, 6  ;;  %v222_v24 = vrot.slane %v2917_v46, 5 }
  0x9c   :  { %v246_v43 = vrot.slane %v2917_v46, 4 }
  0x9d   :  { %v166_v52 = vmax.f32 %v158_v49, 0.0  ;;  %v182_v60 = vadd.f32 %v174_v54, %v2920_v47  ;;  %v206_v8 = vadd.f32 %v198_v1, %v2920_v47  ;;  %v230_v36 = vadd.f32 %v222_v24, %v2920_v47 }
  0x9e   :  { %v318_v24 = vrot.slane %v2917_v46, 1 }
  0x9f   :  { %2654 = vmatmul.msk.f32.gmra.mxu0 %vm347_vm2, %v235_v51  ;;  %2675 = vmatmul.msk.f32.vlgmr.msra.gmra.mxu2 %vm347_vm2, %v166_v52  ;;  %v190_v63 = vmax.f32 %v182_v60, 0.0  ;;  %v214_v20 = vmax.f32 %v206_v8, 0.0  ;;  %v238_v41 = vmax.f32 %v230_v36, 0.0  ;;  %v254_v51 = vadd.f32 %v246_v43, %v2920_v47 }
  0xa0   :  { %v2933_v57 = vpop.f32.mrf.mxu0  ;;  %v294_v8 = vrot.slane %v2917_v46, 2  ;;  %v326_v30 = vadd.f32 %v318_v24, %v2920_v47  ;;  %v212_v36 = vmax.f32 %v2898_v32, 0.0  ;;  %v236_v43 = vmax.f32 %v2901_v33, 0.0 }
  0xa1   :  { %2666 = vmatmul.msk.f32.gmra.mxu1 %vm347_vm2, %v332_v56  ;;  %v262_v54 = vmax.f32 %v254_v51, 0.0  ;;  %v270_v56 = vrot.slane %v2917_v46, 3  ;;  %v3019_v46 = vadd.f32 %v2874_v14, %v2933_v57  ;;  %v260_v33 = vmax.f32 %v2904_v34, 0.0 }
  0xa2   :  { %v2936_v58 = vpop.f32.mrf.mxu1  ;;  %v334_v37 = vmax.f32 %v326_v30, 0.0 }
  0xa3   :  { %v159_v57 = vadd.f32 %v2936_v58, %v3019_v46  ;;  %v199_v16 = vrot.slane %v3019_v46, 6 }
  0xa7   :  { %2655 = vmatmul.msk.f32.gmra.mxu0 %vm347_vm2, %v259_v62  ;;  %2676 = vmatmul.msk.f32.gmra.mxu2 %vm347_vm2, %v190_v63  ;;  %v278_v63 = vadd.f32 %v270_v56, %v2920_v47 }
  0xa8   :  { %v101_v4 = vpop.f32.mrf.mxu0 }
  0xa9   :  { %v102_v5 = vadd.f32 %v2874_v14, %v101_v4  ;;  %2667 = vmatmul.msk.f32.gmra.mxu1 %vm347_vm2, %v165_v2  ;;  %v286_v4 = vmax.f32 %v278_v63, 0.0 }
  0xaa   :  { %v146_v6 = vpop.f32.mrf.mxu1 }
  0xab   :  { %v248_v10 = vrot.slane %v102_v5, 4  ;;  %v2953_v12 = vadd.f32 %v146_v6, %v102_v5  ;;  %v176_v13 = vrot.slane %v102_v5, 7  ;;  %v200_v15 = vrot.slane %v102_v5, 6 }
  0xac   :  { %v224_v18 = vrot.slane %v102_v5, 5  ;;  %v272_v31 = vrot.slane %v102_v5, 3  ;;  %v296_v49 = vrot.slane %v102_v5, 2  ;;  %v320_v62 = vrot.slane %v102_v5, 1 }
  0xad   :  { %v256_v21 = vadd.f32 %v248_v10, %v146_v6  ;;  %v2956_v25 = vadd.f32 %v176_v13, %v146_v6  ;;  %v2958_v26 = vadd.f32 %v200_v15, %v146_v6  ;;  %v261_v10 = vmax.f32 %v253_v0, 0.0 }
  0xae   :  { %v2960_v27 = vadd.f32 %v224_v18, %v146_v6  ;;  %v280_v39 = vadd.f32 %v272_v31, %v146_v6  ;;  %v304_v52 = vadd.f32 %v296_v49, %v146_v6  ;;  %v328_v1 = vadd.f32 %v320_v62, %v146_v6 }
  0xaf   :  { %2656 = vmatmul.msk.f32.gmra.mxu0 %vm347_vm2, %v283_v19  ;;  %2677 = vmatmul.msk.f32.gmra.mxu2 %vm347_vm2, %v214_v20  ;;  %v264_v29 = vmax.f32 %v256_v21, 0.0  ;;  %v269_v6 = vrot.slane %v2929_v55, 3  ;;  %v302_v13 = vadd.f32 %v294_v8, %v2920_v47  ;;  %v188_v19 = vmax.f32 %v180_v22, 0.0  ;;  %v3068_v22 = vld [vmem:[%s5634_s5] ss:$0 sm:$0xff]  ;;  %s2765_s5 = smov 48  }
  0xb0   :  { %v288_v45 = vmax.f32 %v280_v39, 0.0  ;;  %v312_v60 = vmax.f32 %v304_v52, 0.0  ;;  %v104_v2 = vpop.f32.mrf.mxu0  ;;  %v336_v11 = vmax.f32 %v328_v1, 0.0  ;;  %v247_v0 = vrot.slane %v3019_v46, 4 }
  0xb1   :  { %2668 = vmatmul.msk.f32.gmra.mxu1 %vm347_vm2, %v189_v28  ;;  %2695 = vmatmul.msk.f32.vlgmr.msra.gmra.mxu3 %vm347_vm2, %v264_v29  ;;  %v2997_v9 = vadd.f32 %v2874_v14, %v104_v2  ;;  %v277_v18 = vadd.f32 %v269_v6, %v2909_v38  ;;  %v310_v20 = vmax.f32 %v302_v13, 0.0  ;;  %v293_v29 = vrot.slane %v2929_v55, 2 }
  0xb2   :  { %v2992_v5 = vpop.f32.mrf.mxu1 }
  0xb3   :  { %v161_v15 = vadd.f32 %v2992_v5, %v2997_v9  ;;  %v285_v28 = vmax.f32 %v277_v18, 0.0  ;;  %v177_v23 = vrot.slane %v2997_v9, 7  ;;  %v301_v31 = vadd.f32 %v293_v29, %v2909_v38 }
  0xb4   :  { %v201_v47 = vrot.slane %v2997_v9, 6  ;;  %v225_v49 = vrot.slane %v2997_v9, 5  ;;  %v273_v61 = vrot.slane %v2997_v9, 3  ;;  %v297_v2 = vrot.slane %v2997_v9, 2 }
  0xb5   :  { %v169_v21 = vmax.f32 %v161_v15, 0.0  ;;  %v185_v35 = vadd.f32 %v177_v23, %v2992_v5  ;;  %v309_v39 = vmax.f32 %v301_v31, 0.0  ;;  %v321_v6 = vrot.slane %v2997_v9, 1 }
  0xb6   :  { %v209_v42 = vadd.f32 %v201_v47, %v2992_v5  ;;  %v233_v50 = vadd.f32 %v225_v49, %v2992_v5  ;;  %v281_v17 = vadd.f32 %v273_v61, %v2992_v5  ;;  %v305_v7 = vadd.f32 %v297_v2, %v2992_v5 }
  0xb7   :  { %2657 = vmatmul.msk.f32.gmra.mxu0 %vm347_vm2, %v307_v40  ;;  %2678 = vmatmul.msk.f32.gmra.mxu2 %vm347_vm2, %v238_v41  ;;  %v193_v40 = vmax.f32 %v185_v35, 0.0  ;;  %v317_v41 = vrot.slane %v2929_v55, 1  ;;  %v329_v15 = vadd.f32 %v321_v6, %v2992_v5  ;;  %v240_v6 = vmax.f32 %v2960_v27, 0.0 }
  0xb8   :  { %v217_v48 = vmax.f32 %v209_v42, 0.0  ;;  %v241_v52 = vmax.f32 %v233_v50, 0.0  ;;  %v289_v1 = vmax.f32 %v281_v17, 0.0 }
  0xb9   :  { %2669 = vmatmul.msk.f32.gmra.mxu1 %vm347_vm2, %v213_v44  ;;  %2696 = vmatmul.msk.f32.gmra.mxu3 %vm347_vm2, %v288_v45  ;;  %v325_v32 = vadd.f32 %v317_v41, %v2909_v38  ;;  %v167_v44 = vmax.f32 %v159_v57, 0.0  ;;  %v175_v45 = vrot.slane %v3019_v46, 7 }
  0xbb   :  { %v333_v55 = vmax.f32 %v325_v32, 0.0  ;;  %v183_v38 = vadd.f32 %v175_v45, %v2936_v58 }
  0xbd   :  { %v191_v51 = vmax.f32 %v183_v38, 0.0 }
  0xbf   :  { %2658 = vmatmul.msk.f32.gmra.mxu0 %vm347_vm2, %v331_v53  ;;  %2679 = vmatmul.msk.f32.gmra.mxu2 %vm347_vm2, %v262_v54  ;;  %v249_v53 = vrot.slane %v2997_v9, 4  ;;  %v207_v54 = vadd.f32 %v199_v16, %v2936_v58  ;;  %v295_v9 = vrot.slane %v3019_v46, 2 }
  0xc1   :  { %2670 = vmatmul.msk.f32.gmra.mxu1 %vm347_vm2, %v237_v59  ;;  %2697 = vmatmul.msk.f32.gmra.mxu3 %vm347_vm2, %v312_v60  ;;  %v257_v56 = vadd.f32 %v249_v53, %v2992_v5  ;;  %v215_v59 = vmax.f32 %v207_v54, 0.0  ;;  %v223_v60 = vrot.slane %v3019_v46, 5  ;;  %v303_v5 = vadd.f32 %v295_v9, %v2936_v58 }
  0xc2   :  { %v192_v53 = vmax.f32 %v2956_v25, 0.0 }
  0xc3   :  { %v265_v34 = vmax.f32 %v257_v56, 0.0  ;;  %v231_v62 = vadd.f32 %v223_v60, %v2936_v58  ;;  %v311_v31 = vmax.f32 %v303_v5, 0.0 }
  0xc5   :  { %v239_v63 = vmax.f32 %v231_v62, 0.0 }
  0xc7   :  { %2659 = vmatmul.msk.f32.gmra.mxu0 %vm347_vm2, %v164_v3  ;;  %2680 = vmatmul.msk.f32.gmra.mxu2 %vm347_vm2, %v286_v4  ;;  %v255_v3 = vadd.f32 %v247_v0, %v2936_v58  ;;  %v107_v4 = vpop.f32.mrf.mxu0 }
  0xc8   :  { %v3077_v24 = vadd.f32 %v2874_v14, %v107_v4  ;;  %v319_v14 = vrot.slane %v3019_v46, 1 }
  0xc9   :  { %2671 = vmatmul.msk.f32.gmra.mxu1 %vm347_vm2, %v261_v10  ;;  %2698 = vmatmul.msk.f32.gmra.mxu3 %vm347_vm2, %v336_v11  ;;  %v263_v8 = vmax.f32 %v255_v3, 0.0  ;;  %v271_v10 = vrot.slane %v3019_v46, 3  ;;  %v313_v11 = vmax.f32 %v305_v7, 0.0 }
  0xca   :  { %v274_v3 = vrot.slane %v3077_v24, 3 }
  0xcb   :  { %v279_v13 = vadd.f32 %v271_v10, %v2936_v58 }
  0xcf   :  { %2660 = vmatmul.msk.f32.gmra.mxu0 %vm347_vm2, %v188_v19  ;;  %2681 = vmatmul.msk.f32.gmra.mxu2 %vm347_vm2, %v310_v20  ;;  %v3072_v19 = vpop.f32.mrf.mxu1 }
  0xd0   :  { %v162_v29 = vadd.f32 %v3072_v19, %v3077_v24 }
  0xd1   :  { %2672 = vmatmul.msk.f32.gmra.mxu1 %vm347_vm2, %v285_v28  ;;  %2699 = vmatmul.msk.f32.gmra.mxu3 %vm347_vm2, %v169_v21  ;;  %v287_v21 = vmax.f32 %v279_v13, 0.0  ;;  %v337_v28 = vmax.f32 %v329_v15, 0.0 }
  0xd2   :  { %v170_v35 = vmax.f32 %v162_v29, 0.0 }
  0xd7   :  { %2661 = vmatmul.msk.f32.gmra.mxu0 %vm347_vm2, %v212_v36  ;;  %2682 = vmatmul.msk.f32.gmra.mxu2 %vm347_vm2, %v334_v37 }
  0xd9   :  { %2673 = vmatmul.msk.f32.gmra.mxu1 %vm347_vm2, %v309_v39  ;;  %2700 = vmatmul.msk.f32.gmra.mxu3 %vm347_vm2, %v193_v40  ;;  %v178_v39 = vrot.slane %v3077_v24, 7  ;;  %v327_v40 = vadd.f32 %v319_v14, %v2936_v58  ;;  %v322_v14 = vrot.slane %v3077_v24, 1 }
  0xdb   :  { %v186_v41 = vadd.f32 %v178_v39, %v3072_v19  ;;  %v335_v57 = vmax.f32 %v327_v40, 0.0  ;;  %v330_v39 = vadd.f32 %v322_v14, %v3072_v19 }
  0xdf   :  { %2662 = vmatmul.msk.f32.gmra.mxu0 %vm347_vm2, %v236_v43  ;;  %2683 = vmatmul.msk.f32.gmra.mxu2 %vm347_vm2, %v167_v44  ;;  %v194_v43 = vmax.f32 %v186_v41, 0.0  ;;  %v202_v44 = vrot.slane %v3077_v24, 6 }
  0xe1   :  { %2674 = vmatmul.msk.f32.gmra.mxu1 %vm347_vm2, %v333_v55  ;;  %2701 = vmatmul.msk.f32.gmra.mxu3 %vm347_vm2, %v217_v48  ;;  %v210_v58 = vadd.f32 %v202_v44, %v3072_v19  ;;  %v168_v48 = vmax.f32 %v2953_v12, 0.0 }
  0xe3   :  { %v218_v50 = vmax.f32 %v210_v58, 0.0 }
  0xe7   :  { %2663 = vmatmul.msk.f32.gmra.mxu0 %vm347_vm2, %v260_v33  ;;  %2684 = vmatmul.msk.f32.gmra.mxu2 %vm347_vm2, %v191_v51  ;;  %v226_v33 = vrot.slane %v3077_v24, 5 }
  0xe9   :  { %2702 = vmatmul.msk.f32.gmra.mxu3 %vm347_vm2, %v241_v52  ;;  %v234_v16 = vadd.f32 %v226_v33, %v3072_v19 }
  0xeb   :  { %v242_v60 = vmax.f32 %v234_v16, 0.0 }
  0xef   :  { %2685 = vmatmul.msk.f32.gmra.mxu2 %vm347_vm2, %v215_v59 }
  0xf1   :  { %2703 = vmatmul.msk.f32.gmra.mxu3 %vm347_vm2, %v265_v34  ;;  %v250_v34 = vrot.slane %v3077_v24, 4 }
  0xf3   :  { %v258_v61 = vadd.f32 %v250_v34, %v3072_v19 }
  0xf5   :  { %v266_v2 = vmax.f32 %v258_v61, 0.0 }
  0xf7   :  { %2686 = vmatmul.msk.f32.gmra.mxu2 %vm347_vm2, %v239_v63  ;;  %v216_v63 = vmax.f32 %v2958_v26, 0.0  ;;  %v282_v26 = vadd.f32 %v274_v3, %v3072_v19 }
  0xf9   :  { %2704 = vmatmul.msk.f32.gmra.mxu3 %vm347_vm2, %v289_v1 }
  0xff   :  { %2687 = vmatmul.msk.f32.gmra.mxu2 %vm347_vm2, %v263_v8 }
 0x101   :  { %2705 = vmatmul.msk.f32.gmra.mxu3 %vm347_vm2, %v313_v11 }
 0x104   :  { %v557_v18 = vpop.f32.mrf.mxu0 }
 0x105   :  { %v558_v20 = vadd.f32 %v3068_v22, %v557_v18  ;;  %v290_v18 = vmax.f32 %v282_v26, 0.0 }
 0x107   :  { %750 = vst.msk [vmem:[#allocation2] sm:$0xff] %vm749_vm3, %v558_v20  ;;  %2688 = vmatmul.msk.f32.gmra.mxu2 %vm347_vm2, %v287_v21  ;;  %v298_v20 = vrot.slane %v3077_v24, 2  ;;  %v338_v24 = vmax.f32 %v330_v39, 0.0 }
 0x109   :  { %2706 = vmatmul.msk.f32.gmra.mxu3 %vm347_vm2, %v337_v28  ;;  %v306_v27 = vadd.f32 %v298_v20, %v3072_v19 }
 0x10c   :  { %v560_v23 = vpop.f32.mrf.mxu0 }
 0x10d   :  { %v561_v30 = vadd.f32 %v3068_v22, %v560_v23 }
 0x10e   :  { %v596_v36 = vpop.f32.mrf.mxu1 }
 0x10f   :  { %751 = vst.msk [vmem:[#allocation2 + $0x8] sm:$0xff] %vm749_vm3, %v561_v30  ;;  %v597_v37 = vadd.f32 %v3068_v22, %v596_v36  ;;  %2689 = vmatmul.msk.f32.gmra.mxu2 %vm347_vm2, %v311_v31 }
 0x111   :  { %2707 = vmatmul.msk.f32.gmra.mxu3 %vm347_vm2, %v170_v35  ;;  %776 = vrot.lane.b32.xlu2 %v597_v37, %s2764_s4  ;;  %v314_v35 = vmax.f32 %v306_v27, 0.0 }
 0x114   :  { %v563_v47 = vpop.f32.mrf.mxu0 }
 0x115   :  { %v564_v46 = vadd.f32 %v3068_v22, %v563_v47 }
 0x116   :  { %v599_v32 = vpop.f32.mrf.mxu1 }
 0x117   :  { %752 = vst.msk [vmem:[#allocation2 + $0x10] sm:$0xff] %vm749_vm3, %v564_v46  ;;  %v600_v42 = vadd.f32 %v3068_v22, %v599_v32  ;;  %2690 = vmatmul.msk.f32.gmra.mxu2 %vm347_vm2, %v335_v57 }
 0x119   :  { %2708 = vmatmul.msk.f32.gmra.mxu3 %vm347_vm2, %v194_v43  ;;  %778 = vrot.lane.b32.xlu0 %v600_v42, %s2764_s4 }
 0x11c   :  { %v566_v45 = vpop.f32.mrf.mxu0 }
 0x11d   :  { %v567_v55 = vadd.f32 %v3068_v22, %v566_v45 }
 0x11e   :  { %v602_v49 = vpop.f32.mrf.mxu1 }
 0x11f   :  { %753 = vst.msk [vmem:[#allocation2 + $0x18] sm:$0xff] %vm749_vm3, %v567_v55  ;;  %v603_v38 = vadd.f32 %v3068_v22, %v602_v49  ;;  %2691 = vmatmul.msk.f32.gmra.mxu2 %vm347_vm2, %v168_v48 }
 0x121   :  { %2709 = vmatmul.msk.f32.gmra.mxu3 %vm347_vm2, %v218_v50  ;;  %780 = vrot.lane.b32.xlu1 %v603_v38, %s2764_s4 }
 0x122   :  { %v629_v51 = vpop.f32.mrf.mxu2 }
 0x123   :  { %v630_v56 = vadd.f32 %v3068_v22, %v629_v51 }
 0x124   :  { %v569_v52 = vpop.f32.mrf.mxu0 }
 0x125   :  { %v570_v12 = vadd.f32 %v3068_v22, %v569_v52 }
 0x126   :  { %v605_v54 = vpop.f32.mrf.mxu1 }
 0x127   :  { %754 = vst.msk [vmem:[#allocation2 + $0x20] sm:$0xff] %vm749_vm3, %v570_v12  ;;  %v606_v59 = vadd.f32 %v3068_v22, %v605_v54  ;;  %2692 = vmatmul.msk.f32.gmra.mxu2 %vm347_vm2, %v192_v53 }
 0x129   :  { %2710 = vmatmul.msk.f32.gmra.mxu3 %vm347_vm2, %v242_v60  ;;  %848 = vrot.lane.b32.xlu1 %v630_v56, %s2765_s5 }
 0x12a   :  { %807 = vrot.lane.b32.xlu2 %v606_v59, %s2766_s29  ;;  %v632_v25 = vpop.f32.mrf.mxu2 }
 0x12b   :  { %v633_v4 = vadd.f32 %v3068_v22, %v632_v25 }
 0x12c   :  { %v572_v62 = vpop.f32.mrf.mxu0 }
 0x12d   :  { %v573_v17 = vadd.f32 %v3068_v22, %v572_v62 }
 0x12e   :  { %v608_v0 = vpop.f32.mrf.mxu1 }
 0x12f   :  { %755 = vst.msk [vmem:[#allocation2 + $0x28] sm:$0xff] %vm749_vm3, %v573_v17  ;;  %v609_v1 = vadd.f32 %v3068_v22, %v608_v0  ;;  %2693 = vmatmul.msk.f32.gmra.mxu2 %vm347_vm2, %v216_v63 }
 0x131   :  { %2711 = vmatmul.msk.f32.gmra.mxu3 %vm347_vm2, %v266_v2  ;;  %809 = vrot.lane.b32.xlu0 %v609_v1, %s2766_s29 }
 0x132   :  { %850 = vrot.lane.b32.xlu2 %v633_v4, %s2765_s5  ;;  %v635_v7 = vpop.f32.mrf.mxu2 }
 0x133   :  { %v636_v21 = vadd.f32 %v3068_v22, %v635_v7 }
 0x134   :  { %v575_v8 = vpop.f32.mrf.mxu0  ;;  %v689_v10 = vpop.f32.mrf.mxu3 }
 0x135   :  { %v576_v11 = vadd.f32 %v3068_v22, %v575_v8  ;;  %v690_v36 = vadd.f32 %v3068_v22, %v689_v10 }
 0x136   :  { %v611_v13 = vpop.f32.mrf.mxu1 }
 0x137   :  { %756 = vst.msk [vmem:[#allocation2 + $0x30] sm:$0xff] %vm749_vm3, %v576_v11  ;;  %v612_v15 = vadd.f32 %v3068_v22, %v611_v13  ;;  %2694 = vmatmul.msk.f32.gmra.mxu2 %vm347_vm2, %v240_v6 }
 0x139   :  { %2712 = vmatmul.msk.f32.gmra.mxu3 %vm347_vm2, %v290_v18  ;;  %811 = vrot.lane.b32.xlu1 %v612_v15, %s2766_s29 }
 0x13a   :  { %852 = vrot.lane.b32.xlu0 %v636_v21, %s2765_s5  ;;  %v638_v9 = vpop.f32.mrf.mxu2 }
 0x13b   :  { %v639_v30 = vadd.f32 %v3068_v22, %v638_v9 }
 0x13c   :  { %v578_v28 = vpop.f32.mrf.mxu0  ;;  %v692_v5 = vpop.f32.mrf.mxu3 }
 0x13d   :  { %v579_v29 = vadd.f32 %v3068_v22, %v578_v28  ;;  %v693_v46 = vadd.f32 %v3068_v22, %v692_v5 }
 0x13e   :  { %v614_v23 = vpop.f32.mrf.mxu1 }
 0x13f   :  { %757 = vst.msk [vmem:[#allocation2 + $0x38] sm:$0xff] %vm749_vm3, %v579_v29  ;;  %v615_v31 = vadd.f32 %v3068_v22, %v614_v23 }
 0x141   :  { %2713 = vmatmul.msk.f32.gmra.mxu3 %vm347_vm2, %v314_v35  ;;  %854 = vrot.lane.b32.xlu1 %v639_v30, %s2765_s5 }
 0x142   :  { %938 = vrot.lane.b32.xlu0 %v690_v36, %s2767_s30  ;;  %813 = vrot.lane.b32.xlu2 %v615_v31, %s2766_s29  ;;  %v641_v37 = vpop.f32.mrf.mxu2 }
 0x143   :  { %v642_v57 = vadd.f32 %v3068_v22, %v641_v37 }
 0x144   :  { %v695_v40 = vpop.f32.mrf.mxu3  ;;  %v581_v41 = vpop.f32.mrf.mxu0 }
 0x145   :  { %v582_v32 = vadd.f32 %v3068_v22, %v581_v41  ;;  %v696_v45 = vadd.f32 %v3068_v22, %v695_v40 }
 0x146   :  { %v617_v47 = vpop.f32.mrf.mxu1 }
 0x147   :  { %v618_v55 = vadd.f32 %v3068_v22, %v617_v47 }
 0x149   :  { %2714 = vmatmul.msk.f32.gmra.mxu3 %vm347_vm2, %v338_v24  ;;  %940 = vrot.lane.b32.xlu1 %v693_v46, %s2767_s30 }
 0x14a   :  { %856 = vrot.lane.b32.xlu2 %v642_v57, %s2765_s5  ;;  %766 = vrot.lane.b32.xlu0 %v582_v32, %s2764_s4  ;;  %v644_v42 = vpop.f32.mrf.mxu2 }
 0x14b   :  { %v645_v51 = vadd.f32 %v3068_v22, %v644_v42 }
 0x14c   :  { %v698_v19 = vpop.f32.mrf.mxu3  ;;  %v584_v44 = vpop.f32.mrf.mxu0 }
 0x14d   :  { %v585_v54 = vadd.f32 %v3068_v22, %v584_v44  ;;  %v699_v61 = vadd.f32 %v3068_v22, %v698_v19 }
 0x14e   :  { %v620_v43 = vpop.f32.mrf.mxu1 }
 0x14f   :  { %v621_v58 = vadd.f32 %v3068_v22, %v620_v43 }
 0x151   :  { %817 = vrot.lane.b32.xlu1 %v621_v58, %s2766_s29 }
 0x152   :  { %942 = vrot.lane.b32.xlu2 %v696_v45, %s2767_s30  ;;  %815 = vrot.lane.b32.xlu0 %v618_v55, %s2766_s29  ;;  %v647_v48 = vpop.f32.mrf.mxu2 }
 0x153   :  { %v648_v50 = vadd.f32 %v3068_v22, %v647_v48 }
 0x154   :  { %v701_v49 = vpop.f32.mrf.mxu3  ;;  %v587_v16 = vpop.f32.mrf.mxu0 }
 0x155   :  { %v588_v53 = vadd.f32 %v3068_v22, %v587_v16  ;;  %v702_v25 = vadd.f32 %v3068_v22, %v701_v49 }
 0x156   :  { %v623_v38 = vpop.f32.mrf.mxu1 }
 0x157   :  { %v624_v33 = vadd.f32 %v3068_v22, %v623_v38 }
 0x159   :  { %860 = vrot.lane.b32.xlu1 %v648_v50, %s2765_s5 }
 0x15a   :  { %819 = vrot.lane.b32.xlu2 %v624_v33, %s2766_s29  ;;  %858 = vrot.lane.b32.xlu0 %v645_v51, %s2765_s5  ;;  %v650_v52 = vpop.f32.mrf.mxu2 }
 0x15b   :  { %v651_v56 = vadd.f32 %v3068_v22, %v650_v52 }
 0x15c   :  { %v704_v12 = vpop.f32.mrf.mxu3  ;;  %v590_v60 = vpop.f32.mrf.mxu0 }
 0x15d   :  { %v705_v62 = vadd.f32 %v3068_v22, %v704_v12  ;;  %v591_v3 = vadd.f32 %v3068_v22, %v590_v60 }
 0x15e   :  { %v626_v1 = vpop.f32.mrf.mxu1 }
 0x15f   :  { %v627_v4 = vadd.f32 %v3068_v22, %v626_v1 }
 0x161   :  { %770 = vrot.lane.b32.xlu1 %v588_v53, %s2764_s4 }
 0x162   :  { %862 = vrot.lane.b32.xlu2 %v651_v56, %s2765_s5  ;;  %768 = vrot.lane.b32.xlu0 %v585_v54, %s2764_s4  ;;  %v653_v59 = vpop.f32.mrf.mxu2 }
 0x163   :  { %v654_v11 = vadd.f32 %v3068_v22, %v653_v59 }
 0x164   :  { %v707_v34 = vpop.f32.mrf.mxu3  ;;  %v593_v2 = vpop.f32.mrf.mxu0 }
 0x165   :  { %v594_v7 = vadd.f32 %v3068_v22, %v593_v2  ;;  %v708_v20 = vadd.f32 %v3068_v22, %v707_v34 }
 0x169   :  { %971 = vrot.lane.b32.xlu1 %v702_v25, %s2768_s8 }
 0x16a   :  { %973 = vrot.lane.b32.xlu2 %v705_v62, %s2768_s8  ;;  %944 = vrot.lane.b32.xlu0 %v699_v61, %s2767_s30  ;;  %v656_v17 = vpop.f32.mrf.mxu2 }
 0x16b   :  { %v777_v63 = vpop.permute.xlu2 %776  ;;  %v657_v10 = vadd.f32 %v3068_v22, %v656_v17 }
 0x16c   :  { %796 = vst.msk [vmem:[#allocation2 + $0x28] sm:$0xff] %vm790_vm4, %v777_v63  ;;  %v710_v0 = vpop.f32.mrf.mxu3 }
 0x16d   :  { %v711_v18 = vadd.f32 %v3068_v22, %v710_v0 }
 0x171   :  { %772 = vrot.lane.b32.xlu1 %v591_v3, %s2764_s4 }
 0x172   :  { %774 = vrot.lane.b32.xlu2 %v594_v7, %s2764_s4  ;;  %821 = vrot.lane.b32.xlu0 %v627_v4, %s2766_s29  ;;  %v659_v26 = vpop.f32.mrf.mxu2 }
 0x173   :  { %v660_v6 = vadd.f32 %v3068_v22, %v659_v26 }
 0x174   :  { %v713_v8 = vpop.f32.mrf.mxu3 }
 0x175   :  { %v714_v21 = vadd.f32 %v3068_v22, %v713_v8 }
 0x179   :  { %891 = vrot.lane.b32.xlu1 %v657_v10, %s2769_s1 }
 0x17a   :  { %893 = vrot.lane.b32.xlu2 %v660_v6, %s2769_s1  ;;  %889 = vrot.lane.b32.xlu0 %v654_v11, %s2769_s1  ;;  %v662_v13 = vpop.f32.mrf.mxu2 }
 0x17b   :  { %v663_v5 = vadd.f32 %v3068_v22, %v662_v13 }
 0x17c   :  { %v716_v15 = vpop.f32.mrf.mxu3 }
 0x17d   :  { %v717_v36 = vadd.f32 %v3068_v22, %v716_v15 }
 0x181   :  { %977 = vrot.lane.b32.xlu1 %v711_v18, %s2768_s8 }
 0x182   :  { %979 = vrot.lane.b32.xlu2 %v714_v21, %s2768_s8  ;;  %975 = vrot.lane.b32.xlu0 %v708_v20, %s2768_s8  ;;  %v665_v9 = vpop.f32.mrf.mxu2 }
 0x183   :  { %v666_v28 = vadd.f32 %v3068_v22, %v665_v9 }
 0x184   :  { %v719_v27 = vpop.f32.mrf.mxu3  ;;  %v3209_v29 = vpop.permute.xlu2 %807 }
 0x185   :  { %v720_v14 = vadd.f32 %v3068_v22, %v719_v27 }
 0x189   :  { %897 = vrot.lane.b32.xlu1 %v666_v28, %s2769_s1 }
 0x18a   :  { %895 = vrot.lane.b32.xlu0 %v663_v5, %s2769_s1  ;;  %v668_v23 = vpop.f32.mrf.mxu2 }
 0x18b   :  { %v669_v30 = vadd.f32 %v3068_v22, %v668_v23  ;;  %v779_v31 = vpop.permute.xlu0 %778 }
 0x18c   :  { %797 = vst.msk [vmem:[#allocation2 + $0x30] sm:$0xff] %vm790_vm4, %v779_v31  ;;  %v722_v35 = vpop.f32.mrf.mxu3  ;;  %v3220_v41 = vpop.permute.xlu2 %850 }
 0x18d   :  { %899 = vrot.lane.b32.xlu2 %v669_v30, %s2769_s1  ;;  %v723_v39 = vadd.f32 %v3068_v22, %v722_v35 }
 0x191   :  { %983 = vrot.lane.b32.xlu1 %v720_v14, %s2768_s8 }
 0x192   :  { %981 = vrot.lane.b32.xlu0 %v717_v36, %s2768_s8  ;;  %v671_v37 = vpop.f32.mrf.mxu2 }
 0x193   :  { %v781_v40 = vpop.permute.xlu1 %780  ;;  %v672_v46 = vadd.f32 %v3068_v22, %v671_v37 }
 0x194   :  { %798 = vst.msk [vmem:[#allocation2 + $0x38] sm:$0xff] %vm790_vm4, %v781_v40  ;;  %v725_v47 = vpop.f32.mrf.mxu3 }
 0x195   :  { %985 = vrot.lane.b32.xlu2 %v723_v39, %s2768_s8  ;;  %v726_v19 = vadd.f32 %v3068_v22, %v725_v47 }
 0x19a   :  { %901 = vrot.lane.b32.xlu0 %v672_v46, %s2769_s1  ;;  %v674_v24 = vpop.f32.mrf.mxu2 }
 0x19b   :  { %v675_v57 = vadd.f32 %v3068_v22, %v674_v24  ;;  %v849_v44 = vpop.permute.xlu1 %848 }
 0x19c   :  { %v3227_v32 = vpop.permute.xlu2 %813  ;;  %v728_v42 = vpop.f32.mrf.mxu3 }
 0x19d   :  { %903 = vrot.lane.b32.xlu1 %v675_v57, %s2769_s1  ;;  %v729_v58 = vadd.f32 %v3068_v22, %v728_v42 }
 0x1a2   :  { %1012 = vrot.lane.b32.xlu0 %v726_v19, %s2770_s9  ;;  %v677_v43 = vpop.f32.mrf.mxu2 }
 0x1a3   :  { %v678_v45 = vadd.f32 %v3068_v22, %v677_v43  ;;  %v3234_v55 = vpop.permute.xlu0 %809 }
 0x1a4   :  { %v857_v48 = vpop.permute.xlu2 %856  ;;  %v731_v49 = vpop.f32.mrf.mxu3 }
 0x1a5   :  { %930 = vrot.lane.b32.xlu2 %v678_v45, %s2767_s30  ;;  %1014 = vrot.lane.b32.xlu1 %v729_v58, %s2770_s9  ;;  %v732_v50 = vadd.f32 %v3068_v22, %v731_v49  ;;  %v1053_v58 = vlaneseq }
 0x1a7   :  { %v3315_v45 = vshrl.u32 %v1053_v58, 7 }
 0x1a9   :  { %v1056_v49 = vadd.s32 16, %v3315_v45  ;;  %vm5639_vm11 = vcmp.lt.s32.totalorder %v3315_v45, 1  ;;  %vm5638_vm12 = vcmp.lt.s32.totalorder %v3315_v45, 7 }
 0x1aa   :  { %v680_v38 = vpop.f32.mrf.mxu2 }
 0x1ab   :  { %v681_v33 = vadd.f32 %v3068_v22, %v680_v38  ;;  %v812_v51 = vpop.permute.xlu1 %811 }
 0x1ac   :  { %v853_v16 = vpop.permute.xlu0 %852  ;;  %v3240_v52 = vpop.permute.xlu2 %942 }
 0x1ad   :  { %v734_v12 = vpop.f32.mrf.mxu3  ;;  %1016 = vrot.lane.b32.xlu2 %v732_v50, %s2770_s9  ;;  %932 = vrot.lane.b32.xlu0 %v681_v33, %s2767_s30  ;;  %v1057_v50 = vadd.s32 24, %v3315_v45 }
 0x1ae   :  { %v735_v54 = vadd.f32 %v3068_v22, %v734_v12  ;;  %v1122_v12 = vand.u32 2, %v1056_v49 }
 0x1b0   :  { %vm3355_vm0 = vcmp.eq.s32.totalorder %v1122_v12, 0 }
 0x1b2   :  { %v683_v53 = vpop.f32.mrf.mxu2 }
 0x1b3   :  { %v684_v56 = vadd.f32 %v3068_v22, %v683_v53  ;;  %v855_v59 = vpop.permute.xlu1 %854 }
 0x1b4   :  { %v3246_v60 = vpop.permute.xlu0 %938  ;;  %v820_v34 = vpop.permute.xlu2 %819 }
 0x1b5   :  { %838 = vst.msk [vmem:[#allocation2 + $0x30] sm:$0xff] %vm831_vm5, %v820_v34  ;;  %v737_v25 = vpop.f32.mrf.mxu3  ;;  %934 = vrot.lane.b32.xlu1 %v684_v56, %s2767_s30  ;;  %1018 = vrot.lane.b32.xlu0 %v735_v54, %s2770_s9  ;;  %v1099_v54 = vand.u32 1, %v1057_v50  ;;  %v5836_v34 = vmov 0 }
 0x1b6   :  { %v738_v62 = vadd.f32 %v3068_v22, %v737_v25  ;;  %v1123_v25 = vand.u32 2, %v1057_v50 }
 0x1b7   :  { %vm3362_vm1 = vcmp.eq.s32.totalorder %v1099_v54, 0 }
 0x1ba   :  { %v686_v61 = vpop.f32.mrf.mxu2 }
 0x1bb   :  { %v687_v17 = vadd.f32 %v3068_v22, %v686_v61  ;;  %v941_v63 = vpop.permute.xlu1 %940 }
 0x1bc   :  { %v863_v0 = vpop.permute.xlu2 %862  ;;  %v767_v1 = vpop.permute.xlu0 %766 }
 0x1bd   :  { %791 = vst.msk [vmem:[#allocation2] sm:$0xff] %vm790_vm4, %v767_v1  ;;  %v740_v2 = vpop.f32.mrf.mxu3  ;;  %936 = vrot.lane.b32.xlu2 %v687_v17, %s2767_s30  ;;  %1020 = vrot.lane.b32.xlu1 %v738_v62, %s2770_s9  ;;  %v3348_v17 = vadd.s32 40, %v3315_v45  ;;  %v5841_v1 = vmov 0 }
 0x1be   :  { %832 = vst.msk [vmem:[#allocation2] sm:$0xff] %vm831_vm5, %v3209_v29  ;;  %v741_v3 = vadd.f32 %v3068_v22, %v740_v2  ;;  %v5842_v1 = vsel %vm3355_vm0, 4294967295, %v5841_v1  ;;  %v1220_v2 = vand.u32 4, %v1056_v49 }
 0x1bf   :  { %873 = vst.msk [vmem:[#allocation2] sm:$0xff] %vm872_vm6, %v849_v44 }
 0x1c3   :  { %v818_v4 = vpop.permute.xlu1 %817 }
 0x1c4   :  { %837 = vst.msk [vmem:[#allocation2 + $0x28] sm:$0xff] %vm831_vm5, %v818_v4  ;;  %v3261_v7 = vpop.permute.xlu2 %973  ;;  %v816_v26 = vpop.permute.xlu0 %815 }
 0x1c5   :  { %v743_v8 = vpop.f32.mrf.mxu3  ;;  %1022 = vrot.lane.b32.xlu2 %v741_v3, %s2770_s9 }
 0x1c6   :  { %v744_v10 = vadd.f32 %v3068_v22, %v743_v8  ;;  %v1221_v8 = vand.u32 4, %v1057_v50 }
 0x1c8   :  { %1024 = vrot.lane.b32.xlu0 %v744_v10, %s2770_s9 }
 0x1cb   :  { %v861_v11 = vpop.permute.xlu1 %860 }
 0x1cc   :  { %879 = vst.msk [vmem:[#allocation2 + $0x30] sm:$0xff] %vm872_vm6, %v861_v11  ;;  %v775_v6 = vpop.permute.xlu2 %774  ;;  %v859_v13 = vpop.permute.xlu0 %858 }
 0x1cd   :  { %795 = vst.msk [vmem:[#allocation2 + $0x20] sm:$0xff] %vm790_vm4, %v775_v6  ;;  %v746_v15 = vpop.f32.mrf.mxu3 }
 0x1ce   :  { %836 = vst.msk [vmem:[#allocation2 + $0x20] sm:$0xff] %vm831_vm5, %v816_v26  ;;  %v747_v18 = vadd.f32 %v3068_v22, %v746_v15  ;;  %v5843_v26 = vmov 0  ;;  %v5846_v15 = vmov 0 }
 0x1cf   :  { %877 = vst.msk [vmem:[#allocation2 + $0x20] sm:$0xff] %vm872_vm6, %v857_v48  ;;  %v5844_v26 = vsel %vm3362_vm1, 4294967295, %v5843_v26 }
 0x1d0   :  { %878 = vst.msk [vmem:[#allocation2 + $0x28] sm:$0xff] %vm872_vm6, %v859_v13  ;;  %1026 = vrot.lane.b32.xlu1 %v747_v18, %s2770_s9 }
 0x1d1   :  { %5845 = vst [vmem:[#allocation7_spill] sm:$0xff] %v5844_v26 }
 0x1d3   :  { %v771_v20 = vpop.permute.xlu1 %770 }
 0x1d4   :  { %793 = vst.msk [vmem:[#allocation2 + $0x10] sm:$0xff] %vm790_vm4, %v771_v20  ;;  %v769_v21 = vpop.permute.xlu0 %768  ;;  %v894_v9 = vpop.permute.xlu2 %893 }
 0x1d5   :  { %834 = vst.msk [vmem:[#allocation2 + $0x10] sm:$0xff] %vm831_vm5, %v812_v51  ;;  %v3327_v51 = vadd.s32 32, %v3315_v45 }
 0x1d6   :  { %875 = vst.msk [vmem:[#allocation2 + $0x10] sm:$0xff] %vm872_vm6, %v853_v16 }
 0x1d7   :  { %792 = vst.msk [vmem:[#allocation2 + $0x8] sm:$0xff] %vm790_vm4, %v769_v21  ;;  %v1124_v61 = vand.u32 2, %v3327_v51  ;;  %v5849_v21 = vmov 0 }
 0x1d8   :  { %833 = vst.msk [vmem:[#allocation2 + $0x8] sm:$0xff] %vm831_vm5, %v3234_v55  ;;  %v3318_v55 = vadd.s32 8, %v3315_v45 }
 0x1d9   :  { %874 = vst.msk [vmem:[#allocation2 + $0x8] sm:$0xff] %vm872_vm6, %v3220_v41 }
 0x1da   :  { %916 = vst.msk [vmem:[#allocation2 + $0x10] sm:$0xff] %vm913_vm7, %v894_v9  ;;  %v1097_v33 = vand.u32 1, %v3318_v55  ;;  %v1121_v16 = vand.u32 2, %v3318_v55  ;;  %v5851_v9 = vmov 0 }
 0x1db   :  { %v972_v22 = vpop.permute.xlu1 %971 }
 0x1dc   :  { %v945_v27 = vpop.permute.xlu0 %944  ;;  %v980_v28 = vpop.permute.xlu2 %979  ;;  %vm3337_vm13 = vcmp.eq.s32.totalorder %v1097_v33, 0  ;;  %vm3342_vm14 = vcmp.eq.s32.totalorder %v1121_v16, 0 }
 0x1dd   :  { %v5837_v34 = vsel %vm3342_vm14, 4294967295, %v5836_v34  ;;  %vm1137_vm3 = vmxor %vm3342_vm14, %vm3337_vm13 }
 0x1e3   :  { %v773_v5 = vpop.permute.xlu1 %772 }
 0x1e4   :  { %794 = vst.msk [vmem:[#allocation2 + $0x18] sm:$0xff] %vm790_vm4, %v773_v5  ;;  %v822_v29 = vpop.permute.xlu0 %821  ;;  %vm3380_vm4 = vcmp.eq.s32.totalorder %v1123_v25, 0 }
 0x1e5   :  { %835 = vst.msk [vmem:[#allocation2 + $0x18] sm:$0xff] %vm831_vm5, %v3227_v32  ;;  %v5850_v21 = vsel %vm3380_vm4, 4294967295, %v5849_v21 }
 0x1e6   :  { %876 = vst.msk [vmem:[#allocation2 + $0x18] sm:$0xff] %vm872_vm6, %v855_v59  ;;  %v5834_v59 = vmov 0 }
 0x1e7   :  { %839 = vst.msk [vmem:[#allocation2 + $0x38] sm:$0xff] %vm831_vm5, %v822_v29  ;;  %v900_v23 = vpop.permute.xlu2 %899  ;;  %v5835_v59 = vsel %vm3337_vm13, 4294967295, %v5834_v59  ;;  %vm3384_vm5 = vcmp.eq.s32.totalorder %v1124_v61, 0  ;;  %v5853_v29 = vmov 0 }
 0x1e8   :  { %880 = vst.msk [vmem:[#allocation2 + $0x38] sm:$0xff] %vm872_vm6, %v863_v0  ;;  %v5838_v0 = vmov 0  ;;  %v5852_v9 = vsel %vm3384_vm5, 4294967295, %v5851_v9 }
 0x1e9   :  { %919 = vst.msk [vmem:[#allocation2 + $0x28] sm:$0xff] %vm913_vm7, %v900_v23 }
 0x1ea   :  { %960 = vst.msk [vmem:[#allocation2 + $0x28] sm:$0xff] %vm954_vm8, %v941_v63 }
 0x1eb   :  { %v892_v30 = vpop.permute.xlu1 %891 }
 0x1ec   :  { %915 = vst.msk [vmem:[#allocation2 + $0x8] sm:$0xff] %vm913_vm7, %v892_v30  ;;  %v890_v31 = vpop.permute.xlu0 %889 }
 0x1ed   :  { %914 = vst.msk [vmem:[#allocation2] sm:$0xff] %vm913_vm7, %v890_v31  ;;  %v3412_v31 = vadd.s32 56, %v3315_v45 }
 0x1ef   :  { %v986_v36 = vpop.permute.xlu2 %985  ;;  %v1127_v12 = vand.u32 2, %v3412_v31 }
 0x1f3   :  { %v978_v35 = vpop.permute.xlu1 %977 }
 0x1f4   :  { %v976_v14 = vpop.permute.xlu0 %975 }
 0x1fb   :  { %v898_v37 = vpop.permute.xlu1 %897 }
 0x1fc   :  { %918 = vst.msk [vmem:[#allocation2 + $0x20] sm:$0xff] %vm913_vm7, %v898_v37  ;;  %v896_v39 = vpop.permute.xlu0 %895 }
 0x1fd   :  { %959 = vst.msk [vmem:[#allocation2 + $0x20] sm:$0xff] %vm954_vm8, %v3246_v60  ;;  %v1100_v60 = vand.u32 1, %v3327_v51 }
 0x1fe   :  { %917 = vst.msk [vmem:[#allocation2 + $0x18] sm:$0xff] %vm913_vm7, %v896_v39  ;;  %v1096_v39 = vand.u32 1, %v3315_v45 }
 0x1ff   :  { %v931_v40 = vpop.permute.xlu2 %930  ;;  %1000 = vst.msk [vmem:[#allocation2 + $0x20] sm:$0xff] %vm995_vm9, %v980_v28  ;;  %vm3369_vm2 = vcmp.eq.s32.totalorder %v1100_v60, 0 }
 0x200   :  { %955 = vst.msk [vmem:[#allocation2] sm:$0xff] %vm954_vm8, %v931_v40  ;;  %v5847_v15 = vsel %vm3369_vm2, 4294967295, %v5846_v15  ;;  %v1120_v40 = vand.u32 2, %v3315_v45 }
 0x201   :  { %996 = vst.msk [vmem:[#allocation2] sm:$0xff] %vm995_vm9, %v972_v22  ;;  %v1101_v22 = vand.u32 1, %v3348_v17 }
 0x202   :  { %5848 = vst [vmem:[#allocation8_spill] sm:$0xff] %v5847_v15 }
 0x203   :  { %v984_v47 = vpop.permute.xlu1 %983 }
 0x204   :  { %v982_v41 = vpop.permute.xlu0 %981 }
 0x205   :  { %1001 = vst.msk [vmem:[#allocation2 + $0x28] sm:$0xff] %vm995_vm9, %v982_v41 }
 0x207   :  { %v1017_v24 = vpop.permute.xlu2 %1016 }
 0x20c   :  { %v902_v46 = vpop.permute.xlu0 %901 }
 0x20d   :  { %920 = vst.msk [vmem:[#allocation2 + $0x30] sm:$0xff] %vm913_vm7, %v902_v46  ;;  %v5886_v46 = vmov 0 }
 0x20e   :  { %961 = vst.msk [vmem:[#allocation2 + $0x30] sm:$0xff] %vm954_vm8, %v3240_v52  ;;  %v1098_v52 = vand.u32 1, %v1056_v49  ;;  %v1103_v49 = vand.u32 1, %v3412_v31 }
 0x20f   :  { %1002 = vst.msk [vmem:[#allocation2 + $0x30] sm:$0xff] %vm995_vm9, %v984_v47  ;;  %v904_v57 = vpop.permute.xlu1 %903 }
 0x210   :  { %921 = vst.msk [vmem:[#allocation2 + $0x38] sm:$0xff] %vm913_vm7, %v904_v57  ;;  %vm3351_vm15 = vcmp.eq.s32.totalorder %v1098_v52, 0  ;;  %vm3403_vm7 = vcmp.eq.s32.totalorder %v1220_v2, 0 }
 0x211   :  { %962 = vst.msk [vmem:[#allocation2 + $0x38] sm:$0xff] %vm954_vm8, %v945_v27  ;;  %v5839_v0 = vsel %vm3351_vm15, 4294967295, %v5838_v0  ;;  %vm1138_vm6 = vmxor %vm3355_vm0, %vm3351_vm15  ;;  %v5854_v29 = vsel %vm3403_vm7, 4294967295, %v5853_v29 }
 0x212   :  { %1003 = vst.msk [vmem:[#allocation2 + $0x38] sm:$0xff] %vm995_vm9, %v986_v36  ;;  %v5881_v36 = vmov 0 }
 0x213   :  { %5840 = vst [vmem:[#allocation6_spill] sm:$0xff] %v5839_v0 }
 0x214   :  { %v1013_v32 = vpop.permute.xlu0 %1012 }
 0x215   :  { %1037 = vst.msk [vmem:[#allocation2] sm:$0xff] %vm5637_vm10, %v1013_v32 }
 0x217   :  { %v937_v42 = vpop.permute.xlu2 %936  ;;  %v1015_v19 = vpop.permute.xlu1 %1014 }
 0x218   :  { %958 = vst.msk [vmem:[#allocation2 + $0x18] sm:$0xff] %vm954_vm8, %v937_v42 }
 0x219   :  { %999 = vst.msk [vmem:[#allocation2 + $0x18] sm:$0xff] %vm995_vm9, %v978_v35  ;;  %v5855_v35 = vmov 0 }
 0x21c   :  { %v3334_v56 = vld [vmem:[#allocation2] sm:$0xff] }
 0x21d   :  { %v1062_v3 = vrot.slane %v3334_v56, 1  ;;  %v1079_v4 = vrot.slane %v3334_v56, 7 }
 0x21f   :  { %v1023_v43 = vpop.permute.xlu2 %1022  ;;  %v933_v44 = vpop.permute.xlu0 %932 }
 0x220   :  { %1042 = vst.msk [vmem:[#allocation2 + $0x28] sm:$0xff] %vm5637_vm10, %v1023_v43 }
 0x221   :  { %956 = vst.msk [vmem:[#allocation2 + $0x8] sm:$0xff] %vm954_vm8, %v933_v44  ;;  %v3456_v44 = vadd.s32 48, %v3315_v45 }
 0x222   :  { %997 = vst.msk [vmem:[#allocation2 + $0x8] sm:$0xff] %vm995_vm9, %v3261_v7 }
 0x223   :  { %1038 = vst.msk [vmem:[#allocation2 + $0x8] sm:$0xff] %vm5637_vm10, %v1015_v19 }
 0x227   :  { %v935_v48 = vpop.permute.xlu1 %934  ;;  %v1019_v38 = vpop.permute.xlu0 %1018  ;;  %v3373_v18 = vld [vmem:[#allocation2 + $0x28] sm:$0xff] }
 0x228   :  { %957 = vst.msk [vmem:[#allocation2 + $0x10] sm:$0xff] %vm954_vm8, %v935_v48  ;;  %vm3414_vm8 = vcmp.eq.s32.totalorder %v1221_v8, 0  ;;  %v1084_v58 = vrot.slane %v3373_v18, 7  ;;  %v5861_v48 = vmov 0  ;;  %v1102_v8 = vand.u32 1, %v3456_v44 }
 0x229   :  { %998 = vst.msk [vmem:[#allocation2 + $0x10] sm:$0xff] %vm995_vm9, %v976_v14  ;;  %v5856_v35 = vsel %vm3414_vm8, 4294967295, %v5855_v35  ;;  %v1067_v14 = vrot.slane %v3373_v18, 1  ;;  %vm5640_vm9 = vmmov 1  }
 0x22a   :  { %1039 = vst.msk [vmem:[#allocation2 + $0x10] sm:$0xff] %vm5637_vm10, %v1017_v24  ;;  %v3332_v53 = vld [vmem:[#allocation2 + $0x8] sm:$0xff] }
 0x22b   :  { %1040 = vst.msk [vmem:[#allocation2 + $0x18] sm:$0xff] %vm5637_vm10, %v1019_v38  ;;  %v1080_v63 = vrot.slane %v3332_v53, 7  ;;  %v1063_v10 = vrot.slane %v3332_v53, 1  ;;  %v1125_v38 = vand.u32 2, %v3348_v17 }
 0x22d   :  { %v1094_v27 = vsel %vm5639_vm11, %v1079_v4, %v1080_v63 }
 0x22f   :  { %v1021_v62 = vpop.permute.xlu1 %1020 }
 0x230   :  { %1041 = vst.msk [vmem:[#allocation2 + $0x20] sm:$0xff] %vm5637_vm10, %v1021_v62  ;;  %vm3425_vm10 = vmxor %vm1137_vm3, %vm5640_vm9 }
 0x231   :  { %v1047_v7 = vld [vmem:[#allocation2 + $0x10] sm:$0xff]  ;;  %vm3441_vm3 = vmxor %vm1138_vm6, %vm5640_vm9  ;;  %vm3464_vm9 = vcmp.eq.s32.totalorder %v1101_v22, 0  ;;  %vm5865_vm6 = vcmp.lt.s32.totalorder %v3315_v45, 7  ;;  %v1126_v22 = vand.u32 2, %v3456_v44 }
 0x232   :  { %v1064_v11 = vrot.slane %v1047_v7, 1  ;;  %v1081_v6 = vrot.slane %v1047_v7, 7  ;;  %v3367_v13 = vld [vmem:[#allocation2 + $0x18] sm:$0xff]  ;;  %v5862_v48 = vsel %vm3464_vm9, 4294967295, %v5861_v48 }
 0x233   :  { %v1065_v20 = vrot.slane %v3367_v13, 1  ;;  %v1082_v42 = vrot.slane %v3367_v13, 7  ;;  %5863 = vst [vmem:[#allocation9_spill] sm:$0xff] %v5862_v48 }
 0x234   :  { %v1076_v28 = vsel %vm5638_vm12, %v1063_v10, %v1064_v11  ;;  %v1093_v5 = vsel %vm5639_vm11, %v1080_v63, %v1081_v6  ;;  %vm5864_vm11 = vcmp.lt.s32.totalorder %v3315_v45, 1 }
 0x235   :  { %v1113_v23 = vsel %vm3337_vm13, %v1076_v28, %v1094_v27  ;;  %v1075_v30 = vsel %vm5638_vm12, %v1064_v11, %v1065_v20  ;;  %v1092_v50 = vsel %vm5864_vm11, %v1081_v6, %v1082_v42  ;;  %vm5867_vm11 = vmmov 1  }
 0x236   :  { %v1114_v37 = vsel %vm3351_vm15, %v1075_v30, %v1093_v5  ;;  %v1153_v41 = vmin.f32 %v3332_v53, %v1113_v23  ;;  %v1161_v47 = vmax.f32 %v3332_v53, %v1113_v23  ;;  %vm5866_vm15 = vmmov %vm5865_vm6  ;;  %vm3513_vm13 = vcmp.eq.s32.totalorder %v1096_v39, 0 }
 0x237   :  { %v1154_v24 = vmin.f32 %v1047_v7, %v1114_v37  ;;  %v1162_v57 = vmax.f32 %v1047_v7, %v1114_v37  ;;  %v3446_v32 = vld [vmem:[#allocation2 + $0x20] sm:$0xff]  ;;  %v5874_v7 = vmov 0  ;;  %v5876_v5 = vmov 0 }
 0x238   :  { %v1066_v19 = vrot.slane %v3446_v32, 1  ;;  %v1083_v43 = vrot.slane %v3446_v32, 7  ;;  %v3481_v54 = vsel %vm3425_vm10, %v1153_v41, %v1161_v47  ;;  %vm5872_vm10 = vcmask 1048448  }
 0x239   :  { %v3485_v60 = vsel %vm3441_vm3, %v1154_v24, %v1162_v57  ;;  %vm5873_vm3 = vmxor %vm3384_vm5, %vm3369_vm2  ;;  %v5875_v7 = vsel %vm3513_vm13, 4294967295, %v5874_v7  ;;  %v1194_v27 = vrot.slane %v3481_v54, 6  ;;  %v5878_v23 = vmov 0 }
 0x23a   :  { %v1073_v33 = vsel %vm5865_vm6, %v1066_v19, %v1067_v14  ;;  %v1074_v16 = vsel %vm5866_vm15, %v1065_v20, %v1066_v19  ;;  %v1025_v52 = vpop.permute.xlu0 %1024  ;;  %vm5868_vm6 = vmxor %vm3380_vm4, %vm3362_vm1  ;;  %vm5871_vm15 = vcmp.lt.s32.totalorder %v3315_v45, 1  ;;  %v1195_v28 = vrot.slane %v3485_v60, 6 }
 0x23b   :  { %vm3493_vm12 = vmxor %vm5868_vm6, %vm5867_vm11  ;;  %v1091_v61 = vsel %vm5871_vm15, %v1082_v42, %v1083_v43  ;;  %v1115_v62 = vsel %vm3362_vm1, %v1074_v16, %v1092_v50  ;;  %1043 = vst.msk [vmem:[#allocation2 + $0x30] sm:$0xff] %vm5872_vm10, %v1025_v52  ;;  %vm3524_vm15 = vcmp.eq.s32.totalorder %v1120_v40, 0  ;;  %vm3528_vm10 = vcmp.eq.s32.totalorder %v1125_v38, 0 }
 0x23c   :  { %vm1148_vm6 = vmxor %vm5873_vm3, %vm5867_vm11  ;;  %v1116_v63 = vsel %vm3369_vm2, %v1073_v33, %v1091_v61  ;;  %v1155_v2 = vmin.f32 %v3367_v13, %v1115_v62  ;;  %v1163_v6 = vmax.f32 %v3367_v13, %v1115_v62  ;;  %v5877_v5 = vsel %vm3524_vm15, 4294967295, %v5876_v5 }
 0x23d   :  { %v1156_v11 = vmin.f32 %v3446_v32, %v1116_v63  ;;  %v1164_v20 = vmax.f32 %v3446_v32, %v1116_v63  ;;  %v5879_v23 = vsel %vm3528_vm10, 4294967295, %v5878_v23  ;;  %vm1236_vm3 = vmxor %vm3403_vm7, %vm3355_vm0  ;;  %vm3540_vm2 = vcmp.eq.s32.totalorder %v1103_v49, 0 }
 0x23e   :  { %5880 = vst [vmem:[#allocation10_spill] sm:$0xff] %v5879_v23  ;;  %v1171_v13 = vsel %vm3493_vm12, %v1155_v2, %v1163_v6  ;;  %v5882_v36 = vsel %vm3540_vm2, 4294967295, %v5881_v36  ;;  %vm3544_vm1 = vcmp.eq.s32.totalorder %v1127_v12, 0  ;;  %v5884_v37 = vmov 0  ;;  %vm3565_vm14 = vmxor %vm1236_vm3, %vm5867_vm11 }
 0x23f   :  { %v3538_v30 = vsel %vm1148_vm6, %v1156_v11, %v1164_v20  ;;  %5883 = vst [vmem:[#allocation11_spill] sm:$0xff] %v5882_v36  ;;  %v5885_v37 = vsel %vm3544_vm1, 4294967295, %v5884_v37  ;;  %v1178_v39 = vrot.slane %v3485_v60, 2  ;;  %v1179_v40 = vrot.slane %v1171_v13, 2 }
 0x240   :  { %v1180_v41 = vrot.slane %v3538_v30, 2  ;;  %v1196_v47 = vrot.slane %v1171_v13, 6  ;;  %vm3554_vm6 = vcmp.eq.s32.totalorder %v1102_v8, 0  ;;  %vm3558_vm7 = vcmp.eq.s32.totalorder %v1126_v22, 0 }
 0x241   :  { %v5887_v46 = vsel %vm3554_vm6, 4294967295, %v5886_v46  ;;  %v5889_v24 = vmov 0  ;;  %v1218_v57 = vand.u32 4, %v3315_v45  ;;  %v1222_v42 = vand.u32 4, %v3327_v51 }
 0x242   :  { %5888 = vst [vmem:[#allocation12_spill] sm:$0xff] %v5887_v46  ;;  %v5890_v24 = vsel %vm3558_vm7, 4294967295, %v5889_v24  ;;  %vm5894_vm12 = vcmp.lt.s32.totalorder %v3315_v45, 2  ;;  %vm5895_vm5 = vcmp.lt.s32.totalorder %v3315_v45, 6  ;;  %v3583_v33 = vld [vmem:[#allocation2 + $0x30] sm:$0xff]  ;;  %v1027_v16 = vpop.permute.xlu1 %1026  ;;  %v1219_v61 = vand.u32 4, %v3318_v55 }
 0x243   :  { %5891 = vst [vmem:[#allocation13_spill] sm:$0xff] %v5890_v24  ;;  %v1207_v49 = vsel %vm5894_vm12, %v1194_v27, %v1195_v28  ;;  %v1188_v38 = vsel %vm5895_vm5, %v1179_v40, %v1180_v41  ;;  %vm5896_vm7 = vmmov %vm5895_vm5  ;;  %v1068_v25 = vrot.slane %v3583_v33, 1  ;;  %vm5898_vm5 = vcmask 1048448  }
 0x244   :  { %v1189_v51 = vsel %vm5896_vm7, %v1178_v39, %v1179_v40  ;;  %vm5897_vm3 = vmmov %vm5894_vm12  ;;  %1044 = vst.msk [vmem:[#allocation2 + $0x38] sm:$0xff] %vm5898_vm5, %v1027_v16  ;;  %vm5899_vm5 = vcmp.lt.s32.totalorder %v3315_v45, 1  ;;  %vm5900_vm12 = vcmp.lt.s32.totalorder %v3315_v45, 7  ;;  %v1223_v6 = vand.u32 4, %v3348_v17 }
 0x245   :  { %v1206_v50 = vsel %vm5897_vm3, %v1195_v28, %v1196_v47  ;;  %v1212_v52 = vsel %vm3355_vm0, %v1189_v51, %v1207_v49  ;;  %v1090_v11 = vsel %vm5899_vm5, %v1083_v43, %v1084_v58  ;;  %v1072_v55 = vsel %vm5900_vm12, %v1067_v14, %v1068_v25  ;;  %vm5901_vm3 = vmxor %vm3414_vm8, %vm3380_vm4 }
 0x246   :  { %v1213_v12 = vsel %vm3380_vm4, %v1188_v38, %v1206_v50  ;;  %v1252_v62 = vmin.f32 %v3485_v60, %v1212_v52  ;;  %v1260_v2 = vmax.f32 %v3485_v60, %v1212_v52  ;;  %v1224_v20 = vand.u32 4, %v3456_v44  ;;  %vm1245_vm7 = vmxor %vm5901_vm3, %vm5867_vm11 }
 0x247   :  { %v1253_v63 = vmin.f32 %v1171_v13, %v1213_v12  ;;  %v1261_v8 = vmax.f32 %v1171_v13, %v1213_v12  ;;  %v1197_v32 = vrot.slane %v3538_v30, 6  ;;  %v1085_v43 = vrot.slane %v3583_v33, 7  ;;  %vm5902_vm12 = vmxor %vm3528_vm10, %vm3464_vm9 }
 0x248   :  { %v1117_v22 = vsel %vm3464_vm9, %v1072_v55, %v1090_v11  ;;  %vm1149_vm5 = vmxor %vm5902_vm12, %vm5867_vm11  ;;  %v1225_v17 = vand.u32 4, %v3412_v31  ;;  %v5904_v28 = vmov 0  ;;  %vm5906_vm12 = vcmp.lt.s32.totalorder %v3315_v45, 7 }
 0x249   :  { %v1157_v14 = vmin.f32 %v3373_v18, %v1117_v22  ;;  %v1165_v44 = vmax.f32 %v3373_v18, %v1117_v22  ;;  %vm5903_vm3 = vmxor %vm3524_vm15, %vm3513_vm13  ;;  %v1077_v31 = vsel %vm5906_vm12, %v1062_v3, %v1063_v10  ;;  %vm3653_vm0 = vcmp.eq.s32.totalorder %v1222_v42, 0 }
 0x24a   :  { %vm3643_vm4 = vmxor %vm5903_vm3, %vm5867_vm11  ;;  %v5907_v13 = vmov 0  ;;  %v1177_v40 = vrot.slane %v3481_v54, 2  ;;  %v5911_v49 = vmov 0  ;;  %vm3668_vm8 = vcmp.eq.s32.totalorder %v1218_v57, 0 }
 0x24b   :  { %v5905_v28 = vsel %vm3643_vm4, 4294967295, %v5904_v28  ;;  %v5908_v13 = vsel %vm3653_vm0, 4294967295, %v5907_v13  ;;  %vm5910_vm3 = vmxor %vm3544_vm1, %vm3540_vm2  ;;  %v5913_v53 = vmov 0  ;;  %v3674_v10 = vsel %vm3565_vm14, %v1252_v62, %v1260_v2  ;;  %v1052_v52 = vld [vmem:[#allocation2 + $0x38] sm:$0xff] }
 0x24c   :  { %5909 = vst [vmem:[#allocation14_spill] sm:$0xff] %v5908_v13  ;;  %vm3664_vm9 = vmxor %vm5910_vm3, %vm5867_vm11  ;;  %v5914_v53 = vsel %vm3668_vm8, 4294967295, %v5913_v53  ;;  %v3676_v42 = vsel %vm1245_vm7, %v1253_v63, %v1261_v8  ;;  %vm5915_vm12 = vnez %v5890_v24  ;;  %v3682_v38 = vsel %vm1149_vm5, %v1157_v14, %v1165_v44 }
 0x24d   :  { %v5912_v49 = vsel %vm3664_vm9, 4294967295, %v5911_v49  ;;  %vm3684_vm3 = vcmp.eq.s32.totalorder %v1219_v61, 0  ;;  %v5916_v51 = vmov 0  ;;  %vm3688_vm1 = vcmp.eq.s32.totalorder %v1223_v6, 0 }
 0x24e   :  { %v5917_v51 = vsel %vm3684_vm3, 4294967295, %v5916_v51  ;;  %v5918_v57 = vmov 0  ;;  %vm3692_vm9 = vcmp.eq.s32.totalorder %v1224_v20, 0  ;;  %v5921_v19 = vmov 0 }
 0x24f   :  { %v5919_v57 = vsel %vm3688_vm1, 4294967295, %v5918_v57  ;;  %v5922_v19 = vsel %vm3692_vm9, 4294967295, %v5921_v19  ;;  %vm5924_vm14 = vcmp.lt.s32.totalorder %v3315_v45, 2  ;;  %vm5925_vm7 = vcmp.lt.s32.totalorder %v3315_v45, 1 }
 0x250   :  { %5920 = vst [vmem:[#allocation15_spill] sm:$0xff] %v5919_v57  ;;  %v1205_v50 = vsel %vm5924_vm14, %v1196_v47, %v1197_v32  ;;  %v1089_v16 = vsel %vm5925_vm7, %v1084_v58, %v1085_v43  ;;  %v1181_v12 = vrot.slane %v3682_v38, 2  ;;  %vm3705_vm5 = vcmp.eq.s32.totalorder %v1225_v17, 0  ;;  %vm5930_vm7 = vmxor %vm5915_vm12, %vm3554_vm6 }
 0x251   :  { %5923 = vst [vmem:[#allocation16_spill] sm:$0xff] %v5922_v19  ;;  %v5926_v61 = vmov 0  ;;  %vm5929_vm4 = vnez %v5852_v9  ;;  %v1069_v62 = vrot.slane %v1052_v52, 1  ;;  %v1086_v63 = vrot.slane %v1052_v52, 7 }
 0x252   :  { %v5927_v61 = vsel %vm3705_vm5, 4294967295, %v5926_v61  ;;  %v1276_v18 = vrot.slane %v3674_v10, 1  ;;  %v1277_v58 = vrot.slane %v3676_v42, 1  ;;  %vm3725_vm5 = vmxor %vm5930_vm7, %vm5867_vm11  ;;  %v5931_v47 = vmov 0 }
 0x253   :  { %5928 = vst [vmem:[#allocation17_spill] sm:$0xff] %v5927_v61  ;;  %v5932_v47 = vsel %vm3725_vm5, 4294967295, %v5931_v47  ;;  %vm5933_vm14 = vcmp.lt.s32.totalorder %v3315_v45, 6  ;;  %v1198_v8 = vrot.slane %v3682_v38, 6  ;;  %v1292_v11 = vrot.slane %v3674_v10, 7  ;;  %vm5938_vm12 = vmxor %vm3653_vm0, %vm5929_vm4 }
 0x254   :  { %v1187_v2 = vsel %vm5933_vm14, %v1180_v41, %v1181_v12  ;;  %v1293_v55 = vrot.slane %v3676_v42, 7  ;;  %vm5934_vm9 = vcmp.lt.s32.totalorder %v3315_v45, 7  ;;  %vm5936_vm5 = vcmp.lt.s32.totalorder %v3315_v45, 1 }
 0x255   :  { %v1071_v6 = vsel %vm5934_vm9, %v1068_v25, %v1069_v62  ;;  %vm5935_vm7 = vmmov %vm5934_vm9  ;;  %v1088_v22 = vsel %vm5936_vm5, %v1085_v43, %v1086_v63  ;;  %v5942_v14 = vmov 0  ;;  %vm5949_vm0 = vnez %v5922_v19 }
 0x256   :  { %v1078_v20 = vsel %vm5935_vm7, %v1069_v62, %v1062_v3  ;;  %vm5937_vm14 = vmmov %vm5936_vm5  ;;  %v1118_v17 = vsel %vm3554_vm6, %v1071_v6, %v1089_v16  ;;  %vm5944_vm7 = vnez %v5837_v34  ;;  %vm5948_vm6 = vnez %v5890_v24 }
 0x257   :  { %v1095_v41 = vsel %vm5937_vm14, %v1086_v63, %v1079_v4  ;;  %vm3756_vm9 = vmxor %vm5938_vm12, %vm5867_vm11  ;;  %v1119_v43 = vsel %vm3540_vm2, %v1078_v20, %v1088_v22  ;;  %v1214_v4 = vsel %vm5929_vm4, %v1187_v2, %v1205_v50  ;;  %v1158_v50 = vmin.f32 %v3583_v33, %v1118_v17 }
 0x258   :  { %v1112_v3 = vsel %vm3513_vm13, %v1077_v31, %v1095_v41  ;;  %vm5941_vm12 = vmxor %vm3668_vm8, %vm3524_vm15  ;;  %v1159_v31 = vmin.f32 %v1052_v52, %v1119_v43  ;;  %v1167_v63 = vmax.f32 %v1052_v52, %v1119_v43  ;;  %v1166_v16 = vmax.f32 %v3583_v33, %v1118_v17 }
 0x259   :  { %vm3774_vm5 = vmxor %vm5941_vm12, %vm5867_vm11  ;;  %v1152_v44 = vmin.f32 %v3334_v56, %v1112_v3  ;;  %v1160_v62 = vmax.f32 %v3334_v56, %v1112_v3  ;;  %v1254_v2 = vmin.f32 %v3538_v30, %v1214_v4  ;;  %v1262_v6 = vmax.f32 %v3538_v30, %v1214_v4 }
 0x25a   :  { %v5943_v14 = vsel %vm3774_vm5, 4294967295, %v5942_v14  ;;  %vm5945_vm4 = vcmp.lt.s32.totalorder %v3315_v45, 6  ;;  %vm5946_vm14 = vnez %v5905_v28  ;;  %vm5947_vm2 = vnez %v5912_v49 }
 0x25b   :  { %v1190_v56 = vsel %vm5945_vm4, %v1177_v40, %v1178_v39  ;;  %v1168_v52 = vsel %vm5946_vm14, %v1152_v44, %v1160_v62  ;;  %v1175_v33 = vsel %vm5947_vm2, %v1159_v31, %v1167_v63  ;;  %vm5950_vm5 = vcmp.lt.s32.totalorder %v3315_v45, 7 }
 0x25c   :  { %v3810_v60 = vsel %vm5950_vm5, %v1276_v18, %v1277_v58  ;;  %v1176_v39 = vrot.slane %v1168_v52, 2  ;;  %v1183_v20 = vrot.slane %v1175_v33, 2  ;;  %v1193_v28 = vrot.slane %v1168_v52, 6  ;;  %vm5955_vm5 = vmxor %vm3684_vm3, %vm5944_vm7 }
 0x25d   :  { %v1200_v22 = vrot.slane %v1175_v33, 6  ;;  %vm5951_vm4 = vnez %v5885_v37  ;;  %vm5952_vm2 = vnez %v5927_v61  ;;  %vm5953_vm8 = vnez %v5932_v47  ;;  %vm3828_vm13 = vmxor %vm5955_vm5, %vm5867_vm11 }
 0x25e   :  { %v1174_v49 = vsel %vm5953_vm8, %v1158_v50, %v1166_v16  ;;  %vm5954_vm12 = vcmp.lt.s32.totalorder %v3315_v45, 2  ;;  %v5956_v3 = vmov 0  ;;  %v3834_v43 = vsel %vm3756_vm9, %v1254_v2, %v1262_v6 }
 0x25f   :  { %v1204_v41 = vsel %vm5954_vm12, %v1197_v32, %v1198_v8  ;;  %v5957_v3 = vsel %vm3828_vm13, 4294967295, %v5956_v3  ;;  %vm5958_vm8 = vcmp.lt.s32.totalorder %v3315_v45, 1  ;;  %vm5959_vm12 = vcmp.lt.s32.totalorder %v3315_v45, 6 }
 0x260   :  { %v3842_v30 = vsel %vm5958_vm8, %v1292_v11, %v1293_v55  ;;  %v1191_v32 = vsel %vm5959_vm12, %v1176_v39, %v1177_v40  ;;  %vm5960_vm5 = vmmov %vm5959_vm12  ;;  %vm5961_vm14 = vcmp.lt.s32.totalorder %v3315_v45, 2  ;;  %v1199_v31 = vrot.slane %v1174_v49, 6 }
 0x261   :  { %v1192_v47 = vsel %vm5960_vm5, %v1183_v20, %v1176_v39  ;;  %v1208_v25 = vsel %vm5961_vm14, %v1193_v28, %v1194_v27  ;;  %vm5962_vm9 = vmmov %vm5961_vm14  ;;  %v1182_v27 = vrot.slane %v1174_v49, 2 }
 0x262   :  { %v1209_v17 = vsel %vm5962_vm9, %v1200_v22, %v1193_v28  ;;  %vm5963_vm8 = vmxor %vm3688_vm1, %vm3528_vm10  ;;  %v1211_v44 = vsel %vm5944_vm7, %v1190_v56, %v1208_v25  ;;  %vm5974_vm7 = vcmp.lt.s32.totalorder %v3315_v45, 2 }
 0x263   :  { %vm3860_vm13 = vmxor %vm5963_vm8, %vm5867_vm11  ;;  %v1210_v40 = vsel %vm3524_vm15, %v1191_v32, %v1209_v17  ;;  %v1251_v50 = vmin.f32 %v3481_v54, %v1211_v44  ;;  %v1259_v2 = vmax.f32 %v3481_v54, %v1211_v44  ;;  %vm5972_vm8 = vcmp.lt.s32.totalorder %v3315_v45, 6 }
 0x264   :  { %vm5966_vm14 = vmxor %vm5949_vm0, %vm5948_vm6  ;;  %v1250_v63 = vmin.f32 %v1168_v52, %v1210_v40  ;;  %v1258_v16 = vmax.f32 %v1168_v52, %v1210_v40  ;;  %v1185_v56 = vsel %vm5972_vm8, %v1182_v27, %v1183_v20  ;;  %v1202_v54 = vsel %vm5974_vm7, %v1199_v31, %v1200_v22 }
 0x265   :  { %vm3874_vm12 = vmxor %vm5966_vm14, %vm5867_vm11 }
 0x266   :  { %vm5969_vm5 = vmxor %vm5952_vm2, %vm5951_vm4  ;;  %vm5976_vm2 = vnez %v5875_v7 }
 0x267   :  { %vm3886_vm9 = vmxor %vm5969_vm5, %vm5867_vm11  ;;  %vm5977_vm5 = vnez %v5914_v53 }
 0x268   :  { %vm5973_vm14 = vmmov %vm5972_vm8  ;;  %vm5978_vm8 = vnez %v5943_v14 }
 0x269   :  { %v1186_v52 = vsel %vm5973_vm14, %v1181_v12, %v1182_v27  ;;  %vm5975_vm15 = vmmov %vm5974_vm7  ;;  %v1217_v12 = vsel %vm5951_vm4, %v1192_v47, %v1202_v54  ;;  %v3912_v22 = vsel %vm5978_vm8, %v1250_v63, %v1258_v16  ;;  %vm5980_vm14 = vnez %v5839_v0 }
 0x26a   :  { %v1203_v39 = vsel %vm5975_vm15, %v1198_v8, %v1199_v31  ;;  %v1215_v28 = vsel %vm3528_vm10, %v1186_v52, %v1204_v41  ;;  %vm5979_vm15 = vnez %v5835_v59  ;;  %v1257_v25 = vmin.f32 %v1175_v33, %v1217_v12  ;;  %vm5999_vm0 = vmxor %vm5977_vm5, %vm5976_vm2 }
 0x26b   :  { %v1216_v20 = vsel %vm5948_vm6, %v1185_v56, %v1203_v39  ;;  %v1255_v8 = vmin.f32 %v3682_v38, %v1215_v28  ;;  %v1263_v41 = vmax.f32 %v3682_v38, %v1215_v28  ;;  %v1265_v14 = vmax.f32 %v1175_v33, %v1217_v12 }
 0x26c   :  { %v1256_v32 = vmin.f32 %v1174_v49, %v1216_v20  ;;  %v1264_v47 = vmax.f32 %v1174_v49, %v1216_v20  ;;  %vm5982_vm8 = vnez %v5957_v3  ;;  %v1274_v40 = vrot.slane %v3912_v22, 1 }
 0x26d   :  { %v3926_v17 = vsel %vm5982_vm8, %v1251_v50, %v1259_v2  ;;  %vm5983_vm7 = vnez %v5844_v26  ;;  %v3935_v38 = vsel %vm3860_vm13, %v1255_v8, %v1263_v41  ;;  %v1278_v49 = vrot.slane %v3834_v43, 1 }
 0x26e   :  { %v1275_v44 = vrot.slane %v3926_v17, 1  ;;  %v1290_v33 = vrot.slane %v3912_v22, 7  ;;  %vm5985_vm8 = vnez %v5847_v15  ;;  %v3946_v3 = vsel %vm3874_vm12, %v1256_v32, %v1264_v47 }
 0x26f   :  { %v3950_v4 = vsel %vm3886_vm9, %v1257_v25, %v1265_v14  ;;  %v1279_v27 = vrot.slane %v3935_v38, 1  ;;  %v1291_v31 = vrot.slane %v3926_v17, 7  ;;  %v1280_v63 = vrot.slane %v3946_v3, 1 }
 0x270   :  { %v1281_v50 = vrot.slane %v3950_v4, 1  ;;  %vm5988_vm12 = vcmp.lt.s32.totalorder %v3315_v45, 7  ;;  %v1294_v56 = vrot.slane %v3834_v43, 7  ;;  %vm5994_vm13 = vnez %v5927_v61 }
 0x271   :  { %v1285_v62 = vsel %vm5988_vm12, %v1277_v58, %v1278_v49  ;;  %vm5989_vm9 = vmmov %vm5988_vm12  ;;  %v1295_v58 = vrot.slane %v3935_v38, 7  ;;  %vm5993_vm12 = vnez %v5882_v36  ;;  %v1296_v39 = vrot.slane %v3946_v3, 7 }
 0x272   :  { %v1287_v16 = vsel %vm5989_vm9, %v1275_v44, %v1276_v18  ;;  %vm5991_vm6 = vmmov %vm5989_vm9  ;;  %v1297_v20 = vrot.slane %v3950_v4, 7  ;;  %v1309_v47 = vsel %vm5983_vm7, %v1285_v62, %v3842_v30  ;;  %v6049_v62 = vmov 0 }
 0x273   :  { %v1284_v2 = vsel %vm5991_vm6, %v1278_v49, %v1279_v27  ;;  %vm5992_vm1 = vmmov %vm5991_vm6 }
 0x274   :  { %v1288_v6 = vsel %vm5992_vm1, %v1274_v40, %v1275_v44  ;;  %vm5995_vm10 = vmmov %vm5992_vm1 }
 0x275   :  { %v1282_v18 = vsel %vm5995_vm10, %v1280_v63, %v1281_v50  ;;  %vm5996_vm4 = vmmov %vm5992_vm1  ;;  %vm6002_vm10 = vcmp.lt.s32.totalorder %v3315_v45, 1 }
 0x276   :  { %v1283_v52 = vsel %vm5996_vm4, %v1279_v27, %v1280_v63  ;;  %vm5997_vm6 = vmmov %vm5992_vm1  ;;  %vm5998_vm1 = vmmov 1   ;;  %v1300_v12 = vsel %vm6002_vm10, %v1294_v56, %v1295_v58 }
 0x277   :  { %v1289_v54 = vsel %vm5997_vm6, %v1281_v50, %v1274_v40  ;;  %vm3995_vm11 = vmxor %vm5999_vm0, %vm5998_vm1 }
 0x278   :  { %vm6003_vm4 = vmmov %vm6002_vm10 }
 0x279   :  { %v1301_v8 = vsel %vm6003_vm4, %v1293_v55, %v1294_v56  ;;  %vm6004_vm6 = vmmov %vm6003_vm4  ;;  %v1304_v55 = vsel %vm6003_vm4, %v1290_v33, %v1291_v31  ;;  %v1298_v40 = vsel %vm6003_vm4, %v1296_v39, %v1297_v20  ;;  %v1333_v56 = vmin.f32 %v3676_v42, %v1309_v47 }
 0x27a   :  { %v1303_v32 = vsel %vm6004_vm6, %v1291_v31, %v1292_v11  ;;  %vm6005_vm0 = vmxor %vm3684_vm3, %vm5979_vm15  ;;  %vm6009_vm6 = vnez %v5854_v29  ;;  %v1307_v30 = vsel %vm5979_vm15, %v1287_v16, %v1304_v55  ;;  %v1310_v44 = vsel %vm5985_vm8, %v1284_v2, %v1301_v8 }
 0x27b   :  { %vm4016_vm9 = vmxor %vm6005_vm0, %vm5998_vm1  ;;  %v1308_v11 = vsel %vm5980_vm14, %v3810_v60, %v1303_v32  ;;  %v1313_v63 = vsel %vm5993_vm12, %v1289_v54, %v1298_v40  ;;  %vm6024_vm15 = vnez %v5919_v57  ;;  %v1331_v2 = vmin.f32 %v3926_v17, %v1307_v30 }
 0x27c   :  { %vm6008_vm10 = vmmov %vm6003_vm4  ;;  %v1339_v8 = vmax.f32 %v3926_v17, %v1307_v30  ;;  %v1340_v32 = vmax.f32 %v3674_v10, %v1308_v11  ;;  %v1342_v55 = vmax.f32 %v3834_v43, %v1310_v44  ;;  %v1345_v36 = vmax.f32 %v3950_v4, %v1313_v63 }
 0x27d   :  { %v1299_v41 = vsel %vm6008_vm10, %v1295_v58, %v1296_v39  ;;  %vm6010_vm0 = vmxor %vm6009_vm6, %vm5980_vm14  ;;  %vm6020_vm10 = vnez %v5908_v13  ;;  %v1337_v39 = vmin.f32 %v3950_v4, %v1313_v63  ;;  %v6042_v30 = vmov 0 }
 0x27e   :  { %vm4036_vm3 = vmxor %vm6010_vm0, %vm5998_vm1  ;;  %vm6014_vm0 = vnez %v5856_v35 }
 0x27f   :  { %vm6013_vm5 = vmmov %vm6003_vm4  ;;  %vm6019_vm4 = vnez %v5887_v46 }
 0x280   :  { %v1305_v60 = vsel %vm6013_vm5, %v1297_v20, %v1290_v33  ;;  %vm6015_vm14 = vmxor %vm6014_vm0, %vm5983_vm7  ;;  %vm6018_vm5 = vnez %v5862_v48  ;;  %v1312_v31 = vsel %vm6019_vm4, %v1282_v18, %v1299_v41  ;;  %v1334_v18 = vmin.f32 %v3834_v43, %v1310_v44 }
 0x281   :  { %vm4055_vm6 = vmxor %vm6015_vm14, %vm5998_vm1  ;;  %v1306_v27 = vsel %vm5976_vm2, %v1288_v6, %v1305_v60  ;;  %v1311_v33 = vsel %vm6018_vm5, %v1283_v52, %v1300_v12  ;;  %v1332_v6 = vmin.f32 %v3674_v10, %v1308_v11  ;;  %v1336_v54 = vmin.f32 %v3946_v3, %v1312_v31 }
 0x282   :  { %vm6021_vm14 = vmxor %vm6020_vm10, %vm5985_vm8  ;;  %v1330_v16 = vmin.f32 %v3912_v22, %v1306_v27  ;;  %v1335_v52 = vmin.f32 %v3935_v38, %v1311_v33  ;;  %v1338_v12 = vmax.f32 %v3912_v22, %v1306_v27  ;;  %v1341_v41 = vmax.f32 %v3676_v42, %v1309_v47 }
 0x283   :  { %vm4073_vm7 = vmxor %vm6021_vm14, %vm5998_vm1  ;;  %vm6028_vm14 = vnez %v5922_v19  ;;  %v1343_v40 = vmax.f32 %v3935_v38, %v1311_v33  ;;  %v1344_v60 = vmax.f32 %v3946_v3, %v1312_v31  ;;  %v1347_v22 = vsel %vm4016_vm9, %v1331_v2, %v1339_v8 }
 0x284   :  { %vm6025_vm2 = vmxor %vm6024_vm15, %vm6018_vm5  ;;  %v1346_v48 = vsel %vm3995_vm11, %v1330_v16, %v1338_v12  ;;  %v1348_v17 = vsel %vm4036_vm3, %v1332_v6, %v1340_v32  ;;  %v1349_v10 = vsel %vm4055_vm6, %v1333_v56, %v1341_v41  ;;  %v1350_v43 = vsel %vm4073_vm7, %v1334_v18, %v1342_v55 }
 0x285   :  { %vm4083_vm0 = vmxor %vm6025_vm2, %vm5998_vm1  ;;  %vm6038_vm11 = vnez %v5854_v29  ;;  %v1354_v25 = vrot.slane %v1346_v48, 4  ;;  %v1355_v11 = vrot.slane %v1347_v22, 4  ;;  %v1356_v47 = vrot.slane %v1348_v17, 4 }
 0x286   :  { %vm6029_vm8 = vmxor %vm6028_vm14, %vm6019_vm4  ;;  %v1351_v38 = vsel %vm4083_vm0, %v1335_v52, %v1343_v40  ;;  %v1357_v14 = vrot.slane %v1349_v10, 4  ;;  %vm6041_vm7 = vnez %v5908_v13  ;;  %v1358_v44 = vrot.slane %v1350_v43, 4 }
 0x287   :  { %vm4097_vm10 = vmxor %vm6029_vm8, %vm5998_vm1  ;;  %vm6035_vm8 = vnez %v5914_v53  ;;  %v6044_v33 = vmov 0  ;;  %v6059_v20 = vmov 0  ;;  %v6062_v55 = vmov 0 }
 0x288   :  { %vm6032_vm2 = vmxor %vm5994_vm13, %vm5993_vm12  ;;  %v1352_v3 = vsel %vm4097_vm10, %v1336_v54, %v1344_v60  ;;  %vm6046_vm10 = vcmp.lt.s32.totalorder %v3315_v45, 4  ;;  %v6065_v60 = vmov 0 }
 0x289   :  { %vm4111_vm5 = vmxor %vm6032_vm2, %vm5998_vm1  ;;  %v1360_v49 = vrot.slane %v1352_v3, 4  ;;  %v1367_v31 = vsel %vm6046_vm10, %v1356_v47, %v1357_v14 }
 0x28a   :  { %vm4134_vm2 = vmxor %vm5998_vm1, %vm6035_vm8  ;;  %v1353_v4 = vsel %vm4111_vm5, %v1337_v39, %v1345_v36  ;;  %v1359_v36 = vrot.slane %v1351_v38, 4 }
 0x28b   :  { %vm4149_vm3 = vmxor %vm5998_vm1, %vm6038_vm11  ;;  %v1361_v27 = vrot.slane %v1353_v4, 4 }
 0x28c   :  { %vm4156_vm9 = vmxor %vm5998_vm1, %vm6041_vm7 }
 0x28d   :  { %v6043_v30 = vsel %vm4156_vm9, 4294967295, %v6042_v30  ;;  %vm4163_vm6 = vmxor %vm5998_vm1, %vm6028_vm14 }
 0x28e   :  { %v6045_v33 = vsel %vm4163_vm6, 4294967295, %v6044_v33  ;;  %vm6047_vm0 = vmmov %vm6046_vm10 }
 0x28f   :  { %v1368_v63 = vsel %vm6047_vm0, %v1355_v11, %v1356_v47  ;;  %vm6048_vm5 = vmmov %vm6047_vm0  ;;  %v1366_v56 = vsel %vm6047_vm0, %v1357_v14, %v1358_v44 }
 0x290   :  { %v1369_v50 = vsel %vm6048_vm5, %v1354_v25, %v1355_v11  ;;  %vm4176_vm12 = vmxor %vm4134_vm2, %vm5998_vm1  ;;  %vm6054_vm5 = vnez %v5917_v51  ;;  %v1373_v54 = vsel %vm6038_vm11, %v1367_v31, %v1368_v63  ;;  %v6068_v11 = vmov 0 }
 0x291   :  { %v6050_v62 = vsel %vm4176_vm12, 4294967295, %v6049_v62  ;;  %vm6051_vm4 = vmmov %vm6047_vm0  ;;  %v1372_v52 = vsel %vm6054_vm5, %v1368_v63, %v1369_v50  ;;  %v1421_v63 = vmax.f32 %v1348_v17, %v1373_v54 }
 0x292   :  { %v1363_v16 = vsel %vm6051_vm4, %v1360_v49, %v1361_v27  ;;  %vm6052_vm6 = vmmov %vm6047_vm0  ;;  %vm6058_vm4 = vnez %v5856_v35  ;;  %v1412_v28 = vmin.f32 %v1347_v22, %v1372_v52 }
 0x293   :  { %v1364_v2 = vsel %vm6052_vm6, %v1359_v36, %v1360_v49  ;;  %vm6053_vm10 = vmmov %vm6047_vm0  ;;  %v1374_v39 = vsel %vm6058_vm4, %v1366_v56, %v1367_v31  ;;  %v1420_v31 = vmax.f32 %v1347_v22, %v1372_v52 }
 0x294   :  { %v1365_v6 = vsel %vm6053_vm10, %v1358_v44, %v1359_v36  ;;  %vm4191_vm9 = vmxor %vm6054_vm5, %vm5998_vm1  ;;  %v1377_v41 = vsel %vm6028_vm14, %v1363_v16, %v1364_v2  ;;  %v1414_v47 = vmin.f32 %v1349_v10, %v1374_v39 }
 0x295   :  { %vm6057_vm2 = vmmov %vm6047_vm0  ;;  %v1375_v8 = vsel %vm6041_vm7, %v1365_v6, %v1366_v56  ;;  %v1376_v32 = vsel %vm6024_vm15, %v1364_v2, %v1365_v6  ;;  %v1417_v36 = vmin.f32 %v1352_v3, %v1377_v41  ;;  %v1425_v56 = vmax.f32 %v1352_v3, %v1377_v41 }
 0x296   :  { %v1370_v18 = vsel %vm6057_vm2, %v1361_v27, %v1354_v25  ;;  %vm4206_vm6 = vmxor %vm4149_vm3, %vm5998_vm1  ;;  %vm6064_vm3 = vnez %v6043_v30  ;;  %v1413_v25 = vmin.f32 %v1348_v17, %v1373_v54  ;;  %v1415_v14 = vmin.f32 %v1350_v43, %v1375_v8 }
 0x297   :  { %v6060_v20 = vsel %vm4206_vm6, 4294967295, %v6059_v20  ;;  %v1371_v12 = vsel %vm6035_vm8, %v1369_v50, %v1370_v18  ;;  %vm4221_vm10 = vmxor %vm6058_vm4, %vm5998_vm1  ;;  %v1378_v40 = vsel %vm5994_vm13, %v1370_v18, %v1363_v16  ;;  %v1416_v44 = vmin.f32 %v1351_v38, %v1376_v32 }
 0x298   :  { %6061 = vst [vmem:[#allocation18_spill] sm:$0xff] %v6060_v20  ;;  %v6063_v55 = vsel %vm4221_vm10, 4294967295, %v6062_v55  ;;  %vm4230_vm0 = vmxor %vm6064_vm3, %vm5998_vm1  ;;  %v1411_v42 = vmin.f32 %v1346_v48, %v1371_v12  ;;  %vm6071_vm3 = vnez %v6045_v33  ;;  %v6072_v30 = vmov 0 }
 0x299   :  { %v6066_v60 = vsel %vm4230_vm0, 4294967295, %v6065_v60  ;;  %vm4237_vm2 = vmxor %vm6024_vm15, %vm5998_vm1  ;;  %v1418_v49 = vmin.f32 %v1353_v4, %v1378_v40  ;;  %v1419_v27 = vmax.f32 %v1346_v48, %v1371_v12  ;;  %v6075_v50 = vmov 0 }
 0x29a   :  { %6067 = vst [vmem:[#allocation19_spill] sm:$0xff] %v6066_v60  ;;  %v6069_v11 = vsel %vm4237_vm2, 4294967295, %v6068_v11  ;;  %vm4244_vm14 = vmxor %vm6071_vm3, %vm5998_vm1  ;;  %v1422_v16 = vmax.f32 %v1349_v10, %v1374_v39  ;;  %v1423_v2 = vmax.f32 %v1350_v43, %v1375_v8  ;;  %v1424_v6 = vmax.f32 %v1351_v38, %v1376_v32 }
 0x29b   :  { %6070 = vst [vmem:[#allocation20_spill] sm:$0xff] %v6069_v11  ;;  %v6073_v30 = vsel %vm4244_vm14, 4294967295, %v6072_v30  ;;  %vm4251_vm11 = vmxor %vm5994_vm13, %vm5998_vm1  ;;  %v1426_v33 = vmax.f32 %v1353_v4, %v1378_v40  ;;  %v4257_v18 = vsel %vm4176_vm12, %v1411_v42, %v1419_v27  ;;  %v4261_v48 = vsel %vm4191_vm9, %v1412_v28, %v1420_v31 }
 0x29c   :  { %6074 = vst [vmem:[#allocation21_spill] sm:$0xff] %v6073_v30  ;;  %v6076_v50 = vsel %vm4251_vm11, 4294967295, %v6075_v50  ;;  %v4265_v22 = vsel %vm4206_vm6, %v1413_v25, %v1421_v63  ;;  %v4269_v17 = vsel %vm4221_vm10, %v1414_v47, %v1422_v16  ;;  %v4273_v10 = vsel %vm4230_vm0, %v1415_v14, %v1423_v2 }
 0x29d   :  { %v4277_v43 = vsel %vm4237_vm2, %v1416_v44, %v1424_v6  ;;  %v4281_v38 = vsel %vm4244_vm14, %v1417_v36, %v1425_v56  ;;  %v4285_v3 = vsel %vm4251_vm11, %v1418_v49, %v1426_v33  ;;  %v1435_v4 = vrot.slane %v4257_v18, 2 }
 0x29e   :  { %v1436_v58 = vrot.slane %v4261_v48, 2  ;;  %v1437_v52 = vrot.slane %v4265_v22, 2  ;;  %v1438_v54 = vrot.slane %v4269_v17, 2  ;;  %v1439_v39 = vrot.slane %v4273_v10, 2 }
 0x29f   :  { %v1440_v12 = vrot.slane %v4277_v43, 2  ;;  %v1441_v8 = vrot.slane %v4281_v38, 2  ;;  %v1442_v32 = vrot.slane %v4285_v3, 2  ;;  %vm6077_vm9 = vcmp.lt.s32.totalorder %v3315_v45, 6 }
 0x2a0   :  { %v1448_v41 = vsel %vm6077_vm9, %v1436_v58, %v1437_v52  ;;  %v1451_v40 = vrot.slane %v4257_v18, 6  ;;  %vm6078_vm3 = vnez %v5877_v5  ;;  %vm6081_vm2 = vmmov %vm6077_vm9  ;;  %vm6085_vm0 = vnez %v5842_v1 }
 0x2a1   :  { %vm4301_vm14 = vmxor %vm5998_vm1, %vm6078_vm3  ;;  %v1444_v28 = vsel %vm6081_vm2, %v1440_v12, %v1441_v8  ;;  %v1447_v49 = vsel %vm6081_vm2, %v1437_v52, %v1438_v54  ;;  %v1452_v27 = vrot.slane %v4261_v48, 6  ;;  %v1453_v31 = vrot.slane %v4265_v22, 6 }
 0x2a2   :  { %vm6082_vm6 = vmmov %vm6081_vm2  ;;  %v1454_v16 = vrot.slane %v4269_v17, 6  ;;  %v1455_v2 = vrot.slane %v4273_v10, 6  ;;  %v1456_v6 = vrot.slane %v4277_v43, 6  ;;  %v1457_v56 = vrot.slane %v4281_v38, 6 }
 0x2a3   :  { %v1445_v25 = vsel %vm6082_vm6, %v1439_v39, %v1440_v12  ;;  %vm6083_vm11 = vmmov %vm6081_vm2  ;;  %v1458_v52 = vrot.slane %v4285_v3, 6  ;;  %vm6095_vm13 = vcmp.lt.s32.totalorder %v3315_v45, 2  ;;  %v6097_v12 = vmov 0 }
 0x2a4   :  { %v1446_v47 = vsel %vm6083_vm11, %v1438_v54, %v1439_v39  ;;  %vm6084_vm9 = vmmov %vm6081_vm2  ;;  %vm6089_vm11 = vnez %v5852_v9  ;;  %v1464_v54 = vsel %vm6095_vm13, %v1452_v27, %v1453_v31  ;;  %v6113_v44 = vmov 0 }
 0x2a5   :  { %v1449_v14 = vsel %vm6084_vm9, %v1435_v4, %v1436_v58  ;;  %vm4316_vm10 = vmxor %vm5998_vm1, %vm6085_vm0  ;;  %v1450_v58 = vsel %vm6081_vm2, %v1442_v32, %v1435_v4 }
 0x2a6   :  { %vm6088_vm12 = vmmov %vm6081_vm2 }
 0x2a7   :  { %v1443_v36 = vsel %vm6088_vm12, %v1441_v8, %v1442_v32  ;;  %vm4329_vm6 = vmxor %vm5998_vm1, %vm6089_vm11  ;;  %vm6092_vm12 = vnez %v5890_v24 }
 0x2a8   :  { %vm4340_vm9 = vmxor %vm5998_vm1, %vm6092_vm12 }
 0x2a9   :  { %vm6096_vm15 = vmmov %vm6095_vm13 }
 0x2aa   :  { %v1465_v39 = vsel %vm6096_vm15, %v1451_v40, %v1452_v27  ;;  %vm4354_vm7 = vmxor %vm4301_vm14, %vm5998_vm1  ;;  %vm6103_vm15 = vnez %v5837_v34 }
 0x2ab   :  { %v6098_v12 = vsel %vm4354_vm7, 4294967295, %v6097_v12  ;;  %vm6099_vm4 = vmmov %vm6095_vm13 }
 0x2ac   :  { %v1460_v8 = vsel %vm6099_vm4, %v1456_v6, %v1457_v56  ;;  %vm6100_vm2 = vmmov %vm6099_vm4 }
 0x2ad   :  { %v1461_v4 = vsel %vm6100_vm2, %v1455_v2, %v1456_v6  ;;  %vm6101_vm8 = vmmov %vm6100_vm2  ;;  %v1468_v6 = vsel %vm6103_vm15, %v1448_v41, %v1465_v39 }
 0x2ae   :  { %v1462_v32 = vsel %vm6101_vm8, %v1454_v16, %v1455_v2  ;;  %vm6102_vm13 = vmmov %vm6100_vm2  ;;  %v1469_v2 = vsel %vm6085_vm0, %v1447_v49, %v1464_v54  ;;  %v1473_v49 = vsel %vm6092_vm12, %v1443_v36, %v1460_v8 }
 0x2af   :  { %v1463_v30 = vsel %vm6102_vm13, %v1453_v31, %v1454_v16  ;;  %vm4369_vm5 = vmxor %vm6103_vm15, %vm5998_vm1  ;;  %v6108_v31 = vmov 0  ;;  %vm6112_vm13 = vnez %v5879_v23  ;;  %v1497_v54 = vmin.f32 %v4281_v38, %v1473_v49 }
 0x2b0   :  { %vm6106_vm14 = vmmov %vm6100_vm2  ;;  %v1472_v41 = vsel %vm6112_vm13, %v1444_v28, %v1461_v4  ;;  %v1500_v4 = vmax.f32 %v4261_v48, %v1468_v6  ;;  %v1501_v33 = vmax.f32 %v4265_v22, %v1469_v2  ;;  %v1505_v23 = vmax.f32 %v4281_v38, %v1473_v49 }
 0x2b1   :  { %v1459_v27 = vsel %vm6106_vm14, %v1457_v56, %v1458_v52  ;;  %vm6107_vm4 = vmmov %vm6100_vm2  ;;  %vm6111_vm2 = vnez %v5850_v21  ;;  %v1504_v24 = vmax.f32 %v4277_v43, %v1472_v41 }
 0x2b2   :  { %v1466_v11 = vsel %vm6107_vm4, %v1458_v52, %v1451_v40  ;;  %vm4384_vm8 = vmxor %vm4316_vm10, %vm5998_vm1  ;;  %v1470_v56 = vsel %vm6111_vm2, %v1446_v47, %v1463_v30  ;;  %v1471_v40 = vsel %vm6089_vm11, %v1445_v25, %v1462_v32  ;;  %vm6115_vm10 = vnez %v5885_v37 }
 0x2b3   :  { %v6109_v31 = vsel %vm4384_vm8, 4294967295, %v6108_v31  ;;  %v1467_v16 = vsel %vm6078_vm3, %v1449_v14, %v1466_v11  ;;  %vm4399_vm14 = vmxor %vm6111_vm2, %vm5998_vm1  ;;  %v1474_v11 = vsel %vm6115_vm10, %v1450_v58, %v1459_v27  ;;  %v6116_v30 = vmov 0 }
 0x2b4   :  { %6110 = vst [vmem:[#allocation22_spill] sm:$0xff] %v6109_v31  ;;  %v6114_v44 = vsel %vm4399_vm14, 4294967295, %v6113_v44  ;;  %vm4410_vm4 = vmxor %vm4329_vm6, %vm5998_vm1  ;;  %v1491_v28 = vmin.f32 %v4257_v18, %v1467_v16  ;;  %v1492_v25 = vmin.f32 %v4261_v48, %v1468_v6  ;;  %v6119_v47 = vmov 0 }
 0x2b5   :  { %v6117_v30 = vsel %vm4410_vm4, 4294967295, %v6116_v30  ;;  %vm4419_vm11 = vmxor %vm6112_vm13, %vm5998_vm1  ;;  %v1493_v14 = vmin.f32 %v4265_v22, %v1469_v2  ;;  %v1494_v36 = vmin.f32 %v4269_v17, %v1470_v56  ;;  %v1495_v63 = vmin.f32 %v4273_v10, %v1471_v40 }
 0x2b6   :  { %6118 = vst [vmem:[#allocation23_spill] sm:$0xff] %v6117_v30  ;;  %v6120_v47 = vsel %vm4419_vm11, 4294967295, %v6119_v47  ;;  %v1496_v58 = vmin.f32 %v4277_v43, %v1472_v41  ;;  %vm4430_vm6 = vmxor %vm4340_vm9, %vm5998_vm1  ;;  %v6122_v52 = vmov 0  ;;  %v1498_v39 = vmin.f32 %v4285_v3, %v1474_v11 }
 0x2b7   :  { %6121 = vst [vmem:[#allocation24_spill] sm:$0xff] %v6120_v47  ;;  %v6123_v52 = vsel %vm4430_vm6, 4294967295, %v6122_v52  ;;  %v1499_v8 = vmax.f32 %v4257_v18, %v1467_v16  ;;  %vm4441_vm12 = vmxor %vm6115_vm10, %vm5998_vm1  ;;  %v6125_v32 = vmov 0  ;;  %v1502_v27 = vmax.f32 %v4269_v17, %v1470_v56 }
 0x2b8   :  { %6124 = vst [vmem:[#allocation25_spill] sm:$0xff] %v6123_v52  ;;  %v6126_v32 = vsel %vm4441_vm12, 4294967295, %v6125_v32  ;;  %v1503_v20 = vmax.f32 %v4273_v10, %v1471_v40  ;;  %v1506_v18 = vmax.f32 %v4285_v3, %v1474_v11  ;;  %v4457_v6 = vsel %vm4369_vm5, %v1492_v25, %v1500_v4 }
 0x2b9   :  { %6127 = vst [vmem:[#allocation26_spill] sm:$0xff] %v6126_v32  ;;  %v4453_v48 = vsel %vm4354_vm7, %v1491_v28, %v1499_v8  ;;  %v4461_v22 = vsel %vm4384_vm8, %v1493_v14, %v1501_v33  ;;  %v4465_v17 = vsel %vm4399_vm14, %v1494_v36, %v1502_v27  ;;  %v4473_v43 = vsel %vm4419_vm11, %v1496_v58, %v1504_v24 }
 0x2ba   :  { %v4469_v10 = vsel %vm4410_vm4, %v1495_v63, %v1503_v20  ;;  %v4477_v38 = vsel %vm4430_vm6, %v1497_v54, %v1505_v23  ;;  %v4481_v3 = vsel %vm4441_vm12, %v1498_v39, %v1506_v18  ;;  %v1515_v42 = vrot.slane %v4453_v48, 1 }
 0x2bb   :  { %v1516_v2 = vrot.slane %v4457_v6, 1  ;;  %v1517_v16 = vrot.slane %v4461_v22, 1  ;;  %v1518_v20 = vrot.slane %v4465_v17, 1  ;;  %v1519_v56 = vrot.slane %v4469_v10, 1 }
 0x2bc   :  { %v1520_v24 = vrot.slane %v4473_v43, 1  ;;  %v1521_v40 = vrot.slane %v4477_v38, 1  ;;  %v1522_v23 = vrot.slane %v4481_v3, 1  ;;  %v1531_v41 = vrot.slane %v4453_v48, 7 }
 0x2bd   :  { %vm6128_vm5 = vnez %v5875_v7  ;;  %vm6131_vm6 = vcmp.lt.s32.totalorder %v3315_v45, 7  ;;  %vm6135_vm4 = vnez %v5839_v0  ;;  %v1532_v39 = vrot.slane %v4457_v6, 7 }
 0x2be   :  { %vm4495_vm9 = vmxor %vm5998_vm1, %vm6128_vm5  ;;  %v1525_v11 = vsel %vm6131_vm6, %v1519_v56, %v1520_v24  ;;  %v1524_v58 = vsel %vm6131_vm6, %v1520_v24, %v1521_v40  ;;  %v1533_v4 = vrot.slane %v4461_v22, 7  ;;  %v1534_v33 = vrot.slane %v4465_v17, 7 }
 0x2bf   :  { %vm6132_vm11 = vmmov %vm6131_vm6  ;;  %v1535_v27 = vrot.slane %v4469_v10, 7  ;;  %v1536_v18 = vrot.slane %v4473_v43, 7  ;;  %vm6146_vm10 = vcmp.lt.s32.totalorder %v3315_v45, 1  ;;  %v6163_v36 = vmov 0 }
 0x2c0   :  { %v1526_v28 = vsel %vm6132_vm11, %v1518_v20, %v1519_v56  ;;  %vm6133_vm8 = vmmov %vm6131_vm6  ;;  %v1538_v56 = vrot.slane %v4481_v3, 7  ;;  %v1545_v24 = vsel %vm6146_vm10, %v1531_v41, %v1532_v39  ;;  %v6175_v8 = vmov 0 }
 0x2c1   :  { %v1527_v25 = vsel %vm6133_vm8, %v1517_v16, %v1518_v20  ;;  %vm6134_vm12 = vmmov %vm6131_vm6  ;;  %v1537_v20 = vrot.slane %v4477_v38, 7 }
 0x2c2   :  { %v1529_v14 = vsel %vm6134_vm12, %v1515_v42, %v1516_v2  ;;  %vm4510_vm14 = vmxor %vm5998_vm1, %vm6135_vm4  ;;  %vm6140_vm12 = vnez %v5847_v15 }
 0x2c3   :  { %vm6138_vm7 = vmmov %vm6131_vm6 }
 0x2c4   :  { %v1523_v63 = vsel %vm6138_vm7, %v1521_v40, %v1522_v23  ;;  %vm6139_vm11 = vmmov %vm6131_vm6  ;;  %vm6143_vm7 = vnez %v5887_v46  ;;  %v6147_v40 = vmov 0 }
 0x2c5   :  { %v1528_v54 = vsel %vm6139_vm11, %v1516_v2, %v1517_v16  ;;  %vm4524_vm8 = vmxor %vm5998_vm1, %vm6140_vm12  ;;  %v1530_v16 = vsel %vm6139_vm11, %v1522_v23, %v1515_v42 }
 0x2c6   :  { %vm4535_vm6 = vmxor %vm5998_vm1, %vm6143_vm7 }
 0x2c7   :  { %vm4548_vm13 = vmxor %vm4495_vm9, %vm5998_vm1 }
 0x2c8   :  { %v6148_v40 = vsel %vm4548_vm13, 4294967295, %v6147_v40  ;;  %vm6149_vm2 = vmmov %vm6146_vm10  ;;  %vm6153_vm10 = vnez %v5835_v59 }
 0x2c9   :  { %v1541_v52 = vsel %vm6149_vm2, %v1535_v27, %v1536_v18  ;;  %vm6150_vm3 = vmmov %vm6149_vm2 }
 0x2ca   :  { %v1542_v42 = vsel %vm6150_vm3, %v1534_v33, %v1535_v27  ;;  %vm6151_vm11 = vmmov %vm6149_vm2 }
 0x2cb   :  { %v1543_v23 = vsel %vm6151_vm11, %v1533_v4, %v1534_v33  ;;  %vm6152_vm0 = vmmov %vm6149_vm2  ;;  %v1548_v33 = vsel %vm6153_vm10, %v1528_v54, %v1545_v24  ;;  %vm6162_vm11 = vnez %v5844_v26  ;;  %v6165_v54 = vld [vmem:[#allocation9_spill] sm:$0xff] }
 0x2cc   :  { %v1544_v47 = vsel %vm6152_vm0, %v1532_v39, %v1533_v4  ;;  %vm4563_vm15 = vmxor %vm6153_vm10, %vm5998_vm1  ;;  %v6159_v39 = vmov 0  ;;  %v1580_v2 = vmax.f32 %v4457_v6, %v1548_v33 }
 0x2cd   :  { %vm6156_vm9 = vmmov %vm6152_vm0  ;;  %v1549_v30 = vsel %vm6135_vm4, %v1527_v25, %v1544_v47  ;;  %v6167_v47 = vld [vmem:[#allocation11_spill] sm:$0xff] }
 0x2ce   :  { %v1539_v31 = vsel %vm6156_vm9, %v1537_v20, %v1538_v56  ;;  %vm6157_vm2 = vmmov %vm6152_vm0 }
 0x2cf   :  { %v1540_v32 = vsel %vm6157_vm2, %v1536_v18, %v1537_v20  ;;  %vm6158_vm3 = vmmov %vm6152_vm0  ;;  %v1550_v18 = vsel %vm6162_vm11, %v1526_v28, %v1543_v23  ;;  %vm6168_vm2 = vnez %v6167_v47  ;;  %v6178_v23 = vmov 0 }
 0x2d0   :  { %v1546_v27 = vsel %vm6158_vm3, %v1538_v56, %v1531_v41  ;;  %vm4578_vm0 = vmxor %vm4510_vm14, %vm5998_vm1  ;;  %v1551_v41 = vsel %vm6140_vm12, %v1525_v11, %v1542_v42  ;;  %vm6166_vm14 = vnez %v6165_v54  ;;  %v1554_v25 = vsel %vm6168_vm2, %v1530_v16, %v1539_v31 }
 0x2d1   :  { %v6160_v39 = vsel %vm4578_vm0, 4294967295, %v6159_v39  ;;  %v1547_v4 = vsel %vm6128_vm5, %v1529_v14, %v1546_v27  ;;  %vm4593_vm9 = vmxor %vm6162_vm11, %vm5998_vm1  ;;  %v1552_v20 = vsel %vm6166_vm14, %v1524_v58, %v1541_v52  ;;  %v1553_v14 = vsel %vm6143_vm7, %v1523_v63, %v1540_v32 }
 0x2d2   :  { %6161 = vst [vmem:[#allocation27_spill] sm:$0xff] %v6160_v39  ;;  %v6164_v36 = vsel %vm4593_vm9, 4294967295, %v6163_v36  ;;  %vm4606_vm3 = vmxor %vm4524_vm8, %vm5998_vm1  ;;  %v6169_v11 = vmov 0  ;;  %v1571_v28 = vmin.f32 %v4453_v48, %v1547_v4  ;;  %v6172_v52 = vmov 0 }
 0x2d3   :  { %v6170_v11 = vsel %vm4606_vm3, 4294967295, %v6169_v11  ;;  %vm4614_vm12 = vmxor %vm6166_vm14, %vm5998_vm1  ;;  %v1572_v32 = vmin.f32 %v4457_v6, %v1548_v33  ;;  %v1573_v31 = vmin.f32 %v4461_v22, %v1549_v30  ;;  %v1574_v63 = vmin.f32 %v4465_v17, %v1550_v18 }
 0x2d4   :  { %6171 = vst [vmem:[#allocation28_spill] sm:$0xff] %v6170_v11  ;;  %v6173_v52 = vsel %vm4614_vm12, 4294967295, %v6172_v52  ;;  %v1575_v58 = vmin.f32 %v4469_v10, %v1551_v41  ;;  %vm4625_vm8 = vmxor %vm4535_vm6, %vm5998_vm1  ;;  %v1576_v16 = vmin.f32 %v4473_v43, %v1552_v20  ;;  %v1577_v56 = vmin.f32 %v4477_v38, %v1553_v14 }
 0x2d5   :  { %6174 = vst [vmem:[#allocation29_spill] sm:$0xff] %v6173_v52  ;;  %v6176_v8 = vsel %vm4625_vm8, 4294967295, %v6175_v8  ;;  %v1578_v24 = vmin.f32 %v4481_v3, %v1554_v25  ;;  %v1579_v42 = vmax.f32 %v4453_v48, %v1547_v4  ;;  %vm4636_vm7 = vmxor %vm6168_vm2, %vm5998_vm1  ;;  %v1581_v27 = vmax.f32 %v4461_v22, %v1549_v30 }
 0x2d6   :  { %6177 = vst [vmem:[#allocation30_spill] sm:$0xff] %v6176_v8  ;;  %v6179_v23 = vsel %vm4636_vm7, 4294967295, %v6178_v23  ;;  %v1582_v46 = vmax.f32 %v4465_v17, %v1550_v18  ;;  %v1583_v54 = vmax.f32 %v4469_v10, %v1551_v41  ;;  %v1584_v15 = vmax.f32 %v4473_v43, %v1552_v20 }
 0x2d7   :  { %v1585_v26 = vmax.f32 %v4477_v38, %v1553_v14  ;;  %v1586_v48 = vmax.f32 %v4481_v3, %v1554_v25  ;;  %v1587_v4 = vsel %vm4548_vm13, %v1571_v28, %v1579_v42  ;;  %v1588_v47 = vsel %vm4563_vm15, %v1572_v32, %v1580_v2 }
 0x2d8   :  { %v1589_v6 = vsel %vm4578_vm0, %v1573_v31, %v1581_v27  ;;  %v1590_v30 = vsel %vm4593_vm9, %v1574_v63, %v1582_v46  ;;  %v1591_v22 = vsel %vm4606_vm3, %v1575_v58, %v1583_v54  ;;  %v1592_v17 = vsel %vm4614_vm12, %v1576_v16, %v1584_v15 }
 0x2d9   :  { %v1593_v10 = vsel %vm4625_vm8, %v1577_v56, %v1585_v26  ;;  %v1594_v43 = vsel %vm4636_vm7, %v1578_v24, %v1586_v48  ;;  %v1635_v38 = vmin.f32 %v1587_v4, %v1588_v47  ;;  %v1638_v3 = vmin.f32 %v1590_v30, %v1589_v6 }
 0x2da   :  { %v1639_v49 = vmin.f32 %v1591_v22, %v1592_v17  ;;  %v1642_v33 = vmin.f32 %v1594_v43, %v1593_v10  ;;  %v1644_v18 = vmax.f32 %v1588_v47, %v1587_v4  ;;  %v1645_v41 = vmax.f32 %v1589_v6, %v1590_v30 }
 0x2db   :  { %v1648_v20 = vmax.f32 %v1592_v17, %v1591_v22  ;;  %v1649_v46 = vmax.f32 %v1593_v10, %v1594_v43  ;;  %v1659_v14 = vrot.slane %v1635_v38, 4  ;;  %v1662_v54 = vrot.slane %v1638_v3, 4 }
 0x2dc   :  { %v1660_v25 = vrot.slane %v1644_v18, 4  ;;  %v1663_v28 = vrot.slane %v1639_v49, 4  ;;  %v1666_v32 = vrot.slane %v1642_v33, 4  ;;  %v1661_v15 = vrot.slane %v1645_v41, 4 }
 0x2dd   :  { %v1664_v31 = vrot.slane %v1648_v20, 4  ;;  %v1665_v63 = vrot.slane %v1649_v46, 4  ;;  %vm6180_vm15 = vcmp.lt.s32.totalorder %v3315_v45, 4  ;;  %vm6183_vm12 = vnez %v5917_v51 }
 0x2de   :  { %v1670_v26 = vsel %vm6180_vm15, %v1662_v54, %v1663_v28  ;;  %vm6181_vm6 = vmmov %vm6180_vm15  ;;  %vm6190_vm13 = vnez %v5856_v35  ;;  %v6195_v10 = vmov 0 }
 0x2df   :  { %v1673_v58 = vsel %vm6181_vm6, %v1659_v14, %v1660_v25  ;;  %vm6182_vm8 = vmmov %vm6181_vm6 }
 0x2e0   :  { %v1674_v47 = vsel %vm6182_vm8, %v1666_v32, %v1659_v14  ;;  %vm1684_vm0 = vmxor %vm5998_vm1, %vm6183_vm12  ;;  %vm6189_vm8 = vnez %v5914_v53 }
 0x2e1   :  { %vm6184_vm7 = vmmov %vm6181_vm6  ;;  %v1675_v27 = vsel %vm6189_vm8, %v1673_v58, %v1674_v47 }
 0x2e2   :  { %v1667_v16 = vsel %vm6184_vm7, %v1665_v63, %v1666_v32  ;;  %vm6185_vm3 = vmmov %vm6181_vm6  ;;  %vm6191_vm7 = vnez %v5908_v13  ;;  %v6200_v32 = vmov 0 }
 0x2e3   :  { %v1668_v56 = vsel %vm6185_vm3, %v1664_v31, %v1665_v63  ;;  %vm6186_vm9 = vmmov %vm6185_vm3 }
 0x2e4   :  { %v1669_v24 = vsel %vm6186_vm9, %v1663_v28, %v1664_v31  ;;  %vm6187_vm15 = vmmov %vm6185_vm3  ;;  %vm6193_vm9 = vnez %v5854_v29 }
 0x2e5   :  { %v1671_v42 = vsel %vm6187_vm15, %v1661_v15, %v1662_v54  ;;  %vm6188_vm6 = vmmov %vm6185_vm3  ;;  %v1679_v4 = vsel %vm6191_vm7, %v1669_v24, %v1670_v26  ;;  %vm6192_vm3 = vnez %v5919_v57  ;;  %vm6194_vm15 = vnez %v5922_v19 }
 0x2e6   :  { %v1672_v2 = vsel %vm6188_vm6, %v1660_v25, %v1661_v15  ;;  %v1678_v48 = vsel %vm6190_vm13, %v1670_v26, %v1671_v42  ;;  %vm1688_vm2 = vmxor %vm5998_vm1, %vm6192_vm3  ;;  %v1680_v22 = vsel %vm6192_vm3, %v1668_v56, %v1669_v24  ;;  %v1681_v17 = vsel %vm6194_vm15, %v1667_v16, %v1668_v56 }
 0x2e7   :  { %v1676_v6 = vsel %vm6183_vm12, %v1672_v2, %v1673_v58  ;;  %v1677_v30 = vsel %vm6193_vm9, %v1671_v42, %v1672_v2  ;;  %vm4700_vm6 = vmxor %vm1684_vm0, %vm5998_vm1  ;;  %vm6197_vm7 = vnez %v5927_v61  ;;  %v1699_v25 = vmin.f32 %v1635_v38, %v1675_v27 }
 0x2e8   :  { %v6196_v10 = vsel %vm4700_vm6, 4294967295, %v6195_v10  ;;  %v1682_v43 = vsel %vm6197_vm7, %v1674_v47, %v1667_v16  ;;  %vm4709_vm12 = vmxor %vm6193_vm9, %vm5998_vm1  ;;  %v1700_v54 = vmin.f32 %v1644_v18, %v1676_v6  ;;  %v1701_v28 = vmin.f32 %v1645_v41, %v1677_v30 }
 0x2e9   :  { %vm4714_vm3 = vmxor %vm1688_vm2, %vm5998_vm1  ;;  %v1702_v15 = vmin.f32 %v1638_v3, %v1678_v48  ;;  %v1703_v31 = vmin.f32 %v1639_v49, %v1679_v4  ;;  %v1704_v63 = vmin.f32 %v1648_v20, %v1680_v22  ;;  %v1705_v26 = vmin.f32 %v1649_v46, %v1681_v17 }
 0x2ea   :  { %v6201_v32 = vsel %vm4714_vm3, 4294967295, %v6200_v32  ;;  %vm4721_vm0 = vmxor %vm6194_vm15, %vm5998_vm1  ;;  %v6203_v58 = vmov 0  ;;  %v1706_v47 = vmin.f32 %v1642_v33, %v1682_v43  ;;  %v1707_v16 = vmax.f32 %v1635_v38, %v1675_v27 }
 0x2eb   :  { %6202 = vst [vmem:[#allocation31_spill] sm:$0xff] %v6201_v32  ;;  %v6204_v58 = vsel %vm4721_vm0, 4294967295, %v6203_v58  ;;  %v1708_v56 = vmax.f32 %v1644_v18, %v1676_v6  ;;  %v1709_v24 = vmax.f32 %v1645_v41, %v1677_v30  ;;  %v1710_v42 = vmax.f32 %v1638_v3, %v1678_v48  ;;  %v6266_v32 = vld [vmem:[#allocation8_spill] sm:$0xff] }
 0x2ec   :  { %v1711_v2 = vmax.f32 %v1639_v49, %v1679_v4  ;;  %v1712_v8 = vmax.f32 %v1648_v20, %v1680_v22  ;;  %v1713_v52 = vmax.f32 %v1649_v46, %v1681_v17  ;;  %v1714_v39 = vmax.f32 %v1642_v33, %v1682_v43 }
 0x2ed   :  { %vm6205_vm2 = vnez %v6050_v62  ;;  %v4731_v19 = vsel %vm4700_vm6, %v1700_v54, %v1708_v56  ;;  %v4735_v57 = vsel %vm4709_vm12, %v1701_v28, %v1709_v24  ;;  %vm6206_vm7 = vnez %v6063_v55 }
 0x2ee   :  { %v4727_v61 = vsel %vm6205_vm2, %v1699_v25, %v1707_v16  ;;  %v4739_v38 = vsel %vm6206_vm7, %v1702_v15, %v1710_v42  ;;  %vm6207_vm15 = vnez %v6066_v60  ;;  %v4747_v49 = vsel %vm4714_vm3, %v1704_v63, %v1712_v8 }
 0x2ef   :  { %v4743_v3 = vsel %vm6207_vm15, %v1703_v31, %v1711_v2  ;;  %v4751_v33 = vsel %vm4721_vm0, %v1705_v26, %v1713_v52  ;;  %vm6208_vm6 = vnez %v6076_v50  ;;  %v1723_v55 = vrot.slane %v4727_v61, 2 }
 0x2f0   :  { %v4755_v18 = vsel %vm6208_vm6, %v1706_v47, %v1714_v39  ;;  %v1724_v41 = vrot.slane %v4731_v19, 2  ;;  %v1725_v20 = vrot.slane %v4735_v57, 2  ;;  %v1726_v46 = vrot.slane %v4739_v38, 2 }
 0x2f1   :  { %v1727_v27 = vrot.slane %v4743_v3, 2  ;;  %v1728_v8 = vrot.slane %v4747_v49, 2  ;;  %v1729_v48 = vrot.slane %v4751_v33, 2  ;;  %v1730_v52 = vrot.slane %v4755_v18, 2 }
 0x2f2   :  { %vm6209_vm12 = vcmp.lt.s32.totalorder %v3315_v45, 6  ;;  %v1739_v4 = vrot.slane %v4727_v61, 6  ;;  %v1740_v25 = vrot.slane %v4731_v19, 6  ;;  %v1741_v54 = vrot.slane %v4735_v57, 6 }
 0x2f3   :  { %v1736_v39 = vsel %vm6209_vm12, %v1724_v41, %v1725_v20  ;;  %vm6210_vm7 = vmmov %vm6209_vm12  ;;  %v1742_v28 = vrot.slane %v4739_v38, 6  ;;  %v1743_v15 = vrot.slane %v4743_v3, 6  ;;  %v1744_v31 = vrot.slane %v4747_v49, 6 }
 0x2f4   :  { %v1732_v6 = vsel %vm6210_vm7, %v1728_v8, %v1729_v48  ;;  %vm6211_vm3 = vmmov %vm6210_vm7  ;;  %v1745_v63 = vrot.slane %v4751_v33, 6  ;;  %v1746_v47 = vrot.slane %v4755_v18, 6  ;;  %vm6234_vm13 = vnez %v5885_v37 }
 0x2f5   :  { %v1733_v30 = vsel %vm6211_vm3, %v1727_v27, %v1728_v8  ;;  %vm6212_vm15 = vmmov %vm6211_vm3 }
 0x2f6   :  { %v1734_v22 = vsel %vm6212_vm15, %v1726_v46, %v1727_v27  ;;  %vm6213_vm6 = vmmov %vm6211_vm3  ;;  %vm6217_vm15 = vcmp.lt.s32.totalorder %v3315_v45, 2 }
 0x2f7   :  { %v1737_v17 = vsel %vm6213_vm6, %v1723_v55, %v1724_v41  ;;  %vm6214_vm0 = vmmov %vm6211_vm3  ;;  %v1752_v16 = vsel %vm6217_vm15, %v1740_v25, %v1741_v54 }
 0x2f8   :  { %v1731_v43 = vsel %vm6214_vm0, %v1729_v48, %v1730_v52  ;;  %vm6215_vm2 = vmmov %vm6214_vm0 }
 0x2f9   :  { %v1735_v14 = vsel %vm6215_vm2, %v1725_v20, %v1726_v46  ;;  %vm6216_vm3 = vmmov %vm6214_vm0 }
 0x2fa   :  { %v1738_v26 = vsel %vm6216_vm3, %v1730_v52, %v1723_v55  ;;  %vm6218_vm6 = vmmov %vm6217_vm15  ;;  %vm6223_vm3 = vnez %v5837_v34 }
 0x2fb   :  { %v1753_v56 = vsel %vm6218_vm6, %v1739_v4, %v1740_v25  ;;  %vm6219_vm0 = vmmov %vm6218_vm6  ;;  %v6230_v25 = vld [vmem:[#allocation10_spill] sm:$0xff] }
 0x2fc   :  { %v1748_v24 = vsel %vm6219_vm0, %v1744_v31, %v1745_v63  ;;  %vm6220_vm2 = vmmov %vm6219_vm0  ;;  %v1756_v46 = vsel %vm6223_vm3, %v1736_v39, %v1753_v56  ;;  %v6232_v39 = vld [vmem:[#allocation13_spill] sm:$0xff] }
 0x2fd   :  { %v1749_v42 = vsel %vm6220_vm2, %v1743_v15, %v1744_v31  ;;  %vm6221_vm12 = vmmov %vm6219_vm0  ;;  %vm6227_vm2 = vnez %v5877_v5  ;;  %v1788_v56 = vmax.f32 %v4731_v19, %v1756_v46 }
 0x2fe   :  { %v1750_v2 = vsel %vm6221_vm12, %v1742_v28, %v1743_v15  ;;  %vm6222_vm7 = vmmov %vm6219_vm0  ;;  %vm6228_vm12 = vnez %v5850_v21 }
 0x2ff   :  { %v1751_v55 = vsel %vm6222_vm7, %v1741_v54, %v1742_v28  ;;  %vm1764_vm9 = vmxor %vm5998_vm1, %vm6223_vm3  ;;  %vm6229_vm7 = vnez %v5852_v9  ;;  %vm6233_vm3 = vnez %v6232_v39 }
 0x300   :  { %vm6224_vm15 = vmmov %vm6219_vm0  ;;  %v1758_v48 = vsel %vm6228_vm12, %v1734_v22, %v1751_v55  ;;  %v1759_v52 = vsel %vm6229_vm7, %v1733_v30, %v1750_v2  ;;  %v1780_v22 = vmin.f32 %v4731_v19, %v1756_v46 }
 0x301   :  { %v1747_v41 = vsel %vm6224_vm15, %v1745_v63, %v1746_v47  ;;  %vm6225_vm6 = vmmov %vm6219_vm0  ;;  %vm6226_vm0 = vnez %v5842_v1  ;;  %vm6231_vm15 = vnez %v6230_v25  ;;  %v1782_v28 = vmin.f32 %v4739_v38, %v1758_v48 }
 0x302   :  { %v1754_v20 = vsel %vm6225_vm6, %v1746_v47, %v1739_v4  ;;  %v1757_v27 = vsel %vm6226_vm0, %v1735_v14, %v1752_v16  ;;  %v1760_v54 = vsel %vm6231_vm15, %v1732_v6, %v1749_v42  ;;  %vm1768_vm6 = vmxor %vm5998_vm1, %vm6231_vm15  ;;  %v1761_v4 = vsel %vm6233_vm3, %v1731_v43, %v1748_v24 }
 0x303   :  { %v1755_v8 = vsel %vm6227_vm2, %v1737_v17, %v1754_v20  ;;  %v1762_v14 = vsel %vm6234_vm13, %v1738_v26, %v1747_v41  ;;  %vm4828_vm2 = vmxor %vm1764_vm9, %vm5998_vm1  ;;  %v6235_v17 = vmov 0  ;;  %v1781_v43 = vmin.f32 %v4735_v57, %v1757_v27 }
 0x304   :  { %v6236_v17 = vsel %vm4828_vm2, 4294967295, %v6235_v17  ;;  %v1779_v30 = vmin.f32 %v4727_v61, %v1755_v8  ;;  %vm4837_vm7 = vmxor %vm6226_vm0, %vm5998_vm1  ;;  %v1783_v15 = vmin.f32 %v4743_v3, %v1759_v52  ;;  %v1784_v31 = vmin.f32 %v4747_v49, %v1760_v54 }
 0x305   :  { %vm4846_vm9 = vmxor %vm1768_vm6, %vm5998_vm1  ;;  %v6239_v63 = vmov 0  ;;  %v1785_v26 = vmin.f32 %v4751_v33, %v1761_v4  ;;  %v1786_v47 = vmin.f32 %v4755_v18, %v1762_v14  ;;  %v1787_v16 = vmax.f32 %v4727_v61, %v1755_v8 }
 0x306   :  { %v6240_v63 = vsel %vm4846_vm9, 4294967295, %v6239_v63  ;;  %vm4857_vm13 = vmxor %vm6233_vm3, %vm5998_vm1  ;;  %v6242_v24 = vmov 0  ;;  %v1789_v42 = vmax.f32 %v4735_v57, %v1757_v27  ;;  %v1790_v2 = vmax.f32 %v4739_v38, %v1758_v48  ;;  %v6248_v27 = vld [vmem:[#allocation26_spill] sm:$0xff] }
 0x307   :  { %6241 = vst [vmem:[#allocation10_spill] sm:$0xff] %v6240_v63  ;;  %v6243_v24 = vsel %vm4857_vm13, 4294967295, %v6242_v24  ;;  %v1791_v55 = vmax.f32 %v4743_v3, %v1759_v52  ;;  %v1792_v41 = vmax.f32 %v4747_v49, %v1760_v54  ;;  %v1793_v20 = vmax.f32 %v4751_v33, %v1761_v4  ;;  %v6246_v3 = vld [vmem:[#allocation23_spill] sm:$0xff] }
 0x308   :  { %v1794_v61 = vmax.f32 %v4755_v18, %v1762_v14  ;;  %vm6244_vm6 = vnez %v6098_v12  ;;  %v4873_v46 = vsel %vm4828_vm2, %v1780_v22, %v1788_v56  ;;  %v4877_v57 = vsel %vm4837_vm7, %v1781_v43, %v1789_v42 }
 0x309   :  { %v4869_v19 = vsel %vm6244_vm6, %v1779_v30, %v1787_v16  ;;  %vm6245_vm3 = vnez %v6114_v44  ;;  %vm6247_vm15 = vnez %v6246_v3  ;;  %v4889_v33 = vsel %vm4846_vm9, %v1784_v31, %v1792_v41 }
 0x30a   :  { %v4881_v38 = vsel %vm6245_vm3, %v1782_v28, %v1790_v2  ;;  %v4885_v49 = vsel %vm6247_vm15, %v1783_v15, %v1791_v55  ;;  %v4893_v18 = vsel %vm4857_vm13, %v1785_v26, %v1793_v20  ;;  %vm6249_vm2 = vnez %v6248_v27 }
 0x30b   :  { %v4897_v8 = vsel %vm6249_vm2, %v1786_v47, %v1794_v61  ;;  %v1803_v44 = vrot.slane %v4869_v19, 1  ;;  %v1804_v48 = vrot.slane %v4873_v46, 1  ;;  %v1805_v52 = vrot.slane %v4877_v57, 1 }
 0x30c   :  { %v1806_v54 = vrot.slane %v4881_v38, 1  ;;  %v1807_v4 = vrot.slane %v4885_v49, 1  ;;  %v1808_v14 = vrot.slane %v4889_v33, 1  ;;  %v1809_v30 = vrot.slane %v4893_v18, 1 }
 0x30d   :  { %v1810_v22 = vrot.slane %v4897_v8, 1  ;;  %v1819_v6 = vrot.slane %v4869_v19, 7  ;;  %vm6250_vm3 = vcmp.lt.s32.totalorder %v3315_v45, 7  ;;  %v1820_v56 = vrot.slane %v4873_v46, 7 }
 0x30e   :  { %v1813_v43 = vsel %vm6250_vm3, %v1807_v4, %v1808_v14  ;;  %vm6251_vm7 = vmmov %vm6250_vm3  ;;  %v1821_v42 = vrot.slane %v4877_v57, 7  ;;  %v1822_v2 = vrot.slane %v4881_v38, 7  ;;  %v1823_v55 = vrot.slane %v4885_v49, 7 }
 0x30f   :  { %v1814_v28 = vsel %vm6251_vm7, %v1806_v54, %v1807_v4  ;;  %vm6252_vm9 = vmmov %vm6250_vm3  ;;  %v1824_v41 = vrot.slane %v4889_v33, 7  ;;  %v1825_v61 = vrot.slane %v4893_v18, 7 }
 0x310   :  { %v1815_v15 = vsel %vm6252_vm9, %v1805_v52, %v1806_v54  ;;  %vm6253_vm15 = vmmov %vm6250_vm3  ;;  %v1826_v54 = vrot.slane %v4897_v8, 7 }
 0x311   :  { %v1817_v31 = vsel %vm6253_vm15, %v1803_v44, %v1804_v48  ;;  %vm6254_vm2 = vmmov %vm6250_vm3 }
 0x312   :  { %v1811_v26 = vsel %vm6254_vm2, %v1809_v30, %v1810_v22  ;;  %vm6255_vm13 = vmmov %vm6254_vm2 }
 0x313   :  { %v1812_v47 = vsel %vm6255_vm13, %v1808_v14, %v1809_v30  ;;  %vm6256_vm6 = vmmov %vm6254_vm2  ;;  %vm6258_vm13 = vcmp.lt.s32.totalorder %v3315_v45, 1 }
 0x314   :  { %v1816_v16 = vsel %vm6256_vm6, %v1804_v48, %v1805_v52  ;;  %vm6257_vm15 = vmmov %vm6254_vm2  ;;  %v1833_v48 = vsel %vm6258_vm13, %v1819_v6, %v1820_v56 }
 0x315   :  { %v1818_v20 = vsel %vm6257_vm15, %v1810_v22, %v1803_v44  ;;  %vm6259_vm2 = vmmov %vm6258_vm13 }
 0x316   :  { %v1829_v52 = vsel %vm6259_vm2, %v1823_v55, %v1824_v41  ;;  %vm6260_vm9 = vmmov %vm6259_vm2  ;;  %v1834_v63 = vsel %vm6259_vm2, %v1826_v54, %v1819_v6 }
 0x317   :  { %v1830_v4 = vsel %vm6260_vm9, %v1822_v2, %v1823_v55  ;;  %vm6261_vm6 = vmmov %vm6259_vm2  ;;  %v1836_v55 = vsel %vm6153_vm10, %v1816_v16, %v1833_v48  ;;  %vm6267_vm9 = vnez %v6266_v32  ;;  %v1840_v6 = vsel %vm6166_vm14, %v1812_v47, %v1829_v52  ;;  %v6269_v16 = vld [vmem:[#allocation12_spill] sm:$0xff] }
 0x318   :  { %v1831_v14 = vsel %vm6261_vm6, %v1821_v42, %v1822_v2  ;;  %vm6262_vm3 = vmmov %vm6259_vm2  ;;  %v1835_v2 = vsel %vm6128_vm5, %v1817_v31, %v1834_v63  ;;  %v1839_v60 = vsel %vm6267_vm9, %v1813_v43, %v1830_v4  ;;  %v6271_v63 = vld [vmem:[#allocation11_spill] sm:$0xff]  ;;  %v1860_v47 = vmin.f32 %v4873_v46, %v1836_v55 }
 0x319   :  { %v1832_v30 = vsel %vm6262_vm3, %v1820_v56, %v1821_v42  ;;  %vm1844_vm7 = vmxor %vm5998_vm1, %vm6153_vm10  ;;  %v1838_v3 = vsel %vm6162_vm11, %v1814_v28, %v1831_v14  ;;  %vm6270_vm3 = vnez %v6269_v16  ;;  %v1859_v43 = vmin.f32 %v4869_v19, %v1835_v2 }
 0x31a   :  { %vm6263_vm15 = vmmov %vm6259_vm2  ;;  %v1837_v56 = vsel %vm6135_vm4, %v1815_v15, %v1832_v30  ;;  %v6273_v15 = vmov 0  ;;  %v1864_v48 = vmin.f32 %v4889_v33, %v1840_v6  ;;  %v1867_v14 = vmax.f32 %v4869_v19, %v1835_v2 }
 0x31b   :  { %v1827_v44 = vsel %vm6263_vm15, %v1825_v61, %v1826_v54  ;;  %vm6264_vm13 = vmmov %vm6259_vm2  ;;  %vm6272_vm15 = vnez %v6271_v63  ;;  %v6277_v54 = vmov 0  ;;  %v6280_v30 = vmov 0 }
 0x31c   :  { %v1828_v22 = vsel %vm6264_vm13, %v1824_v41, %v1825_v61  ;;  %vm1848_vm6 = vmxor %vm5998_vm1, %vm6166_vm14  ;;  %v1842_v31 = vsel %vm6272_vm15, %v1818_v20, %v1827_v44  ;;  %v1862_v20 = vmin.f32 %v4881_v38, %v1838_v3  ;;  %v1863_v61 = vmin.f32 %v4885_v49, %v1839_v60 }
 0x31d   :  { %v1841_v41 = vsel %vm6270_vm3, %v1811_v26, %v1828_v22  ;;  %vm4970_vm13 = vmxor %vm1844_vm7, %vm5998_vm1  ;;  %v1861_v26 = vmin.f32 %v4877_v57, %v1837_v56  ;;  %v1866_v4 = vmin.f32 %v4897_v8, %v1842_v31  ;;  %v1868_v44 = vmax.f32 %v4873_v46, %v1836_v55 }
 0x31e   :  { %v6274_v15 = vsel %vm4970_vm13, 4294967295, %v6273_v15  ;;  %vm4978_vm2 = vmxor %vm6135_vm4, %vm5998_vm1  ;;  %v1865_v52 = vmin.f32 %v4893_v18, %v1841_v41  ;;  %v1869_v22 = vmax.f32 %v4877_v57, %v1837_v56  ;;  %v1870_v63 = vmax.f32 %v4881_v38, %v1838_v3 }
 0x31f   :  { %vm4987_vm7 = vmxor %vm1848_vm6, %vm5998_vm1  ;;  %v1871_v27 = vmax.f32 %v4885_v49, %v1839_v60  ;;  %v1872_v32 = vmax.f32 %v4889_v33, %v1840_v6  ;;  %v1873_v0 = vmax.f32 %v4893_v18, %v1841_v41  ;;  %v1874_v19 = vmax.f32 %v4897_v8, %v1842_v31 }
 0x320   :  { %v6278_v54 = vsel %vm4987_vm7, 4294967295, %v6277_v54  ;;  %vm4998_vm15 = vmxor %vm6270_vm3, %vm5998_vm1  ;;  %vm6282_vm6 = vnez %v6148_v40  ;;  %v1876_v16 = vsel %vm4970_vm13, %v1860_v47, %v1868_v44  ;;  %v1877_v46 = vsel %vm4978_vm2, %v1861_v26, %v1869_v22 }
 0x321   :  { %6279 = vst [vmem:[#allocation13_spill] sm:$0xff] %v6278_v54  ;;  %v6281_v30 = vsel %vm4998_vm15, 4294967295, %v6280_v30  ;;  %v1875_v2 = vsel %vm6282_vm6, %v1859_v43, %v1867_v14  ;;  %vm6283_vm3 = vnez %v6164_v36  ;;  %vm6284_vm14 = vnez %v6170_v11 }
 0x322   :  { %v1878_v57 = vsel %vm6283_vm3, %v1862_v20, %v1870_v63  ;;  %v1879_v60 = vsel %vm6284_vm14, %v1863_v61, %v1871_v27  ;;  %v1880_v38 = vsel %vm4987_vm7, %v1864_v48, %v1872_v32  ;;  %v1881_v3 = vsel %vm4998_vm15, %v1865_v52, %v1873_v0 }
 0x323   :  { %vm6285_vm6 = vnez %v6179_v23  ;;  %v1923_v33 = vmin.f32 %v1875_v2, %v1877_v46  ;;  %v1924_v18 = vmin.f32 %v1876_v16, %v1878_v57  ;;  %v1929_v8 = vmin.f32 %v1881_v3, %v1879_v60 }
 0x324   :  { %v1882_v49 = vsel %vm6285_vm6, %v1866_v4, %v1874_v19  ;;  %v1933_v56 = vmax.f32 %v1877_v46, %v1875_v2  ;;  %v1934_v6 = vmax.f32 %v1878_v57, %v1876_v16  ;;  %v1935_v36 = vmax.f32 %v1879_v60, %v1881_v3 }
 0x325   :  { %v1930_v55 = vmin.f32 %v1882_v49, %v1880_v38  ;;  %v1936_v41 = vmax.f32 %v1880_v38, %v1882_v49  ;;  %v1971_v63 = vmin.f32 %v1923_v33, %v1924_v18  ;;  %v1980_v27 = vmax.f32 %v1924_v18, %v1923_v33 }
 0x326   :  { %v1973_v28 = vmin.f32 %v1933_v56, %v1934_v6  ;;  %v1982_v47 = vmax.f32 %v1934_v6, %v1933_v56  ;;  %vm6286_vm3 = vcmp.lt.s32.totalorder %v3315_v45, 4  ;;  %v6300_v6 = vld [vmem:[#allocation16_spill] sm:$0xff] }
 0x327   :  { %v1978_v31 = vmin.f32 %v1930_v55, %v1929_v8  ;;  %v1985_v43 = vmax.f32 %v1929_v8, %v1930_v55  ;;  %v1976_v32 = vmin.f32 %v1936_v41, %v1935_v36  ;;  %v1983_v26 = vmax.f32 %v1935_v36, %v1936_v41  ;;  %vm6287_vm2 = vmmov %vm6286_vm3  ;;  %v6298_v55 = vld [vmem:[#allocation15_spill] sm:$0xff]  ;;  %v6302_v41 = vld [vmem:[#allocation17_spill] sm:$0xff] }
 0x328   :  { %v1995_v0 = vrot.slane %v1971_v63, 4  ;;  %v1996_v20 = vrot.slane %v1980_v27, 4  ;;  %v1997_v52 = vrot.slane %v1973_v28, 4  ;;  %v1998_v4 = vrot.slane %v1982_v47, 4  ;;  %vm6288_vm7 = vmmov %vm6287_vm2 }
 0x329   :  { %v2001_v61 = vrot.slane %v1985_v43, 4  ;;  %v2002_v48 = vrot.slane %v1978_v31, 4  ;;  %v1999_v14 = vrot.slane %v1983_v26, 4  ;;  %v2000_v44 = vrot.slane %v1976_v32, 4  ;;  %vm6289_vm14 = vmmov %vm6287_vm2 }
 0x32a   :  { %v2009_v22 = vsel %vm6287_vm2, %v1995_v0, %v1996_v20  ;;  %vm6290_vm6 = vmmov %vm6287_vm2 }
 0x32b   :  { %v2003_v16 = vsel %vm6286_vm3, %v2001_v61, %v2002_v48  ;;  %v2010_v19 = vsel %vm6288_vm7, %v2002_v48, %v1995_v0  ;;  %v2004_v2 = vsel %vm6289_vm14, %v2000_v44, %v2001_v61  ;;  %v2005_v46 = vsel %vm6290_vm6, %v1999_v14, %v2000_v44  ;;  %vm6291_vm15 = vmmov %vm6287_vm2 }
 0x32c   :  { %v2006_v57 = vsel %vm6291_vm15, %v1998_v4, %v1999_v14  ;;  %vm6292_vm13 = vmmov %vm6287_vm2  ;;  %v2011_v3 = vsel %vm6189_vm8, %v2009_v22, %v2010_v19  ;;  %vm6294_vm7 = vnez %v5856_v35  ;;  %vm6295_vm14 = vnez %v5908_v13 }
 0x32d   :  { %v2007_v60 = vsel %vm6292_vm13, %v1997_v52, %v1998_v4  ;;  %vm6293_vm3 = vmmov %vm6287_vm2  ;;  %v2015_v33 = vsel %vm6295_vm14, %v2005_v46, %v2006_v57  ;;  %vm6296_vm15 = vnez %v5917_v51  ;;  %vm6297_vm13 = vnez %v5854_v29  ;;  %v6399_v51 = vld [vmem:[#allocation17_spill] sm:$0xff] }
 0x32e   :  { %v2008_v38 = vsel %vm6293_vm3, %v1996_v20, %v1997_v52  ;;  %v2014_v49 = vsel %vm6294_vm7, %v2006_v57, %v2007_v60  ;;  %vm2022_vm6 = vmxor %vm5998_vm1, %vm6294_vm7  ;;  %vm6299_vm2 = vnez %v6298_v55  ;;  %vm6301_vm3 = vnez %v6300_v6  ;;  %v6308_v55 = vld [vmem:[#allocation18_spill] sm:$0xff] }
 0x32f   :  { %v2012_v18 = vsel %vm6296_vm15, %v2008_v38, %v2009_v22  ;;  %v2013_v8 = vsel %vm6297_vm13, %v2007_v60, %v2008_v38  ;;  %v2016_v56 = vsel %vm6299_vm2, %v2004_v2, %v2005_v46  ;;  %v2017_v36 = vsel %vm6301_vm3, %v2003_v16, %v2004_v2  ;;  %vm5061_vm7 = vmxor %vm2022_vm6, %vm5998_vm1 }
 0x330   :  { %vm6303_vm8 = vnez %v6302_v41  ;;  %v2035_v20 = vmin.f32 %v1971_v63, %v2011_v3  ;;  %v2036_v61 = vmin.f32 %v1980_v27, %v2012_v18  ;;  %v2037_v48 = vmin.f32 %v1973_v28, %v2013_v8  ;;  %vm2031_vm2 = vmxor %vm6295_vm14, %vm5998_vm1 }
 0x331   :  { %v2018_v0 = vsel %vm6303_vm8, %v2010_v19, %v2003_v16  ;;  %v6304_v52 = vmov 0  ;;  %v2038_v4 = vmin.f32 %v1982_v47, %v2014_v49  ;;  %v2039_v14 = vmin.f32 %v1983_v26, %v2015_v33 }
 0x332   :  { %v6305_v52 = vsel %vm5061_vm7, 4294967295, %v6304_v52  ;;  %v2040_v44 = vmin.f32 %v1976_v32, %v2016_v56  ;;  %v2041_v22 = vmin.f32 %v1985_v43, %v2017_v36  ;;  %v2042_v2 = vmin.f32 %v1978_v31, %v2018_v0 }
 0x333   :  { %v2043_v46 = vmax.f32 %v1971_v63, %v2011_v3  ;;  %v2044_v57 = vmax.f32 %v1980_v27, %v2012_v18  ;;  %v2045_v16 = vmax.f32 %v1973_v28, %v2013_v8  ;;  %v2046_v19 = vmax.f32 %v1982_v47, %v2014_v49 }
 0x334   :  { %v2047_v60 = vmax.f32 %v1983_v26, %v2015_v33  ;;  %v2048_v38 = vmax.f32 %v1976_v32, %v2016_v56  ;;  %v2049_v54 = vmax.f32 %v1985_v43, %v2017_v36  ;;  %v2050_v11 = vmax.f32 %v1978_v31, %v2018_v0  ;;  %v6310_v43 = vld [vmem:[#allocation20_spill] sm:$0xff] }
 0x335   :  { %vm6306_vm6 = vnez %v6050_v62  ;;  %vm6307_vm8 = vnez %v6196_v10  ;;  %vm6309_vm3 = vnez %v6308_v55  ;;  %v5082_v63 = vsel %vm5061_vm7, %v2038_v4, %v2046_v19 }
 0x336   :  { %v5070_v41 = vsel %vm6306_vm6, %v2035_v20, %v2043_v46  ;;  %v5074_v6 = vsel %vm6307_vm8, %v2036_v61, %v2044_v57  ;;  %v5078_v13 = vsel %vm6309_vm3, %v2037_v48, %v2045_v16  ;;  %v5084_v27 = vsel %vm2031_vm2, %v2039_v14, %v2047_v60 }
 0x337   :  { %vm6311_vm14 = vnez %v6310_v43  ;;  %vm6312_vm6 = vnez %v6204_v58  ;;  %vm6313_vm8 = vnez %v6076_v50  ;;  %v2059_v47 = vrot.slane %v5070_v41, 2 }
 0x338   :  { %v5088_v31 = vsel %vm6311_vm14, %v2040_v44, %v2048_v38  ;;  %v5092_v28 = vsel %vm6312_vm6, %v2041_v22, %v2049_v54  ;;  %v5096_v32 = vsel %vm6313_vm8, %v2042_v2, %v2050_v11  ;;  %v2060_v26 = vrot.slane %v5074_v6, 2 }
 0x339   :  { %v2061_v3 = vrot.slane %v5078_v13, 2  ;;  %v2062_v49 = vrot.slane %v5082_v63, 2  ;;  %v2063_v33 = vrot.slane %v5084_v27, 2  ;;  %v2064_v18 = vrot.slane %v5088_v31, 2 }
 0x33a   :  { %v2065_v58 = vrot.slane %v5092_v28, 2  ;;  %v2066_v54 = vrot.slane %v5096_v32, 2  ;;  %vm6314_vm14 = vcmp.lt.s32.totalorder %v3315_v45, 6  ;;  %v2075_v11 = vrot.slane %v5070_v41, 6 }
 0x33b   :  { %v2072_v50 = vsel %vm6314_vm14, %v2060_v26, %v2061_v3  ;;  %vm6315_vm8 = vmmov %vm6314_vm14  ;;  %v2076_v48 = vrot.slane %v5074_v6, 6  ;;  %v2077_v4 = vrot.slane %v5078_v13, 6  ;;  %v2078_v14 = vrot.slane %v5082_v63, 6 }
 0x33c   :  { %v2068_v8 = vsel %vm6315_vm8, %v2064_v18, %v2065_v58  ;;  %vm6316_vm2 = vmmov %vm6315_vm8  ;;  %v2079_v44 = vrot.slane %v5084_v27, 6  ;;  %v2080_v22 = vrot.slane %v5088_v31, 6  ;;  %v2081_v2 = vrot.slane %v5092_v28, 6 }
 0x33d   :  { %v2069_v56 = vsel %vm6316_vm2, %v2063_v33, %v2064_v18  ;;  %vm6317_vm6 = vmmov %vm6316_vm2  ;;  %v2082_v57 = vrot.slane %v5096_v32, 6 }
 0x33e   :  { %v2070_v36 = vsel %vm6317_vm6, %v2062_v49, %v2063_v33  ;;  %vm6318_vm7 = vmmov %vm6316_vm2 }
 0x33f   :  { %v2073_v0 = vsel %vm6318_vm7, %v2059_v47, %v2060_v26  ;;  %vm6319_vm3 = vmmov %vm6316_vm2 }
 0x340   :  { %v2067_v20 = vsel %vm6319_vm3, %v2065_v58, %v2066_v54  ;;  %vm6320_vm13 = vmmov %vm6316_vm2  ;;  %vm6322_vm3 = vcmp.lt.s32.totalorder %v3315_v45, 2 }
 0x341   :  { %v2071_v61 = vsel %vm6320_vm13, %v2061_v3, %v2062_v49  ;;  %vm6321_vm7 = vmmov %vm6316_vm2  ;;  %v2088_v16 = vsel %vm6322_vm3, %v2076_v48, %v2077_v4 }
 0x342   :  { %v2074_v46 = vsel %vm6321_vm7, %v2066_v54, %v2059_v47  ;;  %vm6323_vm13 = vmmov %vm6322_vm3  ;;  %v2093_v33 = vsel %vm6226_vm0, %v2071_v61, %v2088_v16 }
 0x343   :  { %v2089_v19 = vsel %vm6323_vm13, %v2075_v11, %v2076_v48  ;;  %vm6324_vm14 = vmmov %vm6322_vm3  ;;  %vm6330_vm13 = vnez %v5837_v34 }
 0x344   :  { %v2084_v60 = vsel %vm6324_vm14, %v2080_v22, %v2081_v2  ;;  %vm6325_vm8 = vmmov %vm6322_vm3  ;;  %v2092_v49 = vsel %vm6330_vm13, %v2072_v50, %v2089_v19 }
 0x345   :  { %v2085_v38 = vsel %vm6325_vm8, %v2079_v44, %v2080_v22  ;;  %vm6326_vm2 = vmmov %vm6322_vm3  ;;  %vm6331_vm8 = vnez %v5877_v5 }
 0x346   :  { %v2086_v43 = vsel %vm6326_vm2, %v2078_v14, %v2079_v44  ;;  %vm6327_vm6 = vmmov %vm6326_vm2 }
 0x347   :  { %v2087_v47 = vsel %vm6327_vm6, %v2077_v4, %v2078_v14  ;;  %vm6328_vm7 = vmmov %vm6326_vm2  ;;  %vm6333_vm6 = vnez %v6230_v25  ;;  %v2116_v4 = vmin.f32 %v5074_v6, %v2092_v49 }
 0x348   :  { %v2083_v26 = vsel %vm6328_vm7, %v2081_v2, %v2082_v57  ;;  %vm6329_vm3 = vmmov %vm6326_vm2  ;;  %v2094_v58 = vsel %vm6228_vm12, %v2070_v36, %v2087_v47  ;;  %vm6332_vm2 = vnez %v5852_v9  ;;  %vm6334_vm7 = vnez %v6232_v39  ;;  %v6345_v47 = vld [vmem:[#allocation26_spill] sm:$0xff] }
 0x349   :  { %v2090_v3 = vsel %vm6329_vm3, %v2082_v57, %v2075_v11  ;;  %vm2102_vm14 = vmxor %vm5998_vm1, %vm6228_vm12  ;;  %v2095_v54 = vsel %vm6332_vm2, %v2069_v56, %v2086_v43  ;;  %v2096_v11 = vsel %vm6333_vm6, %v2068_v8, %v2085_v38  ;;  %v2097_v50 = vsel %vm6334_vm7, %v2067_v20, %v2084_v60 }
 0x34a   :  { %v2091_v18 = vsel %vm6331_vm8, %v2073_v0, %v2090_v3  ;;  %vm6335_vm3 = vnez %v5885_v37  ;;  %vm5168_vm8 = vmxor %vm2102_vm14, %vm5998_vm1  ;;  %v6336_v0 = vmov 0  ;;  %v2117_v56 = vmin.f32 %v5078_v13, %v2093_v33 }
 0x34b   :  { %v2098_v61 = vsel %vm6335_vm3, %v2074_v46, %v2083_v26  ;;  %v2115_v48 = vmin.f32 %v5070_v41, %v2091_v18  ;;  %v6337_v0 = vsel %vm5168_vm8, 4294967295, %v6336_v0  ;;  %v2118_v36 = vmin.f32 %v5082_v63, %v2094_v58  ;;  %vm2111_vm3 = vmxor %vm6332_vm2, %vm5998_vm1 }
 0x34c   :  { %v2119_v8 = vmin.f32 %v5084_v27, %v2095_v54  ;;  %v2120_v20 = vmin.f32 %v5088_v31, %v2096_v11  ;;  %v2121_v14 = vmin.f32 %v5092_v28, %v2097_v50  ;;  %v2122_v44 = vmin.f32 %v5096_v32, %v2098_v61 }
 0x34d   :  { %v2123_v22 = vmax.f32 %v5070_v41, %v2091_v18  ;;  %v2124_v2 = vmax.f32 %v5074_v6, %v2092_v49  ;;  %v2125_v46 = vmax.f32 %v5078_v13, %v2093_v33  ;;  %v2126_v57 = vmax.f32 %v5082_v63, %v2094_v58  ;;  %v6340_v6 = vld [vmem:[#allocation22_spill] sm:$0xff] }
 0x34e   :  { %v2127_v16 = vmax.f32 %v5084_v27, %v2095_v54  ;;  %v2128_v19 = vmax.f32 %v5088_v31, %v2096_v11  ;;  %v2129_v60 = vmax.f32 %v5092_v28, %v2097_v50  ;;  %v2130_v38 = vmax.f32 %v5096_v32, %v2098_v61  ;;  %v6342_v31 = vld [vmem:[#allocation24_spill] sm:$0xff] }
 0x34f   :  { %vm6338_vm14 = vnez %v6098_v12  ;;  %vm6339_vm7 = vnez %v6236_v17  ;;  %vm6341_vm6 = vnez %v6340_v6  ;;  %v5203_v63 = vsel %vm5168_vm8, %v2118_v36, %v2126_v57 }
 0x350   :  { %v5191_v43 = vsel %vm6338_vm14, %v2115_v48, %v2123_v22  ;;  %v5195_v41 = vsel %vm6339_vm7, %v2116_v4, %v2124_v2  ;;  %v5199_v13 = vsel %vm6341_vm6, %v2117_v56, %v2125_v46  ;;  %v5205_v27 = vsel %vm2111_vm3, %v2119_v8, %v2127_v16 }
 0x351   :  { %vm6343_vm2 = vnez %v6342_v31  ;;  %vm6344_vm14 = vnez %v6243_v24  ;;  %vm6346_vm7 = vnez %v6345_v47  ;;  %v2139_v3 = vrot.slane %v5191_v43, 1 }
 0x352   :  { %v5209_v28 = vsel %vm6343_vm2, %v2120_v20, %v2128_v19  ;;  %v5213_v32 = vsel %vm6344_vm14, %v2121_v14, %v2129_v60  ;;  %v5217_v26 = vsel %vm6346_vm7, %v2122_v44, %v2130_v38  ;;  %v2140_v49 = vrot.slane %v5195_v41, 1 }
 0x353   :  { %v2141_v33 = vrot.slane %v5199_v13, 1  ;;  %v2142_v18 = vrot.slane %v5203_v63, 1  ;;  %v2143_v58 = vrot.slane %v5205_v27, 1  ;;  %v2144_v54 = vrot.slane %v5209_v28, 1 }
 0x354   :  { %v2145_v24 = vrot.slane %v5213_v32, 1  ;;  %v2146_v11 = vrot.slane %v5217_v26, 1  ;;  %v2155_v50 = vrot.slane %v5191_v43, 7  ;;  %vm6347_vm2 = vcmp.lt.s32.totalorder %v3315_v45, 7 }
 0x355   :  { %v2149_v61 = vsel %vm6347_vm2, %v2143_v58, %v2144_v54  ;;  %vm6348_vm7 = vmmov %vm6347_vm2  ;;  %v2156_v14 = vrot.slane %v5195_v41, 7  ;;  %v2157_v44 = vrot.slane %v5199_v13, 7  ;;  %v2158_v22 = vrot.slane %v5203_v63, 7 }
 0x356   :  { %v2150_v48 = vsel %vm6348_vm7, %v2142_v18, %v2143_v58  ;;  %vm6349_vm3 = vmmov %vm6347_vm2  ;;  %v2159_v2 = vrot.slane %v5205_v27, 7  ;;  %v2160_v46 = vrot.slane %v5209_v28, 7  ;;  %v2154_v57 = vsel %vm6347_vm2, %v2146_v11, %v2139_v3 }
 0x357   :  { %v2151_v4 = vsel %vm6349_vm3, %v2141_v33, %v2142_v18  ;;  %vm6350_vm14 = vmmov %vm6347_vm2  ;;  %v2161_v16 = vrot.slane %v5213_v32, 7  ;;  %v2162_v19 = vrot.slane %v5217_v26, 7 }
 0x358   :  { %v2153_v56 = vsel %vm6350_vm14, %v2139_v3, %v2140_v49  ;;  %vm6351_vm8 = vmmov %vm6347_vm2 }
 0x359   :  { %v2147_v36 = vsel %vm6351_vm8, %v2145_v24, %v2146_v11  ;;  %vm6352_vm6 = vmmov %vm6347_vm2  ;;  %vm6354_vm8 = vcmp.lt.s32.totalorder %v3315_v45, 1 }
 0x35a   :  { %v2148_v8 = vsel %vm6352_vm6, %v2144_v54, %v2145_v24  ;;  %vm6353_vm12 = vmmov %vm6347_vm2  ;;  %v2169_v60 = vsel %vm6354_vm8, %v2155_v50, %v2156_v14 }
 0x35b   :  { %v2152_v20 = vsel %vm6353_vm12, %v2140_v49, %v2141_v33  ;;  %vm6355_vm12 = vmmov %vm6354_vm8 }
 0x35c   :  { %v2165_v38 = vsel %vm6355_vm12, %v2159_v2, %v2160_v46  ;;  %vm6356_vm6 = vmmov %vm6354_vm8  ;;  %v2172_v58 = vsel %vm6153_vm10, %v2152_v20, %v2169_v60  ;;  %v6366_v20 = vld [vmem:[#allocation12_spill] sm:$0xff] }
 0x35d   :  { %v2166_v31 = vsel %vm6356_vm6, %v2158_v22, %v2159_v2  ;;  %vm6357_vm7 = vmmov %vm6356_vm6 }
 0x35e   :  { %v2167_v47 = vsel %vm6357_vm7, %v2157_v44, %v2158_v22  ;;  %vm6358_vm3 = vmmov %vm6356_vm6  ;;  %v2175_v22 = vsel %vm6267_vm9, %v2149_v61, %v2166_v31  ;;  %vm6367_vm7 = vnez %v6366_v20 }
 0x35f   :  { %v2168_v49 = vsel %vm6358_vm3, %v2156_v14, %v2157_v44  ;;  %vm6359_vm14 = vmmov %vm6358_vm3  ;;  %v2174_v14 = vsel %vm6162_vm11, %v2150_v48, %v2167_v47  ;;  %v2196_v48 = vmin.f32 %v5195_v41, %v2172_v58 }
 0x360   :  { %v2163_v3 = vsel %vm6359_vm14, %v2161_v16, %v2162_v19  ;;  %vm6360_vm2 = vmmov %vm6358_vm3  ;;  %v2173_v11 = vsel %vm6135_vm4, %v2151_v4, %v2168_v49  ;;  %v6370_v4 = vmov 0  ;;  %v2198_v60 = vmin.f32 %v5203_v63, %v2174_v14 }
 0x361   :  { %v2164_v33 = vsel %vm6360_vm2, %v2160_v46, %v2161_v16  ;;  %vm6361_vm8 = vmmov %vm6360_vm2  ;;  %v6368_v16 = vld [vmem:[#allocation11_spill] sm:$0xff]  ;;  %v2197_v61 = vmin.f32 %v5199_v13, %v2173_v11  ;;  %v2204_v49 = vmax.f32 %v5195_v41, %v2172_v58 }
 0x362   :  { %v2170_v18 = vsel %vm6361_vm8, %v2162_v19, %v2155_v50  ;;  %vm2182_vm12 = vmxor %vm5998_vm1, %vm6162_vm11  ;;  %v6364_v50 = vld [vmem:[#allocation9_spill] sm:$0xff]  ;;  %v2177_v46 = vsel %vm6367_vm7, %v2147_v36, %v2164_v33  ;;  %vm6369_vm3 = vnez %v6368_v16  ;;  %v2206_v33 = vmax.f32 %v5203_v63, %v2174_v14 }
 0x363   :  { %v2171_v54 = vsel %vm6128_vm5, %v2153_v56, %v2170_v18  ;;  %vm6365_vm6 = vnez %v6364_v50  ;;  %v2178_v19 = vsel %vm6369_vm3, %v2154_v57, %v2163_v3  ;;  %vm5288_vm14 = vmxor %vm2182_vm12, %vm5998_vm1  ;;  %v2205_v3 = vmax.f32 %v5199_v13, %v2173_v11 }
 0x364   :  { %v2176_v2 = vsel %vm6365_vm6, %v2148_v8, %v2165_v38  ;;  %v2195_v56 = vmin.f32 %v5191_v43, %v2171_v54  ;;  %v6371_v4 = vsel %vm5288_vm14, 4294967295, %v6370_v4  ;;  %v2199_v8 = vmin.f32 %v5205_v27, %v2175_v22  ;;  %vm5299_vm2 = vmxor %vm6267_vm9, %vm5998_vm1 }
 0x365   :  { %v2200_v57 = vmin.f32 %v5209_v28, %v2176_v2  ;;  %v2201_v38 = vmin.f32 %v5213_v32, %v2177_v46  ;;  %v2202_v31 = vmin.f32 %v5217_v26, %v2178_v19  ;;  %v2203_v47 = vmax.f32 %v5191_v43, %v2171_v54  ;;  %v6376_v54 = vld [vmem:[#allocation27_spill] sm:$0xff] }
 0x366   :  { %v2207_v18 = vmax.f32 %v5205_v27, %v2175_v22  ;;  %v2208_v16 = vmax.f32 %v5209_v28, %v2176_v2  ;;  %v2209_v20 = vmax.f32 %v5213_v32, %v2177_v46  ;;  %v2210_v50 = vmax.f32 %v5217_v26, %v2178_v19  ;;  %v6378_v27 = vld [vmem:[#allocation29_spill] sm:$0xff] }
 0x367   :  { %vm6374_vm8 = vnez %v6148_v40  ;;  %vm6375_vm12 = vnez %v6274_v15  ;;  %vm6377_vm3 = vnez %v6376_v54  ;;  %v2214_v13 = vsel %vm5288_vm14, %v2198_v60, %v2206_v33 }
 0x368   :  { %v2211_v44 = vsel %vm6374_vm8, %v2195_v56, %v2203_v47  ;;  %v2212_v43 = vsel %vm6375_vm12, %v2196_v48, %v2204_v49  ;;  %v2213_v41 = vsel %vm6377_vm3, %v2197_v61, %v2205_v3  ;;  %v2215_v63 = vsel %vm5299_vm2, %v2199_v8, %v2207_v18 }
 0x369   :  { %vm6379_vm7 = vnez %v6378_v27  ;;  %vm6380_vm6 = vnez %v6281_v30  ;;  %vm6381_vm8 = vnez %v6179_v23  ;;  %v2251_v58 = vmin.f32 %v2211_v44, %v2215_v63 }
 0x36a   :  { %v2216_v28 = vsel %vm6379_vm7, %v2200_v57, %v2208_v16  ;;  %v2217_v32 = vsel %vm6380_vm6, %v2201_v38, %v2209_v20  ;;  %v2218_v26 = vsel %vm6381_vm8, %v2202_v31, %v2210_v50  ;;  %v2255_v2 = vmax.f32 %v2211_v44, %v2215_v63 }
 0x36b   :  { %v2252_v11 = vmin.f32 %v2212_v43, %v2216_v28  ;;  %v2253_v14 = vmin.f32 %v2213_v41, %v2217_v32  ;;  %v2254_v22 = vmin.f32 %v2214_v13, %v2218_v26  ;;  %v2256_v46 = vmax.f32 %v2212_v43, %v2216_v28 }
 0x36c   :  { %v2257_v19 = vmax.f32 %v2213_v41, %v2217_v32  ;;  %v2258_v56 = vmax.f32 %v2214_v13, %v2218_v26  ;;  %vm6382_vm6 = vcmp.lt.s32.totalorder %v3315_v45, 4 }
 0x36d   :  { %v2291_v48 = vmin.f32 %v2251_v58, %v2253_v14  ;;  %v2292_v61 = vmin.f32 %v2252_v11, %v2254_v22  ;;  %v2301_v60 = vmax.f32 %v2253_v14, %v2251_v58  ;;  %v2302_v8 = vmax.f32 %v2254_v22, %v2252_v11  ;;  %vm6383_vm7 = vmmov %vm6382_vm6 }
 0x36e   :  { %v2295_v36 = vmin.f32 %v2255_v2, %v2257_v19  ;;  %v2296_v16 = vmin.f32 %v2256_v46, %v2258_v56  ;;  %v2305_v57 = vmax.f32 %v2257_v19, %v2255_v2  ;;  %v2306_v30 = vmax.f32 %v2258_v56, %v2256_v46  ;;  %vm6384_vm2 = vmmov %vm6382_vm6 }
 0x36f   :  { %v2339_v20 = vmin.f32 %v2291_v48, %v2292_v61  ;;  %v2341_v38 = vmin.f32 %v2301_v60, %v2302_v8  ;;  %v2348_v23 = vmax.f32 %v2292_v61, %v2291_v48  ;;  %v2350_v50 = vmax.f32 %v2302_v8, %v2301_v60  ;;  %vm6385_vm8 = vmmov %vm6384_vm2  ;;  %v6393_v61 = vld [vmem:[#allocation14_spill] sm:$0xff]  ;;  %v6395_v8 = vld [vmem:[#allocation15_spill] sm:$0xff] }
 0x370   :  { %v2343_v31 = vmin.f32 %v2295_v36, %v2296_v16  ;;  %v2345_v47 = vmin.f32 %v2305_v57, %v2306_v30  ;;  %v2352_v49 = vmax.f32 %v2296_v16, %v2295_v36  ;;  %v2354_v3 = vmax.f32 %v2306_v30, %v2305_v57  ;;  %vm6386_vm14 = vmmov %vm6384_vm2  ;;  %v6397_v16 = vld [vmem:[#allocation16_spill] sm:$0xff] }
 0x371   :  { %v2363_v44 = vrot.slane %v2339_v20, 4  ;;  %v2364_v33 = vrot.slane %v2348_v23, 4  ;;  %v2365_v18 = vrot.slane %v2341_v38, 4  ;;  %v2366_v43 = vrot.slane %v2350_v50, 4  ;;  %vm6387_vm3 = vmmov %vm6384_vm2 }
 0x372   :  { %v2367_v41 = vrot.slane %v2343_v31, 4  ;;  %v2368_v13 = vrot.slane %v2352_v49, 4  ;;  %v2369_v63 = vrot.slane %v2345_v47, 4  ;;  %v2370_v27 = vrot.slane %v2354_v3, 4  ;;  %vm6388_vm12 = vmmov %vm6384_vm2 }
 0x373   :  { %v2375_v28 = vsel %vm6382_vm6, %v2365_v18, %v2366_v43  ;;  %v2376_v32 = vsel %vm6383_vm7, %v2364_v33, %v2365_v18  ;;  %v2377_v26 = vsel %vm6384_vm2, %v2363_v44, %v2364_v33  ;;  %vm6389_vm6 = vmmov %vm6384_vm2  ;;  %vm6390_vm7 = vnez %v5854_v29 }
 0x374   :  { %v2371_v58 = vsel %vm6385_vm8, %v2369_v63, %v2370_v27  ;;  %v2372_v11 = vsel %vm6386_vm14, %v2368_v13, %v2369_v63  ;;  %v2373_v14 = vsel %vm6387_vm3, %v2367_v41, %v2368_v13  ;;  %v2374_v22 = vsel %vm6388_vm12, %v2366_v43, %v2367_v41 }
 0x375   :  { %v2378_v2 = vsel %vm6389_vm6, %v2370_v27, %v2363_v44  ;;  %v2380_v46 = vsel %vm6296_vm15, %v2376_v32, %v2377_v26  ;;  %v2381_v19 = vsel %vm6390_vm7, %v2375_v28, %v2376_v32  ;;  %vm6391_vm2 = vnez %v5856_v35 }
 0x376   :  { %v2382_v56 = vsel %vm6391_vm2, %v2374_v22, %v2375_v28  ;;  %vm6392_vm14 = vnez %v5914_v53  ;;  %vm6394_vm3 = vnez %v6393_v61  ;;  %vm6396_vm12 = vnez %v6395_v8 }
 0x377   :  { %v2379_v48 = vsel %vm6392_vm14, %v2377_v26, %v2378_v2  ;;  %v2383_v60 = vsel %vm6394_vm3, %v2373_v14, %v2374_v22  ;;  %v2384_v36 = vsel %vm6396_vm12, %v2372_v11, %v2373_v14  ;;  %vm6398_vm8 = vnez %v6397_v16 }
 0x378   :  { %v2385_v57 = vsel %vm6398_vm8, %v2371_v58, %v2372_v11  ;;  %vm6400_vm15 = vnez %v6399_v51  ;;  %v2403_v29 = vmin.f32 %v2339_v20, %v2379_v48  ;;  %v2404_v35 = vmin.f32 %v2348_v23, %v2380_v46 }
 0x379   :  { %v2386_v30 = vsel %vm6400_vm15, %v2378_v2, %v2371_v58  ;;  %vm2394_vm6 = vmxor %vm5998_vm1, %vm6400_vm15  ;;  %v2405_v53 = vmin.f32 %v2341_v38, %v2381_v19  ;;  %v2406_v44 = vmin.f32 %v2350_v50, %v2382_v56  ;;  %v2407_v33 = vmin.f32 %v2343_v31, %v2383_v60 }
 0x37a   :  { %v2408_v18 = vmin.f32 %v2352_v49, %v2384_v36  ;;  %v2409_v43 = vmin.f32 %v2345_v47, %v2385_v57  ;;  %v2410_v41 = vmin.f32 %v2354_v3, %v2386_v30  ;;  %v2411_v13 = vmax.f32 %v2339_v20, %v2379_v48  ;;  %vm2402_vm7 = vmxor %vm2394_vm6, %vm5998_vm1 }
 0x37b   :  { %v2412_v63 = vmax.f32 %v2348_v23, %v2380_v46  ;;  %v2413_v27 = vmax.f32 %v2341_v38, %v2381_v19  ;;  %v2414_v28 = vmax.f32 %v2350_v50, %v2382_v56  ;;  %v2415_v32 = vmax.f32 %v2343_v31, %v2383_v60  ;;  %v6405_v23 = vld [vmem:[#allocation19_spill] sm:$0xff] }
 0x37c   :  { %v2416_v26 = vmax.f32 %v2352_v49, %v2384_v36  ;;  %v2417_v58 = vmax.f32 %v2345_v47, %v2385_v57  ;;  %v2418_v11 = vmax.f32 %v2354_v3, %v2386_v30  ;;  %vm6401_vm2 = vnez %v6050_v62  ;;  %v6407_v31 = vld [vmem:[#allocation31_spill] sm:$0xff]  ;;  %v6409_v47 = vld [vmem:[#allocation21_spill] sm:$0xff] }
 0x37d   :  { %v5368_v14 = vsel %vm6401_vm2, %v2403_v29, %v2411_v13  ;;  %vm6402_vm14 = vnez %v6196_v10  ;;  %vm6403_vm3 = vnez %v6308_v55  ;;  %vm6404_vm12 = vnez %v6305_v52 }
 0x37e   :  { %v5372_v22 = vsel %vm6402_vm14, %v2404_v35, %v2412_v63  ;;  %v5376_v20 = vsel %vm6403_vm3, %v2405_v53, %v2413_v27  ;;  %v5380_v38 = vsel %vm6404_vm12, %v2406_v44, %v2414_v28  ;;  %vm6406_vm8 = vnez %v6405_v23 }
 0x37f   :  { %v5384_v50 = vsel %vm6406_vm8, %v2407_v33, %v2415_v32  ;;  %vm6408_vm15 = vnez %v6407_v31  ;;  %vm6410_vm6 = vnez %v6409_v47  ;;  %v5394_v49 = vsel %vm2402_vm7, %v2410_v41, %v2418_v11 }
 0x380   :  { %v5388_v62 = vsel %vm6408_vm15, %v2408_v18, %v2416_v26  ;;  %v5392_v10 = vsel %vm6410_vm6, %v2409_v43, %v2417_v58  ;;  %v2427_v55 = vrot.slane %v5368_v14, 2  ;;  %v2428_v52 = vrot.slane %v5372_v22, 2 }
 0x381   :  { %v2429_v3 = vrot.slane %v5376_v20, 2  ;;  %v2430_v2 = vrot.slane %v5380_v38, 2  ;;  %v2431_v46 = vrot.slane %v5384_v50, 2  ;;  %v2432_v19 = vrot.slane %v5388_v62, 2 }
 0x382   :  { %v2433_v56 = vrot.slane %v5392_v10, 2  ;;  %v2434_v48 = vrot.slane %v5394_v49, 2  ;;  %vm6411_vm2 = vcmp.lt.s32.totalorder %v3315_v45, 6  ;;  %v2443_v60 = vrot.slane %v5368_v14, 6 }
 0x383   :  { %v2440_v61 = vsel %vm6411_vm2, %v2428_v52, %v2429_v3  ;;  %vm6412_vm7 = vmmov %vm6411_vm2  ;;  %v2444_v29 = vrot.slane %v5372_v22, 6  ;;  %v2445_v35 = vrot.slane %v5376_v20, 6  ;;  %v2446_v53 = vrot.slane %v5380_v38, 6 }
 0x384   :  { %v2436_v8 = vsel %vm6412_vm7, %v2432_v19, %v2433_v56  ;;  %vm6413_vm14 = vmmov %vm6411_vm2  ;;  %v2447_v44 = vrot.slane %v5384_v50, 6  ;;  %v2448_v33 = vrot.slane %v5388_v62, 6  ;;  %v2449_v18 = vrot.slane %v5392_v10, 6 }
 0x385   :  { %v2437_v36 = vsel %vm6413_vm14, %v2431_v46, %v2432_v19  ;;  %vm6414_vm3 = vmmov %vm6411_vm2  ;;  %v2450_v41 = vrot.slane %v5394_v49, 6 }
 0x386   :  { %v2438_v16 = vsel %vm6414_vm3, %v2430_v2, %v2431_v46  ;;  %vm6415_vm12 = vmmov %vm6411_vm2 }
 0x387   :  { %v2441_v57 = vsel %vm6415_vm12, %v2427_v55, %v2428_v52  ;;  %vm6416_vm8 = vmmov %vm6411_vm2 }
 0x388   :  { %v2435_v51 = vsel %vm6416_vm8, %v2433_v56, %v2434_v48  ;;  %vm6417_vm15 = vmmov %vm6411_vm2 }
 0x389   :  { %v2439_v30 = vsel %vm6417_vm15, %v2429_v3, %v2430_v2  ;;  %vm6418_vm6 = vmmov %vm6411_vm2  ;;  %vm6419_vm2 = vcmp.lt.s32.totalorder %v3315_v45, 2 }
 0x38a   :  { %v2442_v43 = vsel %vm6418_vm6, %v2434_v48, %v2427_v55  ;;  %v2456_v13 = vsel %vm6419_vm2, %v2444_v29, %v2445_v35  ;;  %vm6420_vm7 = vmmov %vm6419_vm2 }
 0x38b   :  { %v2457_v63 = vsel %vm6420_vm7, %v2443_v60, %v2444_v29  ;;  %vm6421_vm14 = vmmov %vm6419_vm2  ;;  %v2461_v31 = vsel %vm6226_vm0, %v2439_v30, %v2456_v13  ;;  %vm6428_vm7 = vnez %v5850_v21  ;;  %vm6432_vm0 = vnez %v5885_v37  ;;  %v6441_v29 = vld [vmem:[#allocation25_spill] sm:$0xff] }
 0x38c   :  { %v2452_v27 = vsel %vm6421_vm14, %v2448_v33, %v2449_v18  ;;  %vm6422_vm3 = vmmov %vm6419_vm2  ;;  %v2460_v23 = vsel %vm6330_vm13, %v2440_v61, %v2457_v63  ;;  %vm6429_vm14 = vnez %v5852_v9  ;;  %vm6431_vm13 = vnez %v6232_v39 }
 0x38d   :  { %v2453_v28 = vsel %vm6422_vm3, %v2447_v44, %v2448_v33  ;;  %vm6423_vm12 = vmmov %vm6419_vm2  ;;  %vm6430_vm3 = vnez %v6230_v25  ;;  %v2484_v34 = vmin.f32 %v5372_v22, %v2460_v23  ;;  %v2465_v1 = vsel %vm6431_vm13, %v2435_v51, %v2452_v27 }
 0x38e   :  { %v2454_v32 = vsel %vm6423_vm12, %v2446_v53, %v2447_v44  ;;  %vm6424_vm8 = vmmov %vm6419_vm2  ;;  %v2464_v3 = vsel %vm6430_vm3, %v2436_v8, %v2453_v28  ;;  %v2485_v46 = vmin.f32 %v5376_v20, %v2461_v31  ;;  %v2492_v56 = vmax.f32 %v5372_v22, %v2460_v23 }
 0x38f   :  { %v2455_v26 = vsel %vm6424_vm8, %v2445_v35, %v2446_v53  ;;  %vm6425_vm15 = vmmov %vm6419_vm2  ;;  %v2463_v52 = vsel %vm6429_vm14, %v2437_v36, %v2454_v32  ;;  %v2488_v19 = vmin.f32 %v5388_v62, %v2464_v3  ;;  %v2493_v39 = vmax.f32 %v5376_v20, %v2461_v31  ;;  %v6439_v36 = vld [vmem:[#allocation10_spill] sm:$0xff] }
 0x390   :  { %v2451_v58 = vsel %vm6425_vm15, %v2449_v18, %v2450_v41  ;;  %vm6426_vm6 = vmmov %vm6419_vm2  ;;  %vm6427_vm2 = vnez %v5877_v5  ;;  %v2462_v55 = vsel %vm6428_vm7, %v2438_v16, %v2455_v26  ;;  %v2487_v9 = vmin.f32 %v5384_v50, %v2463_v52 }
 0x391   :  { %v2458_v11 = vsel %vm6426_vm6, %v2450_v41, %v2443_v60  ;;  %v2466_v5 = vsel %vm6432_vm0, %v2442_v43, %v2451_v58  ;;  %v2486_v21 = vmin.f32 %v5380_v38, %v2462_v55  ;;  %vm2474_vm12 = vmxor %vm5998_vm1, %vm6432_vm0  ;;  %v2494_v48 = vmax.f32 %v5380_v38, %v2462_v55 }
 0x392   :  { %v2459_v47 = vsel %vm6427_vm2, %v2441_v57, %v2458_v11  ;;  %v2495_v61 = vmax.f32 %v5384_v50, %v2463_v52  ;;  %v2496_v60 = vmax.f32 %v5388_v62, %v2464_v3  ;;  %vm6433_vm8 = vnez %v6098_v12  ;;  %vm2482_vm7 = vmxor %vm2474_vm12, %vm5998_vm1  ;;  %v6437_v50 = vld [vmem:[#allocation23_spill] sm:$0xff] }
 0x393   :  { %v2483_v2 = vmin.f32 %v5368_v14, %v2459_v47  ;;  %v2491_v25 = vmax.f32 %v5368_v14, %v2459_v47  ;;  %vm6434_vm15 = vnez %v6236_v17  ;;  %v2490_v22 = vmin.f32 %v5394_v49, %v2466_v5 }
 0x394   :  { %v5479_v14 = vsel %vm6434_vm15, %v2484_v34, %v2492_v56  ;;  %v2498_v37 = vmax.f32 %v5394_v49, %v2466_v5  ;;  %vm6435_vm6 = vnez %v6340_v6  ;;  %vm6436_vm2 = vnez %v6337_v0 }
 0x395   :  { %v2499_v8 = vsel %vm6433_vm8, %v2483_v2, %v2491_v25  ;;  %v5485_v20 = vsel %vm6435_vm6, %v2485_v46, %v2493_v39  ;;  %v5489_v38 = vsel %vm6436_vm2, %v2486_v21, %v2494_v48  ;;  %v2489_v12 = vmin.f32 %v5392_v10, %v2465_v1  ;;  %v2587_v48 = vld [vmem:[%s5635_s6] sm:$0xff] }
 0x396   :  { %v2497_v17 = vmax.f32 %v5392_v10, %v2465_v1  ;;  %vm6438_vm14 = vnez %v6437_v50  ;;  %vm6440_vm3 = vnez %v6439_v36  ;;  %v2507_v6 = vrot.slane %v2499_v8, 1 }
 0x397   :  { %v5496_v62 = vsel %vm6438_vm14, %v2487_v9, %v2495_v61  ;;  %v5500_v49 = vsel %vm6440_vm3, %v2488_v19, %v2496_v60  ;;  %v2508_v16 = vrot.slane %v5479_v14, 1  ;;  %v2509_v0 = vrot.slane %v5485_v20, 1 }
 0x398   :  { %v2510_v57 = vrot.slane %v5489_v38, 1  ;;  %v2523_v51 = vrot.slane %v2499_v8, 7  ;;  %v5505_v30 = vsel %vm2482_vm7, %v2490_v22, %v2498_v37  ;;  %v2511_v10 = vrot.slane %v5496_v62, 1 }
 0x399   :  { %vm6442_vm13 = vnez %v6441_v29  ;;  %v2512_v53 = vrot.slane %v5500_v49, 1  ;;  %v2524_v44 = vrot.slane %v5479_v14, 7  ;;  %vm6443_vm0 = vcmp.lt.s32.totalorder %v3315_v45, 7 }
 0x39a   :  { %v5510_v35 = vsel %vm6442_vm13, %v2489_v12, %v2497_v17  ;;  %v2520_v33 = vsel %vm6443_vm0, %v2508_v16, %v2509_v0  ;;  %vm6444_vm12 = vmmov %vm6443_vm0  ;;  %v2525_v43 = vrot.slane %v5485_v20, 7  ;;  %v2526_v41 = vrot.slane %v5489_v38, 7  ;;  %v6461_v12 = vld [vmem:[#allocation9_spill] sm:$0xff] }
 0x39b   :  { %v2521_v18 = vsel %vm6444_vm12, %v2507_v6, %v2508_v16  ;;  %vm6445_vm8 = vmmov %vm6443_vm0  ;;  %v2527_v63 = vrot.slane %v5496_v62, 7  ;;  %v2530_v27 = vrot.slane %v5505_v30, 7  ;;  %vm6446_vm15 = vcmp.lt.s32.totalorder %v3315_v45, 1  ;;  %v6465_v45 = vld [vmem:[#allocation12_spill] sm:$0xff] }
 0x39c   :  { %v2519_v13 = vsel %vm6445_vm8, %v2509_v0, %v2510_v57  ;;  %v2537_v28 = vsel %vm6446_vm15, %v2523_v51, %v2524_v44  ;;  %v2513_v32 = vrot.slane %v5510_v35, 1  ;;  %vm6447_vm6 = vmmov %vm6443_vm0  ;;  %v2528_v11 = vrot.slane %v5500_v49, 7 }
 0x39d   :  { %v2518_v26 = vsel %vm6447_vm6, %v2510_v57, %v2511_v10  ;;  %vm6448_vm2 = vmmov %vm6446_vm15  ;;  %v2540_v47 = vsel %vm6153_vm10, %v2520_v33, %v2537_v28  ;;  %v2514_v55 = vrot.slane %v5505_v30, 1  ;;  %v2529_v34 = vrot.slane %v5510_v35, 7  ;;  %v6472_v28 = vld [vmem:[#allocation13_spill] sm:$0xff] }
 0x39e   :  { %v2536_v58 = vsel %vm6448_vm2, %v2524_v44, %v2525_v43  ;;  %vm6449_vm7 = vmmov %vm6448_vm2  ;;  %v2564_v46 = vmin.f32 %v5479_v14, %v2540_v47  ;;  %v2572_v42 = vmax.f32 %v5479_v14, %v2540_v47  ;;  %v2588_v14 = vld [vmem:[%s5635_s6 + $0x8] sm:$0xff]  ;;  %vm6462_vm8 = vnez %v6461_v12 }
 0x39f   :  { %v2535_v23 = vsel %vm6449_vm7, %v2525_v43, %v2526_v41  ;;  %vm6450_vm14 = vmmov %vm6448_vm2  ;;  %v2541_v3 = vsel %vm6135_vm4, %v2519_v13, %v2536_v58  ;;  %vm6463_vm15 = vnez %v6274_v15  ;;  %vm6464_vm6 = vnez %v6376_v54  ;;  %v2590_v54 = vld [vmem:[%s5635_s6 + $0x18] sm:$0xff]  ;;  %v2591_v43 = vld [vmem:[%s5635_s6 + $0x20] sm:$0xff] }
 0x3a0   :  { %v2538_v31 = vsel %vm6450_vm14, %v2530_v27, %v2523_v51  ;;  %vm6451_vm3 = vmmov %vm6443_vm0  ;;  %v2542_v59 = vsel %vm6162_vm11, %v2518_v26, %v2535_v23  ;;  %v2565_v21 = vmin.f32 %v5485_v20, %v2541_v3  ;;  %v2573_v39 = vmax.f32 %v5485_v20, %v2541_v3 }
 0x3a1   :  { %v2539_v52 = vsel %vm6128_vm5, %v2521_v18, %v2538_v31  ;;  %v2517_v2 = vsel %vm6451_vm3, %v2511_v10, %v2512_v53  ;;  %vm6452_vm13 = vmmov %vm6448_vm2  ;;  %v2566_v60 = vmin.f32 %v5489_v38, %v2542_v59  ;;  %v2580_v50 = vsel %vm6463_vm15, %v2564_v46, %v2572_v42  ;;  %v6470_v18 = vld [vmem:[#allocation28_spill] sm:$0xff] }
 0x3a2   :  { %v2534_v1 = vsel %vm6452_vm13, %v2526_v41, %v2527_v63  ;;  %v2563_v5 = vmin.f32 %v2499_v8, %v2539_v52  ;;  %vm6453_vm10 = vmmov %vm6443_vm0  ;;  %v2571_v9 = vmax.f32 %v2499_v8, %v2539_v52  ;;  %v2574_v8 = vmax.f32 %v5489_v38, %v2542_v59  ;;  %v2593_v31 = vld [vmem:[%s5635_s6 + $0x30] sm:$0xff]  ;;  %v2594_v52 = vld [vmem:[%s5635_s6 + $0x38] sm:$0xff] }
 0x3a3   :  { %v2516_v7 = vsel %vm6453_vm10, %v2512_v53, %v2513_v32  ;;  %vm6454_vm5 = vmmov %vm6448_vm2  ;;  %v2543_v56 = vsel %vm6267_vm9, %v2517_v2, %v2534_v1  ;;  %v2581_v36 = vsel %vm6464_vm6, %v2565_v21, %v2573_v39  ;;  %v2596_v57 = vmul.f32 %v2588_v14, %v2580_v50 }
 0x3a4   :  { %v2533_v24 = vsel %vm6454_vm5, %v2527_v63, %v2528_v11  ;;  %vm6455_vm4 = vmmov %vm6443_vm0  ;;  %vm6458_vm0 = vnez %v6148_v40  ;;  %v2567_v38 = vmin.f32 %v5496_v62, %v2543_v56  ;;  %v2575_v40 = vmax.f32 %v5496_v62, %v2543_v56  ;;  %v6468_v62 = vld [vmem:[#allocation11_spill] sm:$0xff] }
 0x3a5   :  { %v2515_v19 = vsel %vm6455_vm4, %v2513_v32, %v2514_v55  ;;  %vm6457_vm11 = vmmov %vm6448_vm2  ;;  %v2579_v22 = vsel %vm6458_vm0, %v2563_v5, %v2571_v9  ;;  %v2544_v17 = vsel %vm6462_vm8, %v2516_v7, %v2533_v24  ;;  %vm6467_vm7 = vnez %v6371_v4 }
 0x3a6   :  { %v2532_v61 = vsel %vm6457_vm11, %v2528_v11, %v2529_v34  ;;  %vm6459_vm9 = vmmov %vm6451_vm3  ;;  %v2595_v16 = vmul.f32 %v2587_v48, %v2579_v22  ;;  %v2568_v51 = vmin.f32 %v5500_v49, %v2544_v17  ;;  %v2576_v15 = vmax.f32 %v5500_v49, %v2544_v17  ;;  %v6474_v11 = vld [vmem:[#allocation30_spill] sm:$0xff] }
 0x3a7   :  { %v2522_v37 = vsel %vm6459_vm9, %v2514_v55, %v2507_v6  ;;  %vm6460_vm12 = vmmov %vm6448_vm2  ;;  %v2589_v6 = vld [vmem:[%s5635_s6 + $0x10] sm:$0xff]  ;;  %vm6466_vm2 = vnez %v6465_v45  ;;  %v2582_v10 = vsel %vm6467_vm7, %v2566_v60, %v2574_v8  ;;  %vm6469_vm14 = vnez %v6468_v62 }
 0x3a8   :  { %v2531_v20 = vsel %vm6460_vm12, %v2529_v34, %v2530_v27  ;;  %v2545_v0 = vsel %vm6466_vm2, %v2515_v19, %v2532_v61  ;;  %v2597_v53 = vmul.f32 %v2589_v6, %v2581_v36  ;;  %v2603_v44 = vadd.f32 %v2596_v57, %v2595_v16  ;;  %vm2554_vm3 = vmxor %vm5998_vm1, %vm6469_vm14 }
 0x3a9   :  { %v2546_v29 = vsel %vm6469_vm14, %v2522_v37, %v2531_v20  ;;  %v2569_v33 = vmin.f32 %v5510_v35, %v2545_v0  ;;  %v2577_v49 = vmax.f32 %v5510_v35, %v2545_v0  ;;  %vm6471_vm13 = vnez %v6470_v18  ;;  %v2592_v35 = vld [vmem:[%s5635_s6 + $0x28] sm:$0xff]  ;;  %vm2562_vm5 = vmxor %vm2554_vm3, %vm5998_vm1 }
 0x3aa   :  { %v2583_v4 = vsel %vm6471_vm13, %v2567_v38, %v2575_v40  ;;  %v2598_v41 = vmul.f32 %v2590_v54, %v2582_v10  ;;  %v2604_v13 = vadd.f32 %v2603_v44, %v2597_v53  ;;  %v2570_v63 = vmin.f32 %v5505_v30, %v2546_v29 }
 0x3ab   :  { %v2578_v27 = vmax.f32 %v5505_v30, %v2546_v29  ;;  %vm6473_vm10 = vnez %v6472_v28  ;;  %v2599_v26 = vmul.f32 %v2591_v43, %v2583_v4  ;;  %vm6475_vm4 = vnez %v6474_v11 }
 0x3ac   :  { %v2584_v32 = vsel %vm6473_vm10, %v2568_v51, %v2576_v15  ;;  %v2605_v58 = vadd.f32 %v2604_v13, %v2598_v41  ;;  %v2585_v23 = vsel %vm6475_vm4, %v2569_v33, %v2577_v49 }
 0x3ad   :  { %v2600_v47 = vmul.f32 %v2592_v35, %v2584_v32  ;;  %v2586_v55 = vsel %vm2562_vm5, %v2570_v63, %v2578_v27  ;;  %v2601_v3 = vmul.f32 %v2593_v31, %v2585_v23 }
 0x3ae   :  { %v2606_v30 = vadd.f32 %v2605_v58, %v2599_v26  ;;  %v2602_v34 = vmul.f32 %v2594_v52, %v2586_v55 }
 0x3b0   :  { %v2607_v2 = vadd.f32 %v2606_v30, %v2600_v47 }
 0x3b2   :  { %v2608_v1 = vadd.f32 %v2607_v2, %v2601_v3 }
 0x3b4   :  { %v2609_v5 = vadd.f32 %v2608_v1, %v2602_v34 }
 0x3b6   :  { %v2610_v59 = vrot.slane %v2609_v5, 4 }
 0x3b8   :  { %v2611_v46 = vadd.f32 %v2610_v59, %v2609_v5 }
 0x3ba   :  { %v2612_v7 = vrot.slane %v2611_v46, 2 }
 0x3bc   :  { %v2613_v24 = vadd.f32 %v2612_v7, %v2611_v46 }
 0x3be   :  { %v2614_v21 = vrot.slane %v2613_v24, 1 }
 0x3c0   :  { %v2615_v9 = vadd.f32 %v2614_v21, %v2613_v24 }
 0x3c2   :  { %2616 = vst [vmem:[#allocation3] sm:$0x1] %v2615_v9 }
 0x3c3   :  { %2627 = dma.vmem_to_hbm [thread:$0]  %s2623_s26, 16, %s2625_s0, [#allocation4]  }
 0x3c4   :  { %2762 = dma.done.wait [#allocation4], 16  }
 0x3c5   :  { %2763 = vsyncadd [#allocation4], 4294967280 }
 0x3c6   :  { %2632 = vsyncpa [#allocation4], 1 }

</bundles_post_ra>
